<compile_context>
chip_gen: v5e
topology: v5e:2x2
jax: 0.10.0
libtpu: 0.0.40
codegen_flags: <defaults>
</compile_context>

<pallas_src>
from functools import partial

import jax
import jax.numpy as jnp
from jax.experimental import pallas as pl
from jax.experimental.pallas import tpu as pltpu


def _conv_stats_kernel(x_ref, w_ref, y_ref, stats_ref, xp_ref):
    # x_ref    : (1, C, H*W)        NCHW-flat input for one image (lane-dense read)
    # w_ref    : (KH, KW, C, Cout)  block-diagonal conv weight
    # y_ref    : (1, H*W, Cout)     conv output (channels-last, flat spatial)
    # stats_ref: (1, 2, Cout)       per-image [sum, sum-of-squares] per channel
    # xp_ref   : (H+2, W+2, C)      VMEM halo scratch (zero-padded, channels-last)
    Hp, Wp, C = xp_ref.shape
    H, W = Hp - 2, Wp - 2
    KH, KW = w_ref.shape[0], w_ref.shape[1]
    cout = y_ref.shape[2]

    # relu21 + NCHW -> channels-last, written into the interior of a zeroed halo
    # scratch (pad fused in-kernel; relu(0) == 0 so padding order is irrelevant).
    xp_ref[...] = jnp.zeros_like(xp_ref)
    x_hwc = jnp.transpose(jnp.maximum(x_ref[0], 0.0))          # (H*W, C)
    xp_ref[1:H + 1, 1:W + 1, :] = x_hwc.reshape(H, W, C)

    # conv2d29: 3x3 grouped conv as 9 shifted (H*W, C) x (C, Cout) matmuls against
    # the block-diagonal weight, accumulating into one f32 buffer (no concat).
    acc = jnp.zeros((H * W, cout), jnp.float32)
    for ky in range(KH):
        for kx in range(KW):
            patch = xp_ref[ky:ky + H, kx:kx + W, :].reshape(H * W, C)
            acc = acc + jnp.dot(patch, w_ref[ky, kx],
                                preferred_element_type=jnp.float32)
    y_ref[0] = acc

    # one-pass BN statistics: per-image channel sums (reduced across N in kernel 2)
    stats_ref[0, 0:1, :] = jnp.sum(acc, axis=0, keepdims=True)
    stats_ref[0, 1:2, :] = jnp.sum(acc * acc, axis=0, keepdims=True)


def _bn_relu_kernel(stats_ref, gamma_ref, beta_ref, y_ref, o_ref):
    # stats_ref: (N, 2, C)   per-image sums (full array, broadcast across the grid)
    # gamma_ref: (1, C), beta_ref: (1, C)
    # y_ref    : (1, H*W, C) conv output for one image
    # o_ref    : (1, C, H*W) final output, NCHW-flat (lane-dense store)
    n_imgs = stats_ref.shape[0]
    hw = y_ref.shape[1]
    inv_cnt = 1.0 / float(n_imgs * hw)

    tot = jnp.sum(stats_ref[...], axis=0)                      # (2, C)
    mean = tot[0:1, :] * inv_cnt                               # (1, C)
    var = tot[1:2, :] * inv_cnt - mean * mean                  # biased variance
    inv = jax.lax.rsqrt(var + 1e-5)
    scale = gamma_ref[...] * inv                               # (1, C)
    shift = beta_ref[...] - mean * scale                       # (1, C)

    yn = jnp.maximum(y_ref[0] * scale + shift, 0.0)            # (H*W, C), relu22
    o_ref[0] = jnp.transpose(yn)                               # (C, H*W)


@partial(jax.jit, static_argnames=("groups",))
def fused_relu_gconv_bn_relu(x_nchw, w_ockk, gamma, beta, *, groups):
    """x_nchw: (N, C, H, W); w_ockk: (C_out, C_in/groups, 3, 3); gamma/beta: (C,)."""
    N, C, H, W = x_nchw.shape
    c_out, cin_g, KH, KW = w_ockk.shape
    assert c_out % groups == 0 and C == groups * cin_g
    cout_g = c_out // groups
    HW = H * W

    # NCHW -> NCHW-flat (free reshape, no transpose/pad launches)
    x_flat = x_nchw.astype(jnp.float32).reshape(N, C, HW)

    # (C_out, Cin_g, KH, KW) -> block-diagonal (KH, KW, C, C_out)
    w5 = w_ockk.astype(jnp.float32).reshape(groups, cout_g, cin_g, KH, KW)
    w5 = jnp.transpose(w5, (0, 3, 4, 2, 1))                    # (G, KH, KW, cin_g, cout_g)
    wbd = jnp.zeros((KH, KW, C, c_out), jnp.float32)
    for g in range(groups):
        wbd = wbd.at[:, :, g * cin_g:(g + 1) * cin_g,
                     g * cout_g:(g + 1) * cout_g].set(w5[g])

    gamma2 = gamma.astype(jnp.float32).reshape(1, c_out)
    beta2 = beta.astype(jnp.float32).reshape(1, c_out)

    cparams = pltpu.CompilerParams(
        dimension_semantics=("parallel",),
        vmem_limit_bytes=32 * 1024 * 1024,
    )

    # Kernel 1: relu + grouped conv (block-diagonal) + per-image channel stats.
    y_flat, stats = pl.pallas_call(
        _conv_stats_kernel,
        grid=(N,),
        in_specs=[
            pl.BlockSpec((1, C, HW), lambda n: (n, 0, 0)),
            pl.BlockSpec((KH, KW, C, c_out), lambda n: (0, 0, 0, 0)),
        ],
        out_specs=[
            pl.BlockSpec((1, HW, c_out), lambda n: (n, 0, 0)),
            pl.BlockSpec((1, 2, c_out), lambda n: (n, 0, 0)),
        ],
        out_shape=[
            jax.ShapeDtypeStruct((N, HW, c_out), jnp.float32),
            jax.ShapeDtypeStruct((N, 2, c_out), jnp.float32),
        ],
        scratch_shapes=[pltpu.VMEM((H + 2, W + 2, C), jnp.float32)],
        compiler_params=cparams,
    )(x_flat, wbd)

    # Kernel 2: reduce stats, apply BN (training-mode batch stats) + ReLU,
    # store lane-dense NCHW-flat output.
    out_flat = pl.pallas_call(
        _bn_relu_kernel,
        grid=(N,),
        in_specs=[
            pl.BlockSpec((N, 2, c_out), lambda n: (0, 0, 0)),
            pl.BlockSpec((1, c_out), lambda n: (0, 0)),
            pl.BlockSpec((1, c_out), lambda n: (0, 0)),
            pl.BlockSpec((1, HW, c_out), lambda n: (n, 0, 0)),
        ],
        out_specs=pl.BlockSpec((1, c_out, HW), lambda n: (n, 0, 0)),
        out_shape=jax.ShapeDtypeStruct((N, c_out, HW), jnp.float32),
        compiler_params=cparams,
    )(stats, gamma2, beta2, y_flat)

    return out_flat.reshape(N, c_out, H, W)                    # free reshape


def _reference(x_nchw, w_ockk, gamma, beta, groups, eps=1e-5):
    """Pure-JAX reference of the PyTorch module forward (training-mode BN)."""
    x = jnp.maximum(x_nchw, 0.0)
    x_nhwc = jnp.transpose(x, (0, 2, 3, 1))
    k_hwio = jnp.transpose(w_ockk, (2, 3, 1, 0))
    y = jax.lax.conv_general_dilated(
        x_nhwc, k_hwio, window_strides=(1, 1), padding=((1, 1), (1, 1)),
        dimension_numbers=("NHWC", "HWIO", "NHWC"),
        feature_group_count=groups)
    mean = jnp.mean(y, axis=(0, 1, 2), keepdims=True)
    var = jnp.mean((y - mean) ** 2, axis=(0, 1, 2), keepdims=True)
    yn = (y - mean) * jax.lax.rsqrt(var + eps) * gamma + beta
    yn = jnp.maximum(yn, 0.0)
    return jnp.transpose(yn, (0, 3, 1, 2))


if __name__ == "__main__":
    # Small shapes consistent with the module structure:
    # Conv2d(C, C, 3x3, pad=1, groups=3, bias=False) with C divisible by groups.
    N, C, H, W = 2, 24, 16, 16
    GROUPS = 3
    CIN_G = C // GROUPS

    key = jax.random.PRNGKey(0)
    kx_, kw_, kg_, kb_ = jax.random.split(key, 4)
    x = jax.random.normal(kx_, (N, C, H, W), dtype=jnp.float32)
    w = 0.1 * jax.random.normal(kw_, (C, CIN_G, 3, 3), dtype=jnp.float32)
    gamma = 1.0 + 0.1 * jax.random.normal(kg_, (C,), dtype=jnp.float32)
    beta = 0.1 * jax.random.normal(kb_, (C,), dtype=jnp.float32)

    out = fused_relu_gconv_bn_relu(x, w, gamma, beta, groups=GROUPS)
    out = jax.block_until_ready(out)

    ref = jax.block_until_ready(_reference(x, w, gamma, beta, GROUPS))
    assert out.shape == (N, C, H, W)
    max_err = float(jnp.max(jnp.abs(out - ref)))
    assert jnp.allclose(out, ref, atol=1e-4, rtol=1e-4), max_err

    print("KERNEL_OK")
</pallas_src>

<mosaic_0001>
module attributes {stable_mosaic.version = 11 : i64} {
  func.func @_conv_stats_kernel(%arg0: i32, %arg1: memref<1x24x256xf32, #tpu.memory_space<vmem>>, %arg2: memref<3x3x24x24xf32, #tpu.memory_space<vmem>>, %arg3: memref<1x256x24xf32, #tpu.memory_space<vmem>>, %arg4: memref<1x2x24xf32, #tpu.memory_space<vmem>>, %arg5: memref<18x18x24xf32, #tpu.memory_space<vmem>>) attributes {dimension_semantics = [#tpu.dimension_semantics<parallel>], iteration_bounds = array<i64: 2>, scalar_prefetch = 0 : i64, scratch_operands = 1 : i64, tpu.core_type = #tpu.core_type<tc>, window_params = [{transform_indices = @transform_0, window_bounds = array<i64: 1, 24, 256>}, {pipeline_mode = #tpu.pipeline_mode<synchronous>, transform_indices = @transform_1, window_bounds = array<i64: 3, 3, 24, 24>}, {transform_indices = @transform_2, window_bounds = array<i64: 1, 256, 24>}, {transform_indices = @transform_3, window_bounds = array<i64: 1, 2, 24>}]} {
    %cst = arith.constant 0.000000e+00 : f32
    %0 = vector.broadcast %cst : f32 to vector<18x18x24xf32>
    %c0 = arith.constant 0 : index
    %c0_0 = arith.constant 0 : index
    %c0_1 = arith.constant 0 : index
    %1 = vector.load %arg5[%c0, %c0_0, %c0_1] : memref<18x18x24xf32, #tpu.memory_space<vmem>>, vector<18x18x24xf32>
    tpu.vector_store %arg5[%c0, %c0_0, %c0_1], %0 {strides = array<i32>} : memref<18x18x24xf32, #tpu.memory_space<vmem>>, vector<18x18x24xf32>,
    %c0_2 = arith.constant 0 : index
    %c0_3 = arith.constant 0 : index
    %c0_4 = arith.constant 0 : index
    %2 = vector.load %arg1[%c0_2, %c0_3, %c0_4] : memref<1x24x256xf32, #tpu.memory_space<vmem>>, vector<1x24x256xf32>
    %3 = vector.shape_cast %2 : vector<1x24x256xf32> to vector<24x256xf32>
    %cst_5 = arith.constant 0.000000e+00 : f32
    %4 = vector.broadcast %cst_5 : f32 to vector<24x256xf32>
    %5 = arith.maximumf %3, %4 : vector<24x256xf32>
    %6 = tpu.transpose %5, [1, 0] : vector<24x256xf32> -> vector<256x24xf32>
    %7 = vector.shape_cast %6 : vector<256x24xf32> to vector<16x16x24xf32>
    %c1 = arith.constant 1 : index
    %c1_6 = arith.constant 1 : index
    %c0_7 = arith.constant 0 : index
    %8 = vector.load %arg5[%c1, %c1_6, %c0_7] : memref<18x18x24xf32, #tpu.memory_space<vmem>>, vector<16x16x24xf32>
    tpu.vector_store %arg5[%c1, %c1_6, %c0_7], %7 {strides = array<i32>} : memref<18x18x24xf32, #tpu.memory_space<vmem>>, vector<16x16x24xf32>,
    %cst_8 = arith.constant 0.000000e+00 : f32
    %9 = vector.broadcast %cst_8 : f32 to vector<256x24xf32>
    %c0_9 = arith.constant 0 : index
    %c0_10 = arith.constant 0 : index
    %c0_11 = arith.constant 0 : index
    %10 = vector.load %arg5[%c0_9, %c0_10, %c0_11] : memref<18x18x24xf32, #tpu.memory_space<vmem>>, vector<16x16x24xf32>
    %11 = vector.shape_cast %10 : vector<16x16x24xf32> to vector<256x24xf32>
    %c0_12 = arith.constant 0 : index
    %c0_13 = arith.constant 0 : index
    %c0_14 = arith.constant 0 : index
    %c0_15 = arith.constant 0 : index
    %12 = vector.load %arg2[%c0_12, %c0_13, %c0_14, %c0_15] : memref<3x3x24x24xf32, #tpu.memory_space<vmem>>, vector<1x1x24x24xf32>
    %13 = vector.shape_cast %12 : vector<1x1x24x24xf32> to vector<24x24xf32>
    %cst_16 = arith.constant dense<0.000000e+00> : vector<256x24xf32>
    %14 = tpu.matmul %11, %13, %cst_16 {dimension_numbers = #tpu.dot_dimension_numbers<[1], [0], [0], [1], [0, 0, 1, 1], [], []>} : vector<256x24xf32>, vector<24x24xf32>, vector<256x24xf32> -> vector<256x24xf32>
    %15 = arith.addf %9, %14 : vector<256x24xf32>
    %c0_17 = arith.constant 0 : index
    %c1_18 = arith.constant 1 : index
    %c0_19 = arith.constant 0 : index
    %16 = vector.load %arg5[%c0_17, %c1_18, %c0_19] : memref<18x18x24xf32, #tpu.memory_space<vmem>>, vector<16x16x24xf32>
    %17 = vector.shape_cast %16 : vector<16x16x24xf32> to vector<256x24xf32>
    %c0_20 = arith.constant 0 : index
    %c1_21 = arith.constant 1 : index
    %c0_22 = arith.constant 0 : index
    %c0_23 = arith.constant 0 : index
    %18 = vector.load %arg2[%c0_20, %c1_21, %c0_22, %c0_23] : memref<3x3x24x24xf32, #tpu.memory_space<vmem>>, vector<1x1x24x24xf32>
    %19 = vector.shape_cast %18 : vector<1x1x24x24xf32> to vector<24x24xf32>
    %cst_24 = arith.constant dense<0.000000e+00> : vector<256x24xf32>
    %20 = tpu.matmul %17, %19, %cst_24 {dimension_numbers = #tpu.dot_dimension_numbers<[1], [0], [0], [1], [0, 0, 1, 1], [], []>} : vector<256x24xf32>, vector<24x24xf32>, vector<256x24xf32> -> vector<256x24xf32>
    %21 = arith.addf %15, %20 : vector<256x24xf32>
    %c0_25 = arith.constant 0 : index
    %c2 = arith.constant 2 : index
    %c0_26 = arith.constant 0 : index
    %22 = vector.load %arg5[%c0_25, %c2, %c0_26] : memref<18x18x24xf32, #tpu.memory_space<vmem>>, vector<16x16x24xf32>
    %23 = vector.shape_cast %22 : vector<16x16x24xf32> to vector<256x24xf32>
    %c0_27 = arith.constant 0 : index
    %c2_28 = arith.constant 2 : index
    %c0_29 = arith.constant 0 : index
    %c0_30 = arith.constant 0 : index
    %24 = vector.load %arg2[%c0_27, %c2_28, %c0_29, %c0_30] : memref<3x3x24x24xf32, #tpu.memory_space<vmem>>, vector<1x1x24x24xf32>
    %25 = vector.shape_cast %24 : vector<1x1x24x24xf32> to vector<24x24xf32>
    %cst_31 = arith.constant dense<0.000000e+00> : vector<256x24xf32>
    %26 = tpu.matmul %23, %25, %cst_31 {dimension_numbers = #tpu.dot_dimension_numbers<[1], [0], [0], [1], [0, 0, 1, 1], [], []>} : vector<256x24xf32>, vector<24x24xf32>, vector<256x24xf32> -> vector<256x24xf32>
    %27 = arith.addf %21, %26 : vector<256x24xf32>
    %c1_32 = arith.constant 1 : index
    %c0_33 = arith.constant 0 : index
    %c0_34 = arith.constant 0 : index
    %28 = vector.load %arg5[%c1_32, %c0_33, %c0_34] : memref<18x18x24xf32, #tpu.memory_space<vmem>>, vector<16x16x24xf32>
    %29 = vector.shape_cast %28 : vector<16x16x24xf32> to vector<256x24xf32>
    %c1_35 = arith.constant 1 : index
    %c0_36 = arith.constant 0 : index
    %c0_37 = arith.constant 0 : index
    %c0_38 = arith.constant 0 : index
    %30 = vector.load %arg2[%c1_35, %c0_36, %c0_37, %c0_38] : memref<3x3x24x24xf32, #tpu.memory_space<vmem>>, vector<1x1x24x24xf32>
    %31 = vector.shape_cast %30 : vector<1x1x24x24xf32> to vector<24x24xf32>
    %cst_39 = arith.constant dense<0.000000e+00> : vector<256x24xf32>
    %32 = tpu.matmul %29, %31, %cst_39 {dimension_numbers = #tpu.dot_dimension_numbers<[1], [0], [0], [1], [0, 0, 1, 1], [], []>} : vector<256x24xf32>, vector<24x24xf32>, vector<256x24xf32> -> vector<256x24xf32>
    %33 = arith.addf %27, %32 : vector<256x24xf32>
    %c1_40 = arith.constant 1 : index
    %c1_41 = arith.constant 1 : index
    %c0_42 = arith.constant 0 : index
    %34 = vector.load %arg5[%c1_40, %c1_41, %c0_42] : memref<18x18x24xf32, #tpu.memory_space<vmem>>, vector<16x16x24xf32>
    %35 = vector.shape_cast %34 : vector<16x16x24xf32> to vector<256x24xf32>
    %c1_43 = arith.constant 1 : index
    %c1_44 = arith.constant 1 : index
    %c0_45 = arith.constant 0 : index
    %c0_46 = arith.constant 0 : index
    %36 = vector.load %arg2[%c1_43, %c1_44, %c0_45, %c0_46] : memref<3x3x24x24xf32, #tpu.memory_space<vmem>>, vector<1x1x24x24xf32>
    %37 = vector.shape_cast %36 : vector<1x1x24x24xf32> to vector<24x24xf32>
    %cst_47 = arith.constant dense<0.000000e+00> : vector<256x24xf32>
    %38 = tpu.matmul %35, %37, %cst_47 {dimension_numbers = #tpu.dot_dimension_numbers<[1], [0], [0], [1], [0, 0, 1, 1], [], []>} : vector<256x24xf32>, vector<24x24xf32>, vector<256x24xf32> -> vector<256x24xf32>
    %39 = arith.addf %33, %38 : vector<256x24xf32>
    %c1_48 = arith.constant 1 : index
    %c2_49 = arith.constant 2 : index
    %c0_50 = arith.constant 0 : index
    %40 = vector.load %arg5[%c1_48, %c2_49, %c0_50] : memref<18x18x24xf32, #tpu.memory_space<vmem>>, vector<16x16x24xf32>
    %41 = vector.shape_cast %40 : vector<16x16x24xf32> to vector<256x24xf32>
    %c1_51 = arith.constant 1 : index
    %c2_52 = arith.constant 2 : index
    %c0_53 = arith.constant 0 : index
    %c0_54 = arith.constant 0 : index
    %42 = vector.load %arg2[%c1_51, %c2_52, %c0_53, %c0_54] : memref<3x3x24x24xf32, #tpu.memory_space<vmem>>, vector<1x1x24x24xf32>
    %43 = vector.shape_cast %42 : vector<1x1x24x24xf32> to vector<24x24xf32>
    %cst_55 = arith.constant dense<0.000000e+00> : vector<256x24xf32>
    %44 = tpu.matmul %41, %43, %cst_55 {dimension_numbers = #tpu.dot_dimension_numbers<[1], [0], [0], [1], [0, 0, 1, 1], [], []>} : vector<256x24xf32>, vector<24x24xf32>, vector<256x24xf32> -> vector<256x24xf32>
    %45 = arith.addf %39, %44 : vector<256x24xf32>
    %c2_56 = arith.constant 2 : index
    %c0_57 = arith.constant 0 : index
    %c0_58 = arith.constant 0 : index
    %46 = vector.load %arg5[%c2_56, %c0_57, %c0_58] : memref<18x18x24xf32, #tpu.memory_space<vmem>>, vector<16x16x24xf32>
    %47 = vector.shape_cast %46 : vector<16x16x24xf32> to vector<256x24xf32>
    %c2_59 = arith.constant 2 : index
    %c0_60 = arith.constant 0 : index
    %c0_61 = arith.constant 0 : index
    %c0_62 = arith.constant 0 : index
    %48 = vector.load %arg2[%c2_59, %c0_60, %c0_61, %c0_62] : memref<3x3x24x24xf32, #tpu.memory_space<vmem>>, vector<1x1x24x24xf32>
    %49 = vector.shape_cast %48 : vector<1x1x24x24xf32> to vector<24x24xf32>
    %cst_63 = arith.constant dense<0.000000e+00> : vector<256x24xf32>
    %50 = tpu.matmul %47, %49, %cst_63 {dimension_numbers = #tpu.dot_dimension_numbers<[1], [0], [0], [1], [0, 0, 1, 1], [], []>} : vector<256x24xf32>, vector<24x24xf32>, vector<256x24xf32> -> vector<256x24xf32>
    %51 = arith.addf %45, %50 : vector<256x24xf32>
    %c2_64 = arith.constant 2 : index
    %c1_65 = arith.constant 1 : index
    %c0_66 = arith.constant 0 : index
    %52 = vector.load %arg5[%c2_64, %c1_65, %c0_66] : memref<18x18x24xf32, #tpu.memory_space<vmem>>, vector<16x16x24xf32>
    %53 = vector.shape_cast %52 : vector<16x16x24xf32> to vector<256x24xf32>
    %c2_67 = arith.constant 2 : index
    %c1_68 = arith.constant 1 : index
    %c0_69 = arith.constant 0 : index
    %c0_70 = arith.constant 0 : index
    %54 = vector.load %arg2[%c2_67, %c1_68, %c0_69, %c0_70] : memref<3x3x24x24xf32, #tpu.memory_space<vmem>>, vector<1x1x24x24xf32>
    %55 = vector.shape_cast %54 : vector<1x1x24x24xf32> to vector<24x24xf32>
    %cst_71 = arith.constant dense<0.000000e+00> : vector<256x24xf32>
    %56 = tpu.matmul %53, %55, %cst_71 {dimension_numbers = #tpu.dot_dimension_numbers<[1], [0], [0], [1], [0, 0, 1, 1], [], []>} : vector<256x24xf32>, vector<24x24xf32>, vector<256x24xf32> -> vector<256x24xf32>
    %57 = arith.addf %51, %56 : vector<256x24xf32>
    %c2_72 = arith.constant 2 : index
    %c2_73 = arith.constant 2 : index
    %c0_74 = arith.constant 0 : index
    %58 = vector.load %arg5[%c2_72, %c2_73, %c0_74] : memref<18x18x24xf32, #tpu.memory_space<vmem>>, vector<16x16x24xf32>
    %59 = vector.shape_cast %58 : vector<16x16x24xf32> to vector<256x24xf32>
    %c2_75 = arith.constant 2 : index
    %c2_76 = arith.constant 2 : index
    %c0_77 = arith.constant 0 : index
    %c0_78 = arith.constant 0 : index
    %60 = vector.load %arg2[%c2_75, %c2_76, %c0_77, %c0_78] : memref<3x3x24x24xf32, #tpu.memory_space<vmem>>, vector<1x1x24x24xf32>
    %61 = vector.shape_cast %60 : vector<1x1x24x24xf32> to vector<24x24xf32>
    %cst_79 = arith.constant dense<0.000000e+00> : vector<256x24xf32>
    %62 = tpu.matmul %59, %61, %cst_79 {dimension_numbers = #tpu.dot_dimension_numbers<[1], [0], [0], [1], [0, 0, 1, 1], [], []>} : vector<256x24xf32>, vector<24x24xf32>, vector<256x24xf32> -> vector<256x24xf32>
    %63 = arith.addf %57, %62 : vector<256x24xf32>
    %c0_80 = arith.constant 0 : index
    %c0_81 = arith.constant 0 : index
    %c0_82 = arith.constant 0 : index
    %64 = vector.load %arg3[%c0_80, %c0_81, %c0_82] : memref<1x256x24xf32, #tpu.memory_space<vmem>>, vector<1x256x24xf32>
    %65 = vector.shape_cast %64 : vector<1x256x24xf32> to vector<256x24xf32>
    %66 = vector.shape_cast %63 : vector<256x24xf32> to vector<1x256x24xf32>
    tpu.vector_store %arg3[%c0_80, %c0_81, %c0_82], %66 {strides = array<i32>} : memref<1x256x24xf32, #tpu.memory_space<vmem>>, vector<1x256x24xf32>,
    %cst_83 = arith.constant dense<0.000000e+00> : vector<24xf32>
    %67 = vector.multi_reduction <add>, %63, %cst_83 [0] : vector<256x24xf32> to vector<24xf32>
    %68 = vector.shape_cast %67 : vector<24xf32> to vector<1x24xf32>
    %c0_84 = arith.constant 0 : index
    %c0_85 = arith.constant 0 : index
    %c0_86 = arith.constant 0 : index
    %69 = vector.load %arg4[%c0_84, %c0_85, %c0_86] : memref<1x2x24xf32, #tpu.memory_space<vmem>>, vector<1x1x24xf32>
    %70 = vector.shape_cast %69 : vector<1x1x24xf32> to vector<1x24xf32>
    %71 = vector.shape_cast %68 : vector<1x24xf32> to vector<1x1x24xf32>
    tpu.vector_store %arg4[%c0_84, %c0_85, %c0_86], %71 {strides = array<i32>} : memref<1x2x24xf32, #tpu.memory_space<vmem>>, vector<1x1x24xf32>,
    %72 = arith.mulf %63, %63 : vector<256x24xf32>
    %cst_87 = arith.constant dense<0.000000e+00> : vector<24xf32>
    %73 = vector.multi_reduction <add>, %72, %cst_87 [0] : vector<256x24xf32> to vector<24xf32>
    %74 = vector.shape_cast %73 : vector<24xf32> to vector<1x24xf32>
    %c0_88 = arith.constant 0 : index
    %c1_89 = arith.constant 1 : index
    %c0_90 = arith.constant 0 : index
    %75 = vector.load %arg4[%c0_88, %c1_89, %c0_90] : memref<1x2x24xf32, #tpu.memory_space<vmem>>, vector<1x1x24xf32>
    %76 = vector.shape_cast %75 : vector<1x1x24xf32> to vector<1x24xf32>
    %77 = vector.shape_cast %74 : vector<1x24xf32> to vector<1x1x24xf32>
    tpu.vector_store %arg4[%c0_88, %c1_89, %c0_90], %77 {strides = array<i32>} : memref<1x2x24xf32, #tpu.memory_space<vmem>>, vector<1x1x24xf32>,
    return
  }
  func.func @transform_0(%arg0: i32) -> (i32, i32, i32) {
    %c0_i32 = arith.constant 0 : i32
    %c0_i32_0 = arith.constant 0 : i32
    %c0_i32_1 = arith.constant 0 : i32
    return %arg0, %c0_i32, %c0_i32_0 : i32, i32, i32
  }
  func.func @transform_1(%arg0: i32) -> (i32, i32, i32, i32) {
    %c0_i32 = arith.constant 0 : i32
    %c0_i32_0 = arith.constant 0 : i32
    %c0_i32_1 = arith.constant 0 : i32
    %c0_i32_2 = arith.constant 0 : i32
    %c0_i32_3 = arith.constant 0 : i32
    return %c0_i32, %c0_i32_0, %c0_i32_1, %c0_i32_2 : i32, i32, i32, i32
  }
  func.func @transform_2(%arg0: i32) -> (i32, i32, i32) {
    %c0_i32 = arith.constant 0 : i32
    %c0_i32_0 = arith.constant 0 : i32
    %c0_i32_1 = arith.constant 0 : i32
    return %arg0, %c0_i32, %c0_i32_0 : i32, i32, i32
  }
  func.func @transform_3(%arg0: i32) -> (i32, i32, i32) {
    %c0_i32 = arith.constant 0 : i32
    %c0_i32_0 = arith.constant 0 : i32
    %c0_i32_1 = arith.constant 0 : i32
    return %arg0, %c0_i32, %c0_i32_0 : i32, i32, i32
  }
}

module attributes {stable_mosaic.version = 11 : i64} {
  func.func @_bn_relu_kernel(%arg0: i32, %arg1: memref<2x2x24xf32, #tpu.memory_space<vmem>>, %arg2: memref<1x24xf32, #tpu.memory_space<vmem>>, %arg3: memref<1x24xf32, #tpu.memory_space<vmem>>, %arg4: memref<1x256x24xf32, #tpu.memory_space<vmem>>, %arg5: memref<1x24x256xf32, #tpu.memory_space<vmem>>) attributes {dimension_semantics = [#tpu.dimension_semantics<parallel>], iteration_bounds = array<i64: 2>, scalar_prefetch = 0 : i64, scratch_operands = 0 : i64, tpu.core_type = #tpu.core_type<tc>, window_params = [{pipeline_mode = #tpu.pipeline_mode<synchronous>, transform_indices = @transform_0, window_bounds = array<i64: 2, 2, 24>}, {pipeline_mode = #tpu.pipeline_mode<synchronous>, transform_indices = @transform_1, window_bounds = array<i64: 1, 24>}, {pipeline_mode = #tpu.pipeline_mode<synchronous>, transform_indices = @transform_2, window_bounds = array<i64: 1, 24>}, {transform_indices = @transform_3, window_bounds = array<i64: 1, 256, 24>}, {transform_indices = @transform_4, window_bounds = array<i64: 1, 24, 256>}]} {
    %c0 = arith.constant 0 : index
    %c0_0 = arith.constant 0 : index
    %c0_1 = arith.constant 0 : index
    %0 = vector.load %arg1[%c0, %c0_0, %c0_1] : memref<2x2x24xf32, #tpu.memory_space<vmem>>, vector<2x2x24xf32>
    %cst = arith.constant dense<0.000000e+00> : vector<2x24xf32>
    %1 = vector.multi_reduction <add>, %0, %cst [0] : vector<2x2x24xf32> to vector<2x24xf32>
    %2 = vector.extract_strided_slice %1 {offsets = [0, 0], sizes = [1, 24], strides = [1, 1]} : vector<2x24xf32> to vector<1x24xf32>
    %cst_2 = arith.constant 0.001953125 : f32
    %3 = vector.broadcast %cst_2 : f32 to vector<1x24xf32>
    %4 = arith.mulf %2, %3 : vector<1x24xf32>
    %5 = vector.extract_strided_slice %1 {offsets = [1, 0], sizes = [1, 24], strides = [1, 1]} : vector<2x24xf32> to vector<1x24xf32>
    %cst_3 = arith.constant 0.001953125 : f32
    %6 = vector.broadcast %cst_3 : f32 to vector<1x24xf32>
    %7 = arith.mulf %5, %6 : vector<1x24xf32>
    %8 = arith.mulf %4, %4 : vector<1x24xf32>
    %9 = arith.subf %7, %8 : vector<1x24xf32>
    %cst_4 = arith.constant 9.99999974E-6 : f32
    %10 = vector.broadcast %cst_4 : f32 to vector<1x24xf32>
    %11 = arith.addf %9, %10 : vector<1x24xf32>
    %12 = math.rsqrt %11 : vector<1x24xf32>
    %c0_5 = arith.constant 0 : index
    %c0_6 = arith.constant 0 : index
    %13 = vector.load %arg2[%c0_5, %c0_6] : memref<1x24xf32, #tpu.memory_space<vmem>>, vector<1x24xf32>
    %14 = arith.mulf %13, %12 : vector<1x24xf32>
    %c0_7 = arith.constant 0 : index
    %c0_8 = arith.constant 0 : index
    %15 = vector.load %arg3[%c0_7, %c0_8] : memref<1x24xf32, #tpu.memory_space<vmem>>, vector<1x24xf32>
    %16 = arith.mulf %4, %14 : vector<1x24xf32>
    %17 = arith.subf %15, %16 : vector<1x24xf32>
    %c0_9 = arith.constant 0 : index
    %c0_10 = arith.constant 0 : index
    %c0_11 = arith.constant 0 : index
    %18 = vector.load %arg4[%c0_9, %c0_10, %c0_11] : memref<1x256x24xf32, #tpu.memory_space<vmem>>, vector<1x256x24xf32>
    %19 = vector.shape_cast %18 : vector<1x256x24xf32> to vector<256x24xf32>
    %20 = vector.broadcast %14 : vector<1x24xf32> to vector<256x24xf32>
    %21 = arith.mulf %19, %20 : vector<256x24xf32>
    %22 = vector.broadcast %17 : vector<1x24xf32> to vector<256x24xf32>
    %23 = arith.addf %21, %22 : vector<256x24xf32>
    %cst_12 = arith.constant 0.000000e+00 : f32
    %24 = vector.broadcast %cst_12 : f32 to vector<256x24xf32>
    %25 = arith.maximumf %23, %24 : vector<256x24xf32>
    %26 = tpu.transpose %25, [1, 0] : vector<256x24xf32> -> vector<24x256xf32>
    %c0_13 = arith.constant 0 : index
    %c0_14 = arith.constant 0 : index
    %c0_15 = arith.constant 0 : index
    %27 = vector.load %arg5[%c0_13, %c0_14, %c0_15] : memref<1x24x256xf32, #tpu.memory_space<vmem>>, vector<1x24x256xf32>
    %28 = vector.shape_cast %27 : vector<1x24x256xf32> to vector<24x256xf32>
    %29 = vector.shape_cast %26 : vector<24x256xf32> to vector<1x24x256xf32>
    tpu.vector_store %arg5[%c0_13, %c0_14, %c0_15], %29 {strides = array<i32>} : memref<1x24x256xf32, #tpu.memory_space<vmem>>, vector<1x24x256xf32>,
    return
  }
  func.func @transform_0(%arg0: i32) -> (i32, i32, i32) {
    %c0_i32 = arith.constant 0 : i32
    %c0_i32_0 = arith.constant 0 : i32
    %c0_i32_1 = arith.constant 0 : i32
    %c0_i32_2 = arith.constant 0 : i32
    return %c0_i32, %c0_i32_0, %c0_i32_1 : i32, i32, i32
  }
  func.func @transform_1(%arg0: i32) -> (i32, i32) {
    %c0_i32 = arith.constant 0 : i32
    %c0_i32_0 = arith.constant 0 : i32
    %c0_i32_1 = arith.constant 0 : i32
    return %c0_i32, %c0_i32_0 : i32, i32
  }
  func.func @transform_2(%arg0: i32) -> (i32, i32) {
    %c0_i32 = arith.constant 0 : i32
    %c0_i32_0 = arith.constant 0 : i32
    %c0_i32_1 = arith.constant 0 : i32
    return %c0_i32, %c0_i32_0 : i32, i32
  }
  func.func @transform_3(%arg0: i32) -> (i32, i32, i32) {
    %c0_i32 = arith.constant 0 : i32
    %c0_i32_0 = arith.constant 0 : i32
    %c0_i32_1 = arith.constant 0 : i32
    return %arg0, %c0_i32, %c0_i32_0 : i32, i32, i32
  }
  func.func @transform_4(%arg0: i32) -> (i32, i32, i32) {
    %c0_i32 = arith.constant 0 : i32
    %c0_i32_0 = arith.constant 0 : i32
    %c0_i32_1 = arith.constant 0 : i32
    return %arg0, %c0_i32, %c0_i32_0 : i32, i32, i32
  }
}

</mosaic_0001>

<bundles_post_ra>
// kernel: fused_relu_gconv_bn_relu.3
= control target key start
LH: loop header
LB: loop body
LE: loop exit
PB: predicated region body
PF: predicated region fallthrough
CT: control target
= control target key end

     0   :  { %s545_s15 = smov 0   ;;  %s680_s0 = inlined_call_operand.vmem [shape: f32[2,2,24], index: 0, kind: input, shape index: {}]   ;;  %s681_s1 = inlined_call_operand.vmem [shape: f32[1,24], index: 1, kind: input, shape index: {}]   ;;  %s682_s2 = inlined_call_operand.vmem [shape: f32[1,24], index: 2, kind: input, shape index: {}]   ;;  %s683_s3 = inlined_call_operand.vmem [shape: f32[2,256,24], index: 3, kind: input, shape index: {}]   ;;  %s684_s4 = inlined_call_operand.vmem [shape: f32[2,24,256], index: 4, kind: output, shape index: {}]  }
   0x1 LB: > { %s490_s16 = sadd.s32 4294967295, %s518_s15   ;;  %p494_p0 = scmp.ge.s32.totalorder %s518_s15, 1  ;;  %s518_s15 = sphi %s545_s15, %s14_s15  }
   0x2   : > { %p162_p1 = scmp.lt.s32.totalorder %s518_s15, 3 }
   0x4   : > { %p163_p2 = pnand %p494_p0, %p162_p1 }
   0x5   : > { %p188_p3 = scmp.lt.s32.totalorder (!%p163_p2), %s490_s16, 1 }
   0x6   : > { %166 = sbr.rel (%p163_p2) target bundleno = 246 (0xf6), region = 36 }
   0xb   : > { %v198_v0 = vld [vmem:[%s680_s0] sm:$0x3]  ;;  %v199_v1 = vld [vmem:[%s680_s0 + $0x2] sm:$0x3]  ;;  %vm200_vm0 = vcmask 189440   ;;  %s686_s16 = smov (!%p188_p3, %s490_s16), 1 }
   0xc   : > { %v201_v2 = vsel %vm200_vm0, %v198_v0, 0.0  ;;  %v202_v3 = vsel %vm200_vm0, %v199_v1, 0.0  ;;  %s500_s21 = sshll.u32 %s686_s16, 8  ;;  %v221_v17 = vld [vmem:[%s681_s1] sm:$0x1]  ;;  %s501_s29 = smul.u32 48, %s686_s16 }
   0xd   : > { %v203_v4 = vadd.f32 %v202_v3, %v201_v2  ;;  %s568_s26 = scalar_lea.vmem %s683_s3, %s500_s21  ;;  %v228_v20 = vld [vmem:[%s682_s2] sm:$0x1] }
   0xe   : > { %v247_v21 = vld [vmem:[%s568_s26 + $0x80] sm:$0xff]  ;;  %v248_v28 = vld [vmem:[%s568_s26 + $0x88] sm:$0xff]  ;;  %v249_v39 = vld [vmem:[%s568_s26 + $0x90] sm:$0xff]  ;;  %s197_s6 = scalar_lea.vmem %s684_s4, %s501_s29 }
   0xf   : > { %v204_v5 = vmul.f32 0.001953125, %v203_v4  ;;  %v231_v22 = vld [vmem:[%s568_s26] sm:$0xff]  ;;  %v232_v29 = vld [vmem:[%s568_s26 + $0x8] sm:$0xff]  ;;  %v233_v40 = vld [vmem:[%s568_s26 + $0x10] sm:$0xff] }
  0x10   : > { %v250_v47 = vld [vmem:[%s568_s26 + $0x98] sm:$0xff]  ;;  %v251_v55 = vld [vmem:[%s568_s26 + $0xa0] sm:$0xff]  ;;  %v252_v63 = vld [vmem:[%s568_s26 + $0xa8] sm:$0xff] }
  0x11   : > { %v205_v6 = vmul.f32 %v204_v5, %v204_v5  ;;  %v234_v48 = vld [vmem:[%s568_s26 + $0x18] sm:$0xff]  ;;  %v235_v56 = vld [vmem:[%s568_s26 + $0x20] sm:$0xff]  ;;  %v236_v0 = vld [vmem:[%s568_s26 + $0x28] sm:$0xff] }
  0x13   : > { %v207_v7 = vrot.slane %v205_v6, 7 }
  0x15   : > { %v209_v8 = vsub.f32 %v204_v5, %v207_v7  ;;  %v253_v7 = vld [vmem:[%s568_s26 + $0xb0] sm:$0xff] }
  0x17   : > { %v210_v9 = vadd.f32 1e-05, %v209_v8  ;;  %v237_v8 = vld [vmem:[%s568_s26 + $0x30] sm:$0xff] }
  0x19   : > { %510 = vrsqrt.f32 %v210_v9  ;;  %vm217_vm1 = vweird.f32 %v210_v9 }
  0x1f   : > { %v511_v10 = vpop.eup %510 }
  0x20   : > { %v212_v11 = vmul.f32 %v511_v10, %v210_v9  ;;  %vm218_vm2 = vweird.f32 %v511_v10 }
  0x21   : > { %vm219_vm3 = vmor %vm217_vm1, %vm218_vm2 }
  0x22   : > { %v213_v12 = vmul.f32 %v511_v10, %v212_v11 }
  0x24   : > { %v214_v13 = vmul.f32 0.5, %v213_v12 }
  0x26   : > { %v215_v14 = vsub.f32 1.5, %v214_v13 }
  0x28   : > { %v216_v15 = vmul.f32 %v511_v10, %v215_v14 }
  0x2a   : > { %v220_v16 = vsel %vm219_vm3, %v511_v10, %v216_v15  ;;  %v254_v15 = vld [vmem:[%s568_s26 + $0xb8] sm:$0xff] }
  0x2b   : > { %223 = vst [vmem:[#allocation1] sm:$0xff] %v220_v16  ;;  %v238_v16 = vld [vmem:[%s568_s26 + $0x38] sm:$0xff] }
  0x32   : > { %v225_v18 = vld [vmem:[#allocation1 + $0x1] ss:$9 sm:$0xff] }
  0x33   : > { %v227_v19 = vmul.f32 %v225_v18, %v221_v17 }
  0x35   : > { %v229_v23 = vmul.f32 %v227_v19, %v204_v5  ;;  %v575_v24 = vperm.slane %v227_v19, 0 }
  0x37   : > { %v230_v25 = vsub.f32 %v228_v20, %v229_v23  ;;  %v282_v26 = vmul.f32 %v575_v24, %v247_v21  ;;  %v266_v27 = vmul.f32 %v575_v24, %v231_v22  ;;  %v283_v33 = vmul.f32 %v575_v24, %v248_v28  ;;  %v255_v23 = vld [vmem:[%s568_s26 + $0xc0] sm:$0xff] }
  0x38   : > { %v267_v34 = vmul.f32 %v575_v24, %v232_v29  ;;  %v284_v43 = vmul.f32 %v575_v24, %v249_v39  ;;  %v268_v44 = vmul.f32 %v575_v24, %v233_v40  ;;  %v285_v51 = vmul.f32 %v575_v24, %v250_v47 }
  0x39   : > { %v581_v30 = vperm.slane %v230_v25, 0  ;;  %v269_v52 = vmul.f32 %v575_v24, %v234_v48  ;;  %v286_v59 = vmul.f32 %v575_v24, %v251_v55  ;;  %v270_v60 = vmul.f32 %v575_v24, %v235_v56  ;;  %v239_v25 = vld [vmem:[%s568_s26 + $0x40] sm:$0xff] }
  0x3a   : > { %v287_v3 = vmul.f32 %v575_v24, %v252_v63  ;;  %v271_v4 = vmul.f32 %v575_v24, %v236_v0  ;;  %v288_v11 = vmul.f32 %v575_v24, %v253_v7  ;;  %v272_v12 = vmul.f32 %v575_v24, %v237_v8 }
  0x3b   : > { %v317_v31 = vadd.f32 %v581_v30, %v282_v26  ;;  %v301_v32 = vadd.f32 %v581_v30, %v266_v27  ;;  %v318_v37 = vadd.f32 %v581_v30, %v283_v33  ;;  %v302_v38 = vadd.f32 %v581_v30, %v267_v34  ;;  %v256_v33 = vld [vmem:[%s568_s26 + $0xc8] sm:$0xff] }
  0x3c   : > { %v319_v45 = vadd.f32 %v581_v30, %v284_v43  ;;  %v303_v46 = vadd.f32 %v581_v30, %v268_v44  ;;  %v320_v53 = vadd.f32 %v581_v30, %v285_v51  ;;  %v304_v54 = vadd.f32 %v581_v30, %v269_v52  ;;  %v240_v34 = vld [vmem:[%s568_s26 + $0x48] sm:$0xff] }
  0x3d   : > { %v349_v35 = vmax.f32 %v317_v31, 0.0  ;;  %v333_v36 = vmax.f32 %v301_v32, 0.0  ;;  %v350_v41 = vmax.f32 %v318_v37, 0.0  ;;  %v334_v42 = vmax.f32 %v302_v38, 0.0 }
  0x3e   : > { %v351_v49 = vmax.f32 %v319_v45, 0.0  ;;  %v335_v50 = vmax.f32 %v303_v46, 0.0  ;;  %v352_v57 = vmax.f32 %v320_v53, 0.0  ;;  %v336_v58 = vmax.f32 %v304_v54, 0.0 }
  0x3f   : > { %397 = vxpose.xlu1.b32.start [1/16] (narrow) %v349_v35, 24  ;;  %365 = vxpose.xlu0.b32.start [1/16] (narrow) %v333_v36, 24  ;;  %v321_v61 = vadd.f32 %v581_v30, %v286_v59  ;;  %v305_v62 = vadd.f32 %v581_v30, %v270_v60  ;;  %v322_v5 = vadd.f32 %v581_v30, %v287_v3 }
  0x40   : > { %v306_v6 = vadd.f32 %v581_v30, %v271_v4  ;;  %v323_v13 = vadd.f32 %v581_v30, %v288_v11  ;;  %v307_v14 = vadd.f32 %v581_v30, %v272_v12  ;;  %v289_v19 = vmul.f32 %v575_v24, %v254_v15 }
  0x41   : > { %v353_v1 = vmax.f32 %v321_v61, 0.0  ;;  %v337_v2 = vmax.f32 %v305_v62, 0.0  ;;  %v354_v9 = vmax.f32 %v322_v5, 0.0  ;;  %v273_v20 = vmul.f32 %v575_v24, %v238_v16 }
  0x42   : > { %v338_v10 = vmax.f32 %v306_v6, 0.0  ;;  %v355_v17 = vmax.f32 %v323_v13, 0.0  ;;  %v339_v18 = vmax.f32 %v307_v14, 0.0  ;;  %v324_v21 = vadd.f32 %v581_v30, %v289_v19 }
  0x43   : > { %v308_v22 = vadd.f32 %v581_v30, %v273_v20  ;;  %v290_v28 = vmul.f32 %v575_v24, %v255_v23  ;;  %v274_v29 = vmul.f32 %v575_v24, %v239_v25  ;;  %v291_v37 = vmul.f32 %v575_v24, %v256_v33 }
  0x44   : > { %v356_v26 = vmax.f32 %v324_v21, 0.0  ;;  %v275_v38 = vmul.f32 %v575_v24, %v240_v34 }
  0x45   : > { %v340_v27 = vmax.f32 %v308_v22, 0.0  ;;  %v325_v31 = vadd.f32 %v581_v30, %v290_v28  ;;  %v309_v32 = vadd.f32 %v581_v30, %v274_v29  ;;  %v326_v39 = vadd.f32 %v581_v30, %v291_v37 }
  0x46   : > { %v310_v40 = vadd.f32 %v581_v30, %v275_v38 }
  0x47   : > { %398 = vxpose.xlu1.b32.cont [2/16] (narrow) %v350_v41, 24  ;;  %366 = vxpose.xlu0.b32.cont [2/16] (narrow) %v334_v42, 24  ;;  %v357_v35 = vmax.f32 %v325_v31, 0.0  ;;  %v341_v36 = vmax.f32 %v309_v32, 0.0  ;;  %v257_v41 = vld [vmem:[%s568_s26 + $0xd0] sm:$0xff]  ;;  %v358_v43 = vmax.f32 %v326_v39, 0.0 }
  0x48   : > { %v241_v42 = vld [vmem:[%s568_s26 + $0x50] sm:$0xff]  ;;  %v342_v44 = vmax.f32 %v310_v40, 0.0  ;;  %v292_v45 = vmul.f32 %v575_v24, %v257_v41 }
  0x49   : > { %v276_v46 = vmul.f32 %v575_v24, %v241_v42 }
  0x4a   : > { %v327_v47 = vadd.f32 %v581_v30, %v292_v45 }
  0x4b   : > { %v311_v48 = vadd.f32 %v581_v30, %v276_v46 }
  0x4c   : > { %v359_v51 = vmax.f32 %v327_v47, 0.0 }
  0x4d   : > { %v343_v52 = vmax.f32 %v311_v48, 0.0 }
  0x4f   : > { %399 = vxpose.xlu1.b32.cont [3/16] (narrow) %v351_v49, 24  ;;  %367 = vxpose.xlu0.b32.cont [3/16] (narrow) %v335_v50, 24  ;;  %v258_v49 = vld [vmem:[%s568_s26 + $0xd8] sm:$0xff] }
  0x50   : > { %v242_v50 = vld [vmem:[%s568_s26 + $0x58] sm:$0xff]  ;;  %v293_v53 = vmul.f32 %v575_v24, %v258_v49 }
  0x51   : > { %v277_v54 = vmul.f32 %v575_v24, %v242_v50 }
  0x52   : > { %v328_v55 = vadd.f32 %v581_v30, %v293_v53 }
  0x53   : > { %v312_v56 = vadd.f32 %v581_v30, %v277_v54 }
  0x54   : > { %v360_v59 = vmax.f32 %v328_v55, 0.0 }
  0x55   : > { %v344_v60 = vmax.f32 %v312_v56, 0.0 }
  0x57   : > { %400 = vxpose.xlu1.b32.cont [4/16] (narrow) %v352_v57, 24  ;;  %368 = vxpose.xlu0.b32.cont [4/16] (narrow) %v336_v58, 24  ;;  %v259_v57 = vld [vmem:[%s568_s26 + $0xe0] sm:$0xff] }
  0x58   : > { %v243_v58 = vld [vmem:[%s568_s26 + $0x60] sm:$0xff]  ;;  %v294_v61 = vmul.f32 %v575_v24, %v259_v57 }
  0x59   : > { %v278_v62 = vmul.f32 %v575_v24, %v243_v58 }
  0x5a   : > { %v329_v63 = vadd.f32 %v581_v30, %v294_v61 }
  0x5b   : > { %v313_v0 = vadd.f32 %v581_v30, %v278_v62 }
  0x5c   : > { %v361_v3 = vmax.f32 %v329_v63, 0.0 }
  0x5d   : > { %v345_v4 = vmax.f32 %v313_v0, 0.0 }
  0x5f   : > { %401 = vxpose.xlu1.b32.cont [5/16] (narrow) %v353_v1, 24  ;;  %369 = vxpose.xlu0.b32.cont [5/16] (narrow) %v337_v2, 24  ;;  %v260_v1 = vld [vmem:[%s568_s26 + $0xe8] sm:$0xff] }
  0x60   : > { %v244_v2 = vld [vmem:[%s568_s26 + $0x68] sm:$0xff]  ;;  %v295_v5 = vmul.f32 %v575_v24, %v260_v1 }
  0x61   : > { %v279_v6 = vmul.f32 %v575_v24, %v244_v2 }
  0x62   : > { %v330_v7 = vadd.f32 %v581_v30, %v295_v5 }
  0x63   : > { %v314_v8 = vadd.f32 %v581_v30, %v279_v6 }
  0x64   : > { %v362_v11 = vmax.f32 %v330_v7, 0.0 }
  0x65   : > { %v346_v12 = vmax.f32 %v314_v8, 0.0 }
  0x67   : > { %402 = vxpose.xlu1.b32.cont [6/16] (narrow) %v354_v9, 24  ;;  %370 = vxpose.xlu0.b32.cont [6/16] (narrow) %v338_v10, 24  ;;  %v261_v9 = vld [vmem:[%s568_s26 + $0xf0] sm:$0xff] }
  0x68   : > { %v245_v10 = vld [vmem:[%s568_s26 + $0x70] sm:$0xff]  ;;  %v296_v13 = vmul.f32 %v575_v24, %v261_v9 }
  0x69   : > { %v280_v14 = vmul.f32 %v575_v24, %v245_v10 }
  0x6a   : > { %v331_v15 = vadd.f32 %v581_v30, %v296_v13 }
  0x6b   : > { %v315_v16 = vadd.f32 %v581_v30, %v280_v14 }
  0x6c   : > { %v363_v19 = vmax.f32 %v331_v15, 0.0 }
  0x6d   : > { %v347_v20 = vmax.f32 %v315_v16, 0.0 }
  0x6f   : > { %403 = vxpose.xlu1.b32.cont [7/16] (narrow) %v355_v17, 24  ;;  %371 = vxpose.xlu0.b32.cont [7/16] (narrow) %v339_v18, 24  ;;  %v262_v17 = vld [vmem:[%s568_s26 + $0xf8] sm:$0xff] }
  0x70   : > { %v246_v18 = vld [vmem:[%s568_s26 + $0x78] sm:$0xff]  ;;  %v297_v21 = vmul.f32 %v575_v24, %v262_v17 }
  0x71   : > { %v281_v22 = vmul.f32 %v575_v24, %v246_v18 }
  0x72   : > { %v332_v23 = vadd.f32 %v581_v30, %v297_v21 }
  0x73   : > { %v316_v25 = vadd.f32 %v581_v30, %v281_v22 }
  0x77   : > { %404 = vxpose.xlu1.b32.cont [8/16] (narrow) %v356_v26, 24  ;;  %372 = vxpose.xlu0.b32.cont [8/16] (narrow) %v340_v27, 24  ;;  %v364_v26 = vmax.f32 %v332_v23, 0.0  ;;  %v348_v27 = vmax.f32 %v316_v25, 0.0 }
  0x7f   : > { %405 = vxpose.xlu1.b32.cont [9/16] (narrow) %v357_v35, 24  ;;  %373 = vxpose.xlu0.b32.cont [9/16] (narrow) %v341_v36, 24 }
  0x87   : > { %406 = vxpose.xlu1.b32.cont [10/16] (narrow) %v358_v43, 24  ;;  %374 = vxpose.xlu0.b32.cont [10/16] (narrow) %v342_v44, 24 }
  0x8f   : > { %407 = vxpose.xlu1.b32.cont [11/16] (narrow) %v359_v51, 24  ;;  %375 = vxpose.xlu0.b32.cont [11/16] (narrow) %v343_v52, 24 }
  0x97   : > { %408 = vxpose.xlu1.b32.cont [12/16] (narrow) %v360_v59, 24  ;;  %376 = vxpose.xlu0.b32.cont [12/16] (narrow) %v344_v60, 24 }
  0x9f   : > { %409 = vxpose.xlu1.b32.cont [13/16] (narrow) %v361_v3, 24  ;;  %377 = vxpose.xlu0.b32.cont [13/16] (narrow) %v345_v4, 24 }
  0xa7   : > { %410 = vxpose.xlu1.b32.cont [14/16] (narrow) %v362_v11, 24  ;;  %378 = vxpose.xlu0.b32.cont [14/16] (narrow) %v346_v12, 24 }
  0xaf   : > { %411 = vxpose.xlu1.b32.cont [15/16] (narrow) %v363_v19, 24  ;;  %379 = vxpose.xlu0.b32.cont [15/16] (narrow) %v347_v20, 24 }
  0xb7   : > { %412 = vxpose.xlu1.b32.end [16/16] (narrow) %v364_v26, 24  ;;  %380 = vxpose.xlu0.b32.end [16/16] (narrow) %v348_v27, 24 }
  0xe3   : > { %v413_v28 = vpop.trf.xlu1  ;;  %v381_v29 = vpop.trf.xlu0 }
  0xe4   : > { %430 = vst [vmem:[%s197_s6 + $0x8] sm:$0xff] %v413_v28 }
  0xe5   : > { %429 = vst [vmem:[%s197_s6] sm:$0xff] %v381_v29 }
  0xeb   : > { %v414_v24 = vpop.trf.xlu1  ;;  %v382_v31 = vpop.trf.xlu0 }
  0xec   : > { %432 = vst [vmem:[%s197_s6 + $0x18] sm:$0xff] %v414_v24 }
  0xed   : > { %431 = vst [vmem:[%s197_s6 + $0x10] sm:$0xff] %v382_v31 }
  0xf3   : > { %v415_v32 = vpop.trf.xlu1  ;;  %v383_v33 = vpop.trf.xlu0 }
  0xf4   : > { %434 = vst [vmem:[%s197_s6 + $0x28] sm:$0xff] %v415_v32 }
  0xf5   : > { %433 = vst [vmem:[%s197_s6 + $0x20] sm:$0xff] %v383_v33 }
  0xf6 PF: > { %s14_s15 = sadd.s32 1, %s518_s15  }
  0xf7   : > { %p11_p4 = scmp.ge.s32.totalorder %s14_s15, 4  }
  0xf9   :  { %13 = sbr.rel (!%p11_p4) target bundleno = 1 (0x1), region = 67 }

// kernel: fused_relu_gconv_bn_relu.2
= control target key start
LH: loop header
LB: loop body
LE: loop exit
PB: predicated region body
PF: predicated region fallthrough
CT: control target
= control target key end

     0   :  { %s3439_s12 = smov 0   ;;  %s4945_s0 = inlined_call_operand.vmem [shape: f32[2,24,256], index: 0, kind: input, shape index: {}]   ;;  %s4946_s1 = inlined_call_operand.vmem [shape: f32[3,3,24,24], index: 1, kind: input, shape index: {}]   ;;  %s4947_s2 = inlined_call_operand.vmem [shape: f32[2,256,24], index: 2, kind: output, shape index: {0}]   ;;  %s4948_s3 = inlined_call_operand.vmem [shape: f32[2,2,24], index: 3, kind: output, shape index: {1}]  }
   0x1 LB: > { %s3067_s13 = sadd.s32 4294967295, %s3416_s12   ;;  %p3071_p0 = scmp.ge.s32.totalorder %s3416_s12, 1  ;;  %s3416_s12 = sphi %s3439_s12, %s14_s12  }
   0x2   : > { %p140_p1 = scmp.lt.s32.totalorder %s3416_s12, 3 }
   0x4   : > { %p141_p2 = pnand %p3071_p0, %p140_p1 }
   0x6   : > { %144 = sbr.rel (%p141_p2) target bundleno = 1029 (0x405), region = 28 }
   0xb   : > { %p168_p3 = scmp.lt.s32.totalorder %s3067_s13, 1  ;;  %v3078_v0 = vld [vmem:[%s4946_s1 + $0x28] sm:$0xff]  ;;  %v3077_v1 = vld [vmem:[%s4946_s1 + $0x20] sm:$0xff]  ;;  %vm182_vm0 = vcmask 195584   ;;  %v3418_v2 = vmov 0.0   ;;  %v3076_v3 = vld [vmem:[%s4946_s1 + $0x18] sm:$0xff] }
   0xc   : > { %527 = vmatpush.msra.mxu0 %v3078_v0  ;;  %183 = vst.msk [vmem:[#allocation2] sm:$0xff] %vm182_vm0, %v3418_v2  ;;  %3391 = vmatpush.msra.mxu1 %v3078_v0  ;;  %vm185_vm1 = vcmask 189440   ;;  %v3215_v26 = vld [vmem:[%s4946_s1 + $0x70] sm:$0xff]  ;;  %v3214_v27 = vld [vmem:[%s4946_s1 + $0x68] sm:$0xff]  ;;  %v3213_v28 = vld [vmem:[%s4946_s1 + $0x60] sm:$0xff]  ;;  %vm2877_vm2 = vcmask 188416  }
   0xd   : > { %s5058_s13 = smov (!%p168_p3, %s3067_s13), 1  ;;  %184 = vst.msk [vmem:[#allocation2 + $0x8] sm:$0xff] %vm182_vm0, %v3418_v2  ;;  %3393 = vmatpush.msra.mxu3 %v3078_v0  ;;  %3392 = vmatpush.msra.mxu2 %v3078_v0  ;;  %v381_v57 = vld [vmem:[%s4946_s1 + $0x10] sm:$0xff]  ;;  %v3180_v58 = vld [vmem:[%s4946_s1 + $0x58] sm:$0xff]  ;;  %v380_v59 = vld [vmem:[%s4946_s1 + $0x8] sm:$0xff] }
   0xe   : > { %528 = vmatpush.msra.mxu0 %v3077_v1  ;;  %187 = vst.msk [vmem:[#allocation2 + $0x18] sm:$0xff] %vm182_vm0, %v3418_v2  ;;  %3394 = vmatpush.msra.mxu1 %v3077_v1  ;;  %s3400_s20 = smul.u32 48, %s5058_s13  ;;  %v3179_v60 = vld [vmem:[%s4946_s1 + $0x50] sm:$0xff]  ;;  %v379_v61 = vld [vmem:[%s4946_s1] sm:$0xff]  ;;  %v3178_v62 = vld [vmem:[%s4946_s1 + $0x48] sm:$0xff]  ;;  %s3390_s22 = sshll.u32 %s5058_s13, 8 }
   0xf   : > { %188 = vst.msk [vmem:[#allocation2 + $0x20] sm:$0xff] %vm182_vm0, %v3418_v2  ;;  %3396 = vmatpush.msra.mxu3 %v3077_v1  ;;  %3395 = vmatpush.msra.mxu2 %v3077_v1  ;;  %s4604_s25 = scalar_lea.vmem %s4947_s2, %s3390_s22  ;;  %s3075_s26 = sshll.u32 %s5058_s13, 1 }
  0x10   : > { %529 = vmatpush.msra.mxu0 %v3076_v3  ;;  %190 = vst.msk [vmem:[#allocation2 + $0x30] sm:$0xff] %vm182_vm0, %v3418_v2  ;;  %3397 = vmatpush.msra.mxu1 %v3076_v3  ;;  %s172_s23 = scalar_lea.vmem %s4945_s0, %s3400_s20  ;;  %s181_s29 = scalar_lea.vmem %s4948_s3, %s3075_s26 }
  0x11   : > { %191 = vst.msk [vmem:[#allocation2 + $0x38] sm:$0xff] %vm182_vm0, %v3418_v2  ;;  %3399 = vmatpush.msra.mxu3 %v3076_v3  ;;  %3398 = vmatpush.msra.mxu2 %v3076_v3  ;;  %v239_v4 = vld [vmem:[%s172_s23 + $0x8] sm:$0xff]  ;;  %v238_v5 = vld [vmem:[%s172_s23] sm:$0xff]  ;;  %v241_v9 = vld [vmem:[%s172_s23 + $0x18] sm:$0xff] }
  0x12   : > { %193 = vst.msk [vmem:[#allocation2 + $0x48] sm:$0xff] %vm182_vm0, %v3418_v2  ;;  %v245_v6 = vmax.f32 %v239_v4, 0.0  ;;  %v244_v7 = vmax.f32 %v238_v5, 0.0  ;;  %v240_v10 = vld [vmem:[%s172_s23 + $0x10] sm:$0xff]  ;;  %v247_v11 = vmax.f32 %v241_v9, 0.0  ;;  %v243_v13 = vld [vmem:[%s172_s23 + $0x28] sm:$0xff]  ;;  %1535 = vmatpush.msrb.mxu0 %v3215_v26  ;;  %736 = vmatpush.msrb.mxu1 %v381_v57 }
  0x13   : > { %194 = vst.msk [vmem:[#allocation2 + $0x50] sm:$0xff] %vm182_vm0, %v3418_v2  ;;  %v246_v12 = vmax.f32 %v240_v10, 0.0  ;;  %v242_v14 = vld [vmem:[%s172_s23 + $0x20] sm:$0xff]  ;;  %v249_v15 = vmax.f32 %v243_v13, 0.0  ;;  %1258 = vmatpush.msrb.mxu3 %v3180_v58 }
  0x14   : > { %v382_v8 = vld [vmem:[#allocation2 + $0x1] sm:$0xff]  ;;  %282 = vxpose.xlu1.b32.start [1/3] (short) %v245_v6, 128  ;;  %250 = vxpose.xlu0.b32.start [1/3] (short) %v244_v7, 128  ;;  %196 = vst.msk [vmem:[#allocation2 + $0x60] sm:$0xff] %vm182_vm0, %v3418_v2  ;;  %v248_v16 = vmax.f32 %v242_v14, 0.0 }
  0x15   : > { %3079 = vmatmul.msk.f32.vlgmr.msra.gmra.mxu0 %vm182_vm0, %v382_v8  ;;  %197 = vst.msk [vmem:[#allocation2 + $0x68] sm:$0xff] %vm182_vm0, %v3418_v2  ;;  %737 = vmatpush.msrb.mxu1 %v380_v59  ;;  %v3145_v3 = vld [vmem:[%s4946_s1 + $0x40] sm:$0xff] }
  0x16   : > { %199 = vst.msk [vmem:[#allocation2 + $0x78] sm:$0xff] %vm182_vm0, %v3418_v2  ;;  %1536 = vmatpush.msrb.mxu0 %v3214_v27  ;;  %1259 = vmatpush.msrb.mxu3 %v3179_v60 }
  0x17   : > { %200 = vst.msk [vmem:[#allocation2 + $0x80] sm:$0xff] %vm182_vm0, %v3418_v2  ;;  %738 = vmatpush.msrb.mxu1 %v379_v61  ;;  %981 = vmatpush.msrb.mxu2 %v3145_v3 }
  0x18   : > { %202 = vst.msk [vmem:[#allocation2 + $0x90] sm:$0xff] %vm182_vm0, %v3418_v2  ;;  %1537 = vmatpush.msrb.mxu0 %v3213_v28  ;;  %1260 = vmatpush.msrb.mxu3 %v3178_v62 }
  0x19   : > { %203 = vst.msk [vmem:[#allocation2 + $0x98] sm:$0xff] %vm182_vm0, %v3418_v2 }
  0x1a   : > { %205 = vst.msk [vmem:[#allocation2 + $0xa8] sm:$0xff] %vm182_vm0, %v3418_v2 }
  0x1b   : > { %206 = vst.msk [vmem:[#allocation2 + $0xb0] sm:$0xff] %vm182_vm0, %v3418_v2 }
  0x1c   : > { %283 = vxpose.xlu1.b32.cont [2/3] (short) %v247_v11, 128  ;;  %251 = vxpose.xlu0.b32.cont [2/3] (short) %v246_v12, 128  ;;  %208 = vst.msk [vmem:[#allocation2 + $0xc0] sm:$0xff] %vm182_vm0, %v3418_v2  ;;  %v3144_v12 = vld [vmem:[%s4946_s1 + $0x38] sm:$0xff] }
  0x1d   : > { %209 = vst.msk [vmem:[#allocation2 + $0xc8] sm:$0xff] %vm182_vm0, %v3418_v2  ;;  %982 = vmatpush.msrb.mxu2 %v3144_v12 }
  0x1e   : > { %211 = vst.msk [vmem:[#allocation2 + $0xd8] sm:$0xff] %vm182_vm0, %v3418_v2 }
  0x1f   : > { %212 = vst.msk [vmem:[#allocation2 + $0xe0] sm:$0xff] %vm182_vm0, %v3418_v2 }
  0x20   : > { %214 = vst.msk [vmem:[#allocation2 + $0xf0] sm:$0xff] %vm182_vm0, %v3418_v2 }
  0x21   : > { %215 = vst.msk [vmem:[#allocation2 + $0xf8] sm:$0xff] %vm182_vm0, %v3418_v2 }
  0x22   : > { %217 = vst.msk [vmem:[#allocation2 + $0x108] sm:$0xff] %vm182_vm0, %v3418_v2 }
  0x23   : > { %218 = vst.msk [vmem:[#allocation2 + $0x110] sm:$0xff] %vm182_vm0, %v3418_v2 }
  0x24   : > { %284 = vxpose.xlu1.b32.end [3/3] (short) %v249_v15, 128  ;;  %252 = vxpose.xlu0.b32.end [3/3] (short) %v248_v16, 128  ;;  %220 = vst.msk [vmem:[#allocation2 + $0x120] sm:$0xff] %vm182_vm0, %v3418_v2 }
  0x25   : > { %221 = vst.msk [vmem:[#allocation2 + $0x128] sm:$0xff] %vm182_vm0, %v3418_v2 }
  0x26   : > { %223 = vst.msk [vmem:[#allocation2 + $0x138] sm:$0xff] %vm182_vm0, %v3418_v2 }
  0x27   : > { %224 = vst.msk [vmem:[#allocation2 + $0x140] sm:$0xff] %vm182_vm0, %v3418_v2 }
  0x28   : > { %226 = vst.msk [vmem:[#allocation2 + $0x150] sm:$0xff] %vm182_vm0, %v3418_v2 }
  0x29   : > { %227 = vst.msk [vmem:[#allocation2 + $0x158] sm:$0xff] %vm182_vm0, %v3418_v2 }
  0x2a   : > { %229 = vst.msk [vmem:[#allocation2 + $0x168] sm:$0xff] %vm182_vm0, %v3418_v2 }
  0x2b   : > { %230 = vst.msk [vmem:[#allocation2 + $0x170] sm:$0xff] %vm182_vm0, %v3418_v2 }
  0x2c   : > { %232 = vst.msk [vmem:[#allocation2 + $0x180] sm:$0xff] %vm182_vm0, %v3418_v2 }
  0x2d   : > { %233 = vst.msk [vmem:[#allocation2 + $0x188] sm:$0xff] %vm182_vm0, %v3418_v2 }
  0x2e   : > { %235 = vst.msk [vmem:[#allocation2 + $0x198] sm:$0xff] %vm182_vm0, %v3418_v2 }
  0x2f   : > { %236 = vst.msk [vmem:[#allocation2 + $0x1a0] sm:$0xff] %vm182_vm0, %v3418_v2 }
  0x30   : > { %186 = vst.msk [vmem:[#allocation2 + $0x10] sm:$0x3] %vm185_vm1, %v3418_v2 }
  0x31   : > { %189 = vst.msk [vmem:[#allocation2 + $0x28] sm:$0x3] %vm185_vm1, %v3418_v2 }
  0x32   : > { %192 = vst.msk [vmem:[#allocation2 + $0x40] sm:$0x3] %vm185_vm1, %v3418_v2 }
  0x33   : > { %195 = vst.msk [vmem:[#allocation2 + $0x58] sm:$0x3] %vm185_vm1, %v3418_v2 }
  0x34   : > { %198 = vst.msk [vmem:[#allocation2 + $0x70] sm:$0x3] %vm185_vm1, %v3418_v2 }
  0x35   : > { %201 = vst.msk [vmem:[#allocation2 + $0x88] sm:$0x3] %vm185_vm1, %v3418_v2 }
  0x36   : > { %204 = vst.msk [vmem:[#allocation2 + $0xa0] sm:$0x3] %vm185_vm1, %v3418_v2 }
  0x37   : > { %v383_v17 = vld [vmem:[#allocation2 + $0x9] sm:$0xff]  ;;  %207 = vst.msk [vmem:[#allocation2 + $0xb8] sm:$0x3] %vm185_vm1, %v3418_v2 }
  0x38   : > { %3080 = vmatmul.msk.f32.gmra.mxu0 %vm182_vm0, %v383_v17  ;;  %210 = vst.msk [vmem:[#allocation2 + $0xd0] sm:$0x3] %vm185_vm1, %v3418_v2  ;;  %v347_v17 = vld [vmem:[#allocation2] sm:$0xff]  ;;  %v837_v57 = vld [vmem:[#allocation2 + $0xa] sm:$0xff] }
  0x39   : > { %213 = vst.msk [vmem:[#allocation2 + $0xe8] sm:$0x3] %vm185_vm1, %v3418_v2 }
  0x3a   : > { %216 = vst.msk [vmem:[#allocation2 + $0x100] sm:$0x3] %vm185_vm1, %v3418_v2 }
  0x3b   : > { %219 = vst.msk [vmem:[#allocation2 + $0x118] sm:$0x3] %vm185_vm1, %v3418_v2 }
  0x3c   : > { %222 = vst.msk [vmem:[#allocation2 + $0x130] sm:$0x3] %vm185_vm1, %v3418_v2 }
  0x3d   : > { %225 = vst.msk [vmem:[#allocation2 + $0x148] sm:$0x3] %vm185_vm1, %v3418_v2 }
  0x3e   : > { %228 = vst.msk [vmem:[#allocation2 + $0x160] sm:$0x3] %vm185_vm1, %v3418_v2 }
  0x3f   : > { %231 = vst.msk [vmem:[#allocation2 + $0x178] sm:$0x3] %vm185_vm1, %v3418_v2 }
  0x40   : > { %234 = vst.msk [vmem:[#allocation2 + $0x190] sm:$0x3] %vm185_vm1, %v3418_v2 }
  0x41   : > { %237 = vst.msk [vmem:[#allocation2 + $0x1a8] sm:$0x3] %vm185_vm1, %v3418_v2 }
  0x92   : > { %v3710_v16 = vpop.f32.mrf.mxu0 }
  0xb8   : > { %v298_v18 = vpop.trf.xlu1  ;;  %v266_v19 = vpop.trf.xlu0 }
  0xb9   : > { %331 = vst.msk [vmem:[#allocation2 + $0xd9] sm:$0xff] %vm182_vm0, %v298_v18 }
  0xba   : > { %315 = vst.msk [vmem:[#allocation2 + $0x19] sm:$0xff] %vm182_vm0, %v266_v19 }
  0xc0   : > { %v299_v20 = vpop.trf.xlu1  ;;  %v267_v21 = vpop.trf.xlu0  ;;  %v400_v27 = vld [vmem:[#allocation2 + $0xd9] sm:$0xff] }
  0xc1   : > { %332 = vst.msk [vmem:[#allocation2 + $0xe1] sm:$0xff] %vm182_vm0, %v299_v20  ;;  %v384_v22 = vld [vmem:[#allocation2 + $0x19] sm:$0xff] }
  0xc2   : > { %316 = vst.msk [vmem:[#allocation2 + $0x21] sm:$0xff] %vm182_vm0, %v267_v21  ;;  %3081 = vmatmul.msk.f32.gmra.mxu0 %vm182_vm0, %v384_v22  ;;  %v1113_v20 = vld [vmem:[#allocation2 + $0x18] sm:$0xff]  ;;  %v3718_v21 = vpop.f32.mrf.mxu0 }
  0xc8   : > { %v300_v23 = vpop.trf.xlu1  ;;  %v268_v24 = vpop.trf.xlu0 }
  0xc9   : > { %333 = vst.msk [vmem:[#allocation2 + $0xf1] sm:$0xff] %vm182_vm0, %v300_v23  ;;  %v385_v25 = vld [vmem:[#allocation2 + $0x21] sm:$0xff] }
  0xca   : > { %317 = vst.msk [vmem:[#allocation2 + $0x31] sm:$0xff] %vm182_vm0, %v268_v24  ;;  %3082 = vmatmul.msk.f32.gmra.mxu0 %vm182_vm0, %v385_v25  ;;  %v1114_v24 = vld [vmem:[#allocation2 + $0x20] sm:$0xff] }
  0xd0   : > { %v301_v29 = vpop.trf.xlu1  ;;  %v269_v30 = vpop.trf.xlu0 }
  0xd1   : > { %334 = vst.msk [vmem:[#allocation2 + $0xf9] sm:$0xff] %vm182_vm0, %v301_v29  ;;  %v386_v31 = vld [vmem:[#allocation2 + $0x31] sm:$0xff] }
  0xd2   : > { %318 = vst.msk [vmem:[#allocation2 + $0x39] sm:$0xff] %vm182_vm0, %v269_v30  ;;  %3083 = vmatmul.msk.f32.gmra.mxu0 %vm182_vm0, %v386_v31  ;;  %v1115_v28 = vld [vmem:[#allocation2 + $0x30] sm:$0xff]  ;;  %v401_v30 = vld [vmem:[#allocation2 + $0xe1] sm:$0xff] }
  0xd8   : > { %v302_v32 = vpop.trf.xlu1  ;;  %v270_v33 = vpop.trf.xlu0 }
  0xd9   : > { %335 = vst.msk [vmem:[#allocation2 + $0x109] sm:$0xff] %vm182_vm0, %v302_v32  ;;  %v387_v34 = vld [vmem:[#allocation2 + $0x39] sm:$0xff] }
  0xda   : > { %319 = vst.msk [vmem:[#allocation2 + $0x49] sm:$0xff] %vm182_vm0, %v270_v33  ;;  %3084 = vmatmul.msk.f32.gmra.mxu0 %vm182_vm0, %v387_v34  ;;  %v402_v33 = vld [vmem:[#allocation2 + $0xf1] sm:$0xff] }
  0xe0   : > { %v303_v35 = vpop.trf.xlu1  ;;  %v271_v36 = vpop.trf.xlu0 }
  0xe1   : > { %336 = vst.msk [vmem:[#allocation2 + $0x111] sm:$0xff] %vm182_vm0, %v303_v35  ;;  %v3596_v37 = vld [vmem:[#allocation2 + $0x49] sm:$0xff]  ;;  %v3285_v35 = vld [vmem:[%s4946_s1 + $0xa0] sm:$0xff] }
  0xe2   : > { %320 = vst.msk [vmem:[#allocation2 + $0x51] sm:$0xff] %vm182_vm0, %v271_v36  ;;  %3085 = vmatmul.msk.f32.gmra.mxu0 %vm182_vm0, %v3596_v37  ;;  %v3320_v36 = vld [vmem:[%s4946_s1 + $0xb8] sm:$0xff] }
  0xe8   : > { %v304_v38 = vpop.trf.xlu1  ;;  %v272_v39 = vpop.trf.xlu0 }
  0xe9   : > { %337 = vst.msk [vmem:[#allocation2 + $0x121] sm:$0xff] %vm182_vm0, %v304_v38  ;;  %v3602_v40 = vld [vmem:[#allocation2 + $0x51] sm:$0xff] }
  0xea   : > { %321 = vst.msk [vmem:[#allocation2 + $0x61] sm:$0xff] %vm182_vm0, %v272_v39  ;;  %3086 = vmatmul.msk.f32.gmra.mxu0 %vm182_vm0, %v3602_v40  ;;  %v403_v39 = vld [vmem:[#allocation2 + $0xf9] sm:$0xff] }
  0xf0   : > { %v305_v41 = vpop.trf.xlu1  ;;  %v273_v42 = vpop.trf.xlu0  ;;  %v3607_v43 = vld [vmem:[#allocation2 + $0x121] sm:$0xff] }
  0xf1   : > { %338 = vst.msk [vmem:[#allocation2 + $0x129] sm:$0xff] %vm182_vm0, %v305_v41  ;;  %v3610_v44 = vld [vmem:[#allocation2 + $0x61] sm:$0xff]  ;;  %3103 = vmatmul.msk.f32.vlgmr.msra.gmra.mxu3 %vm182_vm0, %v3607_v43  ;;  %v3355_v41 = vld [vmem:[%s4946_s1 + $0xd0] sm:$0xff] }
  0xf2   : > { %322 = vst.msk [vmem:[#allocation2 + $0x69] sm:$0xff] %vm182_vm0, %v273_v42  ;;  %3087 = vmatmul.msk.f32.vlgmr.msra.gmra.mxu1 %vm182_vm0, %v3610_v44  ;;  %3216 = vmatmul.msk.f32.vlgmr.msrb.gmra.mxu0 %vm182_vm0, %v384_v22  ;;  %v348_v22 = vld [vmem:[#allocation2 + $0x8] sm:$0xff] }
  0xf3   : > { %2367 = vmatpush.msra.mxu3 %v3320_v36  ;;  %2644 = vmatpush.msra.mxu0 %v3355_v41  ;;  %v3249_v36 = vld [vmem:[%s4946_s1 + $0x80] sm:$0xff] }
  0xf8   : > { %v306_v45 = vpop.trf.xlu1  ;;  %v274_v46 = vpop.trf.xlu0  ;;  %v3618_v47 = vld [vmem:[#allocation2 + $0x129] sm:$0xff] }
  0xf9   : > { %339 = vst.msk [vmem:[#allocation2 + $0x139] sm:$0xff] %vm182_vm0, %v306_v45  ;;  %v3621_v48 = vld [vmem:[#allocation2 + $0x69] sm:$0xff]  ;;  %3104 = vmatmul.msk.f32.gmra.mxu3 %vm182_vm0, %v3618_v47  ;;  %v1119_v45 = vld [vmem:[#allocation2 + $0x60] sm:$0xff] }
  0xfa   : > { %323 = vst.msk [vmem:[#allocation2 + $0x79] sm:$0xff] %vm182_vm0, %v274_v46  ;;  %3088 = vmatmul.msk.f32.gmra.mxu1 %vm182_vm0, %v3621_v48  ;;  %3217 = vmatmul.msk.f32.gmra.mxu0 %vm182_vm0, %v385_v25  ;;  %v3143_v25 = vld [vmem:[%s4946_s1 + $0x30] sm:$0xff]  ;;  %v3887_v41 = vld [vmem:[#allocation2 + $0x62] sm:$0xff] }
  0xfb   : > { %983 = vmatpush.msrb.mxu2 %v3143_v25  ;;  %v3850_v25 = vld [vmem:[#allocation2 + $0x4a] sm:$0xff] }
 0x100   : > { %v307_v49 = vpop.trf.xlu1  ;;  %v275_v50 = vpop.trf.xlu0  ;;  %v3629_v51 = vld [vmem:[#allocation2 + $0x139] sm:$0xff] }
 0x101   : > { %340 = vst.msk [vmem:[#allocation2 + $0x141] sm:$0xff] %vm182_vm0, %v307_v49  ;;  %v3632_v52 = vld [vmem:[#allocation2 + $0x79] sm:$0xff]  ;;  %3105 = vmatmul.msk.f32.gmra.mxu3 %vm182_vm0, %v3629_v51  ;;  %v1120_v49 = vld [vmem:[#allocation2 + $0x68] sm:$0xff] }
 0x102   : > { %324 = vst.msk [vmem:[#allocation2 + $0x81] sm:$0xff] %vm182_vm0, %v275_v50  ;;  %3089 = vmatmul.msk.f32.gmra.mxu1 %vm182_vm0, %v3632_v52  ;;  %3218 = vmatmul.msk.f32.gmra.mxu0 %vm182_vm0, %v386_v31  ;;  %v1116_v31 = vld [vmem:[#allocation2 + $0x38] sm:$0xff]  ;;  %v836_v50 = vld [vmem:[#allocation2 + $0x2] sm:$0xff] }
 0x108   : > { %v308_v53 = vpop.trf.xlu1  ;;  %v276_v54 = vpop.trf.xlu0  ;;  %v3640_v55 = vld [vmem:[#allocation2 + $0x141] sm:$0xff] }
 0x109   : > { %341 = vst.msk [vmem:[#allocation2 + $0x151] sm:$0xff] %vm182_vm0, %v308_v53  ;;  %v3643_v56 = vld [vmem:[#allocation2 + $0x81] sm:$0xff]  ;;  %3106 = vmatmul.msk.f32.gmra.mxu3 %vm182_vm0, %v3640_v55 }
 0x10a   : > { %325 = vst.msk [vmem:[#allocation2 + $0x91] sm:$0xff] %vm182_vm0, %v276_v54  ;;  %3090 = vmatmul.msk.f32.gmra.mxu1 %vm182_vm0, %v3643_v56  ;;  %3219 = vmatmul.msk.f32.gmra.mxu0 %vm182_vm0, %v387_v34  ;;  %v1117_v34 = vld [vmem:[#allocation2 + $0x48] sm:$0xff]  ;;  %v1121_v54 = vld [vmem:[#allocation2 + $0x78] sm:$0xff]  ;;  %v1122_v60 = vld [vmem:[#allocation2 + $0x80] sm:$0xff] }
 0x110   : > { %v309_v63 = vpop.trf.xlu1  ;;  %v277_v0 = vpop.trf.xlu0  ;;  %v3669_v1 = vld [vmem:[#allocation2 + $0x151] sm:$0xff] }
 0x111   : > { %342 = vst.msk [vmem:[#allocation2 + $0x159] sm:$0xff] %vm182_vm0, %v309_v63  ;;  %v394_v2 = vld [vmem:[#allocation2 + $0x91] sm:$0xff]  ;;  %3107 = vmatmul.msk.f32.gmra.mxu3 %vm182_vm0, %v3669_v1 }
 0x112   : > { %326 = vst.msk [vmem:[#allocation2 + $0x99] sm:$0xff] %vm182_vm0, %v277_v0  ;;  %3091 = vmatmul.msk.f32.gmra.mxu1 %vm182_vm0, %v394_v2  ;;  %3220 = vmatmul.msk.f32.gmra.mxu0 %vm182_vm0, %v3596_v37  ;;  %v3250_v37 = vld [vmem:[%s4946_s1 + $0x88] sm:$0xff]  ;;  %v3800_v0 = vld [vmem:[#allocation2 + $0x1a] sm:$0xff] }
 0x113   : > { %1812 = vmatpush.msra.mxu1 %v3250_v37 }
 0x115   : > { %1813 = vmatpush.msra.mxu1 %v3249_v36  ;;  %v3938_v36 = vld [vmem:[#allocation2 + $0x82] sm:$0xff] }
 0x118   : > { %v310_v4 = vpop.trf.xlu1  ;;  %v278_v5 = vpop.trf.xlu0  ;;  %v3681_v6 = vld [vmem:[#allocation2 + $0x159] sm:$0xff] }
 0x119   : > { %343 = vst.msk [vmem:[#allocation2 + $0x169] sm:$0xff] %vm182_vm0, %v310_v4  ;;  %v395_v7 = vld [vmem:[#allocation2 + $0x99] sm:$0xff]  ;;  %3108 = vmatmul.msk.f32.gmra.mxu3 %vm182_vm0, %v3681_v6 }
 0x11a   : > { %327 = vst.msk [vmem:[#allocation2 + $0xa9] sm:$0xff] %vm182_vm0, %v278_v5  ;;  %3092 = vmatmul.msk.f32.gmra.mxu1 %vm182_vm0, %v395_v7  ;;  %3221 = vmatmul.msk.f32.gmra.mxu0 %vm182_vm0, %v3602_v40  ;;  %v1118_v40 = vld [vmem:[#allocation2 + $0x50] sm:$0xff] }
 0x120   : > { %v311_v8 = vpop.trf.xlu1  ;;  %v279_v9 = vpop.trf.xlu0  ;;  %v3690_v10 = vld [vmem:[#allocation2 + $0x169] sm:$0xff] }
 0x121   : > { %344 = vst.msk [vmem:[#allocation2 + $0x171] sm:$0xff] %vm182_vm0, %v311_v8  ;;  %v396_v11 = vld [vmem:[#allocation2 + $0xa9] sm:$0xff]  ;;  %3109 = vmatmul.msk.f32.gmra.mxu3 %vm182_vm0, %v3690_v10  ;;  %v1124_v8 = vld [vmem:[#allocation2 + $0x98] sm:$0xff] }
 0x122   : > { %328 = vst.msk [vmem:[#allocation2 + $0xb1] sm:$0xff] %vm182_vm0, %v279_v9  ;;  %3093 = vmatmul.msk.f32.gmra.mxu1 %vm182_vm0, %v396_v11  ;;  %3222 = vmatmul.msk.f32.gmra.mxu0 %vm182_vm0, %v3610_v44  ;;  %v404_v44 = vld [vmem:[#allocation2 + $0x109] sm:$0xff] }
 0x128   : > { %v280_v13 = vpop.trf.xlu0  ;;  %v3702_v14 = vld [vmem:[#allocation2 + $0x171] sm:$0xff] }
 0x129   : > { %329 = vst.msk [vmem:[#allocation2 + $0xc1] sm:$0xff] %vm182_vm0, %v280_v13  ;;  %v397_v15 = vld [vmem:[#allocation2 + $0xb1] sm:$0xff]  ;;  %3110 = vmatmul.msk.f32.gmra.mxu3 %vm182_vm0, %v3702_v14 }
 0x12a   : > { %3094 = vmatmul.msk.f32.gmra.mxu1 %vm182_vm0, %v397_v15  ;;  %3223 = vmatmul.msk.f32.gmra.mxu0 %vm182_vm0, %v3621_v48  ;;  %v405_v48 = vld [vmem:[#allocation2 + $0x111] sm:$0xff] }
 0x12b   : > { %v3826_v13 = vld [vmem:[#allocation2 + $0x32] sm:$0xff] }
 0x130   : > { %v281_v18 = vpop.trf.xlu0  ;;  %v398_v19 = vld [vmem:[#allocation2 + $0xc1] sm:$0xff] }
 0x131   : > { %330 = vst.msk [vmem:[#allocation2 + $0xc9] sm:$0xff] %vm182_vm0, %v281_v18  ;;  %3095 = vmatmul.msk.f32.vlgmr.msra.gmra.mxu2 %vm182_vm0, %v398_v19  ;;  %3181 = vmatmul.msk.f32.vlgmr.msrb.gmra.mxu3 %vm182_vm0, %v1113_v20 }
 0x132   : > { %3111 = vmatmul.msk.f32.vlgmr.msrb.gmra.mxu1 %vm182_vm0, %v347_v17  ;;  %3224 = vmatmul.msk.f32.gmra.mxu0 %vm182_vm0, %v3632_v52 }
 0x133   : > { %2090 = vmatpush.msra.mxu2 %v3285_v35  ;;  %v3284_v35 = vld [vmem:[%s4946_s1 + $0x98] sm:$0xff] }
 0x135   : > { %2091 = vmatpush.msra.mxu2 %v3284_v35 }
 0x138   : > { %v399_v23 = vld [vmem:[#allocation2 + $0xc9] sm:$0xff] }
 0x139   : > { %3096 = vmatmul.msk.f32.gmra.mxu2 %vm182_vm0, %v399_v23  ;;  %3182 = vmatmul.msk.f32.gmra.mxu3 %vm182_vm0, %v1114_v24 }
 0x13a   : > { %3112 = vmatmul.msk.f32.gmra.mxu1 %vm182_vm0, %v348_v22  ;;  %3225 = vmatmul.msk.f32.gmra.mxu0 %vm182_vm0, %v3643_v56 }
 0x13f   : > { %v3728_v26 = vpop.f32.mrf.mxu0 }
 0x141   : > { %3097 = vmatmul.msk.f32.gmra.mxu2 %vm182_vm0, %v400_v27  ;;  %3183 = vmatmul.msk.f32.gmra.mxu3 %vm182_vm0, %v1115_v28 }
 0x142   : > { %3113 = vmatmul.msk.f32.gmra.mxu1 %vm182_vm0, %v1113_v20  ;;  %3226 = vmatmul.msk.f32.gmra.mxu0 %vm182_vm0, %v394_v2  ;;  %v1123_v2 = vld [vmem:[#allocation2 + $0x90] sm:$0xff] }
 0x143   : > { %v1126_v20 = vld [vmem:[#allocation2 + $0xb0] sm:$0xff] }
 0x147   : > { %v3734_v29 = vpop.f32.mrf.mxu0 }
 0x149   : > { %3098 = vmatmul.msk.f32.gmra.mxu2 %vm182_vm0, %v401_v30  ;;  %3184 = vmatmul.msk.f32.gmra.mxu3 %vm182_vm0, %v1116_v31 }
 0x14a   : > { %3114 = vmatmul.msk.f32.gmra.mxu1 %vm182_vm0, %v1114_v24  ;;  %3227 = vmatmul.msk.f32.gmra.mxu0 %vm182_vm0, %v395_v7  ;;  %v3813_v7 = vld [vmem:[#allocation2 + $0x22] sm:$0xff] }
 0x14f   : > { %v3740_v32 = vpop.f32.mrf.mxu0 }
 0x151   : > { %3099 = vmatmul.msk.f32.gmra.mxu2 %vm182_vm0, %v402_v33  ;;  %3185 = vmatmul.msk.f32.gmra.mxu3 %vm182_vm0, %v1117_v34 }
 0x152   : > { %3115 = vmatmul.msk.f32.gmra.mxu1 %vm182_vm0, %v1115_v28  ;;  %3228 = vmatmul.msk.f32.gmra.mxu0 %vm182_vm0, %v396_v11 }
 0x157   : > { %v3755_v38 = vpop.f32.mrf.mxu0 }
 0x159   : > { %3100 = vmatmul.msk.f32.gmra.mxu2 %vm182_vm0, %v403_v39  ;;  %3186 = vmatmul.msk.f32.gmra.mxu3 %vm182_vm0, %v1118_v40 }
 0x15a   : > { %3116 = vmatmul.msk.f32.gmra.mxu1 %vm182_vm0, %v1116_v31  ;;  %3229 = vmatmul.msk.f32.gmra.mxu0 %vm182_vm0, %v397_v15  ;;  %v1125_v15 = vld [vmem:[#allocation2 + $0xa8] sm:$0xff] }
 0x15f   : > { %v3764_v42 = vpop.f32.mrf.mxu0 }
 0x161   : > { %3101 = vmatmul.msk.f32.gmra.mxu2 %vm182_vm0, %v404_v44  ;;  %3187 = vmatmul.msk.f32.gmra.mxu3 %vm182_vm0, %v1119_v45 }
 0x162   : > { %3117 = vmatmul.msk.f32.gmra.mxu1 %vm182_vm0, %v1117_v34  ;;  %3230 = vmatmul.msk.f32.gmra.mxu0 %vm182_vm0, %v398_v19  ;;  %v3837_v19 = vld [vmem:[#allocation2 + $0x3a] sm:$0xff]  ;;  %v1128_v34 = vld [vmem:[#allocation2 + $0xc8] sm:$0xff] }
 0x167   : > { %v3770_v46 = vpop.f32.mrf.mxu0 }
 0x169   : > { %3102 = vmatmul.msk.f32.gmra.mxu2 %vm182_vm0, %v405_v48  ;;  %3188 = vmatmul.msk.f32.gmra.mxu3 %vm182_vm0, %v1120_v49 }
 0x16a   : > { %3118 = vmatmul.msk.f32.gmra.mxu1 %vm182_vm0, %v1118_v40  ;;  %3231 = vmatmul.msk.f32.gmra.mxu0 %vm182_vm0, %v399_v23 }
 0x16f   : > { %v3776_v52 = vpop.f32.mrf.mxu1  ;;  %v3778_v53 = vpop.f32.mrf.mxu0 }
 0x170   : > { %4949 = vst [vmem:[#allocation3_spill] sm:$0xff] %v3778_v53 }
 0x171   : > { %3146 = vmatmul.msk.f32.vlgmr.msrb.gmra.mxu2 %vm182_vm0, %v836_v50  ;;  %3189 = vmatmul.msk.f32.gmra.mxu3 %vm182_vm0, %v1121_v54 }
 0x172   : > { %3119 = vmatmul.msk.f32.gmra.mxu1 %vm182_vm0, %v1119_v45  ;;  %3232 = vmatmul.msk.f32.gmra.mxu0 %vm182_vm0, %v400_v27  ;;  %v1127_v27 = vld [vmem:[#allocation2 + $0xc0] sm:$0xff] }
 0x174   : > { %v3784_v56 = vpop.f32.mrf.mxu3 }
 0x175   : > { %4950 = vst [vmem:[#allocation4_spill] sm:$0xff] %v3784_v56 }
 0x177   : > { %v3786_v58 = vpop.f32.mrf.mxu1  ;;  %v3788_v59 = vpop.f32.mrf.mxu0 }
 0x178   : > { %4951 = vst [vmem:[#allocation5_spill] sm:$0xff] %v3788_v59  ;;  %v1135_v59 = vld [vmem:[#allocation2 + $0x120] sm:$0xff] }
 0x179   : > { %3147 = vmatmul.msk.f32.gmra.mxu2 %vm182_vm0, %v837_v57  ;;  %3190 = vmatmul.msk.f32.gmra.mxu3 %vm182_vm0, %v1122_v60  ;;  %v1130_v57 = vld [vmem:[#allocation2 + $0xe0] sm:$0xff] }
 0x17a   : > { %3120 = vmatmul.msk.f32.gmra.mxu1 %vm182_vm0, %v1120_v49  ;;  %3233 = vmatmul.msk.f32.gmra.mxu0 %vm182_vm0, %v401_v30 }
 0x17c   : > { %v3794_v61 = vpop.f32.mrf.mxu3 }
 0x17d   : > { %4952 = vst [vmem:[#allocation6_spill] sm:$0xff] %v3794_v61 }
 0x17f   : > { %v3796_v62 = vpop.f32.mrf.mxu1  ;;  %v3798_v63 = vpop.f32.mrf.mxu0 }
 0x180   : > { %4953 = vst [vmem:[#allocation7_spill] sm:$0xff] %v3798_v63  ;;  %v3989_v63 = vld [vmem:[#allocation2 + $0xaa] sm:$0xff] }
 0x181   : > { %3148 = vmatmul.msk.f32.gmra.mxu2 %vm182_vm0, %v3800_v0  ;;  %3191 = vmatmul.msk.f32.gmra.mxu3 %vm182_vm0, %v1123_v2 }
 0x182   : > { %3121 = vmatmul.msk.f32.gmra.mxu1 %vm182_vm0, %v1121_v54  ;;  %3234 = vmatmul.msk.f32.gmra.mxu0 %vm182_vm0, %v402_v33  ;;  %v3864_v33 = vld [vmem:[#allocation2 + $0x52] sm:$0xff]  ;;  %v3906_v54 = vld [vmem:[#allocation2 + $0x6a] sm:$0xff] }
 0x184   : > { %v3807_v3 = vpop.f32.mrf.mxu3 }
 0x185   : > { %4954 = vst [vmem:[#allocation8_spill] sm:$0xff] %v3807_v3  ;;  %v1137_v3 = vld [vmem:[#allocation2 + $0x138] sm:$0xff] }
 0x187   : > { %v3809_v4 = vpop.f32.mrf.mxu1  ;;  %v3811_v5 = vpop.f32.mrf.mxu0 }
 0x188   : > { %4955 = vst [vmem:[#allocation9_spill] sm:$0xff] %v3811_v5 }
 0x189   : > { %3149 = vmatmul.msk.f32.gmra.mxu2 %vm182_vm0, %v3813_v7  ;;  %3192 = vmatmul.msk.f32.gmra.mxu3 %vm182_vm0, %v1124_v8 }
 0x18a   : > { %3122 = vmatmul.msk.f32.gmra.mxu1 %vm182_vm0, %v1122_v60  ;;  %3235 = vmatmul.msk.f32.gmra.mxu0 %vm182_vm0, %v403_v39  ;;  %v312_v60 = vpop.trf.xlu1 }
 0x18b   : > { %345 = vst.msk [vmem:[#allocation2 + $0x181] sm:$0xff] %vm182_vm0, %v312_v60 }
 0x18c   : > { %v3820_v9 = vpop.f32.mrf.mxu3 }
 0x18d   : > { %4956 = vst [vmem:[#allocation10_spill] sm:$0xff] %v3820_v9  ;;  %v4017_v9 = vld [vmem:[#allocation2 + $0xc2] sm:$0xff] }
 0x18f   : > { %v3822_v11 = vpop.f32.mrf.mxu1  ;;  %v3824_v12 = vpop.f32.mrf.mxu0 }
 0x190   : > { %4957 = vst [vmem:[#allocation11_spill] sm:$0xff] %v3824_v12  ;;  %v1134_v12 = vld [vmem:[#allocation2 + $0x110] sm:$0xff] }
 0x191   : > { %3150 = vmatmul.msk.f32.gmra.mxu2 %vm182_vm0, %v3826_v13  ;;  %3193 = vmatmul.msk.f32.gmra.mxu3 %vm182_vm0, %v1125_v15 }
 0x192   : > { %3123 = vmatmul.msk.f32.gmra.mxu1 %vm182_vm0, %v1123_v2  ;;  %3236 = vmatmul.msk.f32.gmra.mxu0 %vm182_vm0, %v404_v44  ;;  %v3354_v44 = vld [vmem:[%s4946_s1 + $0xc8] sm:$0xff] }
 0x193   : > { %2645 = vmatpush.msra.mxu0 %v3354_v44  ;;  %v1132_v44 = vld [vmem:[#allocation2 + $0xf8] sm:$0xff]  ;;  %v1420_v5 = vld [vmem:[#allocation2 + $0x181] sm:$0xff] }
 0x194   : > { %v3833_v17 = vpop.f32.mrf.mxu3 }
 0x195   : > { %4958 = vst [vmem:[#allocation12_spill] sm:$0xff] %v3833_v17 }
 0x197   : > { %v3835_v18 = vpop.f32.mrf.mxu1  ;;  %v3839_v22 = vpop.f32.mrf.mxu0 }
 0x198   : > { %4959 = vst [vmem:[#allocation13_spill] sm:$0xff] %v3839_v22  ;;  %v3973_v22 = vld [vmem:[#allocation2 + $0x9a] sm:$0xff] }
 0x199   : > { %3151 = vmatmul.msk.f32.gmra.mxu2 %vm182_vm0, %v3837_v19  ;;  %3194 = vmatmul.msk.f32.gmra.mxu3 %vm182_vm0, %v1126_v20 }
 0x19a   : > { %3124 = vmatmul.msk.f32.gmra.mxu1 %vm182_vm0, %v1124_v8  ;;  %3237 = vmatmul.msk.f32.gmra.mxu0 %vm182_vm0, %v405_v48 }
 0x19c   : > { %v3846_v23 = vpop.f32.mrf.mxu3 }
 0x19d   : > { %4960 = vst [vmem:[#allocation14_spill] sm:$0xff] %v3846_v23 }
 0x19f   : > { %v3848_v24 = vpop.f32.mrf.mxu1  ;;  %v3858_v28 = vpop.f32.mrf.mxu0 }
 0x1a0   : > { %4961 = vst [vmem:[#allocation15_spill] sm:$0xff] %v3858_v28 }
 0x1a1   : > { %3152 = vmatmul.msk.f32.gmra.mxu2 %vm182_vm0, %v3850_v25  ;;  %3195 = vmatmul.msk.f32.gmra.mxu3 %vm182_vm0, %v1127_v27 }
 0x1a2   : > { %3125 = vmatmul.msk.f32.gmra.mxu1 %vm182_vm0, %v1125_v15  ;;  %3238 = vmatmul.msk.f32.gmra.mxu0 %vm182_vm0, %v3607_v43  ;;  %v3319_v43 = vld [vmem:[%s4946_s1 + $0xb0] sm:$0xff]  ;;  %v3921_v15 = vld [vmem:[#allocation2 + $0x7a] sm:$0xff] }
 0x1a3   : > { %2368 = vmatpush.msra.mxu3 %v3319_v43 }
 0x1a4   : > { %v3860_v30 = vpop.f32.mrf.mxu3 }
 0x1a5   : > { %4962 = vst [vmem:[#allocation16_spill] sm:$0xff] %v3860_v30  ;;  %v1136_v30 = vld [vmem:[#allocation2 + $0x128] sm:$0xff] }
 0x1a7   : > { %v3862_v31 = vpop.f32.mrf.mxu1  ;;  %v3883_v39 = vpop.f32.mrf.mxu0 }
 0x1a8   : > { %4964 = vst [vmem:[#allocation18_spill] sm:$0xff] %v3883_v39  ;;  %v3353_v39 = vld [vmem:[%s4946_s1 + $0xc0] sm:$0xff] }
 0x1a9   : > { %3153 = vmatmul.msk.f32.gmra.mxu2 %vm182_vm0, %v3864_v33  ;;  %3196 = vmatmul.msk.f32.gmra.mxu3 %vm182_vm0, %v1128_v34 }
 0x1aa   : > { %3126 = vmatmul.msk.f32.gmra.mxu1 %vm182_vm0, %v1126_v20  ;;  %3239 = vmatmul.msk.f32.gmra.mxu0 %vm182_vm0, %v3618_v47  ;;  %v1129_v47 = vld [vmem:[#allocation2 + $0xd8] sm:$0xff]  ;;  %v1131_v20 = vld [vmem:[#allocation2 + $0xf0] sm:$0xff] }
 0x1ab   : > { %2646 = vmatpush.msra.mxu0 %v3353_v39 }
 0x1ac   : > { %v3881_v37 = vpop.f32.mrf.mxu3 }
 0x1ad   : > { %4963 = vst [vmem:[#allocation17_spill] sm:$0xff] %v3881_v37  ;;  %v4002_v37 = vld [vmem:[#allocation2 + $0xb2] sm:$0xff] }
 0x1af   : > { %v3885_v40 = vpop.f32.mrf.mxu1  ;;  %v3902_v49 = vpop.f32.mrf.mxu0 }
 0x1b0   : > { %4965 = vst [vmem:[#allocation19_spill] sm:$0xff] %v3902_v49  ;;  %v1133_v49 = vld [vmem:[#allocation2 + $0x108] sm:$0xff] }
 0x1b1   : > { %3154 = vmatmul.msk.f32.gmra.mxu2 %vm182_vm0, %v3887_v41  ;;  %3197 = vmatmul.msk.f32.gmra.mxu3 %vm182_vm0, %v1129_v47 }
 0x1b2   : > { %3127 = vmatmul.msk.f32.gmra.mxu1 %vm182_vm0, %v1127_v27  ;;  %3240 = vmatmul.msk.f32.gmra.mxu0 %vm182_vm0, %v3629_v51  ;;  %v313_v27 = vpop.trf.xlu1 }
 0x1b3   : > { %346 = vst.msk [vmem:[#allocation2 + $0x189] sm:$0xff] %vm182_vm0, %v313_v27 }
 0x1b4   : > { %v3898_v45 = vpop.f32.mrf.mxu2  ;;  %v3900_v48 = vpop.f32.mrf.mxu3 }
 0x1b7   : > { %v3904_v50 = vpop.f32.mrf.mxu1  ;;  %v3923_v35 = vpop.f32.mrf.mxu0 }
 0x1b8   : > { %4966 = vst [vmem:[#allocation20_spill] sm:$0xff] %v3923_v35  ;;  %v3954_v35 = vld [vmem:[#allocation2 + $0x92] sm:$0xff] }
 0x1b9   : > { %3155 = vmatmul.msk.f32.gmra.mxu2 %vm182_vm0, %v3906_v54  ;;  %3198 = vmatmul.msk.f32.gmra.mxu3 %vm182_vm0, %v1130_v57 }
 0x1ba   : > { %3128 = vmatmul.msk.f32.gmra.mxu1 %vm182_vm0, %v1128_v34  ;;  %3241 = vmatmul.msk.f32.gmra.mxu0 %vm182_vm0, %v3640_v55  ;;  %v1421_v53 = vld [vmem:[#allocation2 + $0x189] sm:$0xff] }
 0x1bc   : > { %v3915_v51 = vpop.f32.mrf.mxu2  ;;  %v3917_v2 = vpop.f32.mrf.mxu3 }
 0x1bf   : > { %v3919_v8 = vpop.f32.mrf.mxu1 }
 0x1c1   : > { %3156 = vmatmul.msk.f32.gmra.mxu2 %vm182_vm0, %v3921_v15  ;;  %3199 = vmatmul.msk.f32.gmra.mxu3 %vm182_vm0, %v1131_v20 }
 0x1c2   : > { %3129 = vmatmul.msk.f32.gmra.mxu1 %vm182_vm0, %v1129_v47  ;;  %3242 = vmatmul.msk.f32.gmra.mxu0 %vm182_vm0, %v3669_v1  ;;  %v3946_v1 = vpop.f32.mrf.mxu0 }
 0x1c3   : > { %4967 = vst [vmem:[#allocation21_spill] sm:$0xff] %v3946_v1 }
 0x1c4   : > { %v3932_v55 = vpop.f32.mrf.mxu2  ;;  %v3934_v34 = vpop.f32.mrf.mxu3 }
 0x1c7   : > { %v3936_v43 = vpop.f32.mrf.mxu1 }
 0x1c9   : > { %3157 = vmatmul.msk.f32.gmra.mxu2 %vm182_vm0, %v3938_v36  ;;  %3200 = vmatmul.msk.f32.gmra.mxu3 %vm182_vm0, %v1132_v44 }
 0x1ca   : > { %3130 = vmatmul.msk.f32.gmra.mxu1 %vm182_vm0, %v1130_v57  ;;  %3243 = vmatmul.msk.f32.gmra.mxu0 %vm182_vm0, %v3681_v6  ;;  %v3969_v1 = vpop.f32.mrf.mxu0 }
 0x1cb   : > { %4970 = vst [vmem:[#allocation24_spill] sm:$0xff] %v3969_v1 }
 0x1cc   : > { %v3948_v47 = vpop.f32.mrf.mxu2  ;;  %v3950_v60 = vpop.f32.mrf.mxu3 }
 0x1cd   : > { %4968 = vst [vmem:[#allocation22_spill] sm:$0xff] %v3948_v47  ;;  %v1140_v47 = vld [vmem:[#allocation2 + $0x158] sm:$0xff] }
 0x1cf   : > { %v3952_v27 = vpop.f32.mrf.mxu1 }
 0x1d1   : > { %3158 = vmatmul.msk.f32.gmra.mxu2 %vm182_vm0, %v3954_v35  ;;  %3201 = vmatmul.msk.f32.gmra.mxu3 %vm182_vm0, %v1133_v49 }
 0x1d2   : > { %3131 = vmatmul.msk.f32.gmra.mxu1 %vm182_vm0, %v1131_v20  ;;  %3244 = vmatmul.msk.f32.gmra.mxu0 %vm182_vm0, %v3690_v10  ;;  %v3985_v20 = vpop.f32.mrf.mxu0 }
 0x1d3   : > { %4972 = vst [vmem:[#allocation26_spill] sm:$0xff] %v3985_v20 }
 0x1d4   : > { %v3965_v6 = vpop.f32.mrf.mxu2  ;;  %v3967_v57 = vpop.f32.mrf.mxu3 }
 0x1d5   : > { %4969 = vst [vmem:[#allocation23_spill] sm:$0xff] %v3965_v6  ;;  %v1139_v6 = vld [vmem:[#allocation2 + $0x150] sm:$0xff] }
 0x1d7   : > { %v3971_v28 = vpop.f32.mrf.mxu1 }
 0x1d9   : > { %3159 = vmatmul.msk.f32.gmra.mxu2 %vm182_vm0, %v3973_v22  ;;  %3202 = vmatmul.msk.f32.gmra.mxu3 %vm182_vm0, %v1134_v12 }
 0x1da   : > { %3132 = vmatmul.msk.f32.gmra.mxu1 %vm182_vm0, %v1132_v44  ;;  %3245 = vmatmul.msk.f32.gmra.mxu0 %vm182_vm0, %v3702_v14  ;;  %v4004_v23 = vpop.f32.mrf.mxu0 }
 0x1db   : > { %4974 = vst [vmem:[#allocation28_spill] sm:$0xff] %v4004_v23 }
 0x1dc   : > { %v3981_v10 = vpop.f32.mrf.mxu2  ;;  %v3983_v39 = vpop.f32.mrf.mxu3 }
 0x1dd   : > { %4971 = vst [vmem:[#allocation25_spill] sm:$0xff] %v3981_v10  ;;  %v4036_v10 = vld [vmem:[#allocation2 + $0xca] sm:$0xff] }
 0x1df   : > { %v3987_v1 = vpop.f32.mrf.mxu1 }
 0x1e1   : > { %3160 = vmatmul.msk.f32.gmra.mxu2 %vm182_vm0, %v3989_v63  ;;  %3203 = vmatmul.msk.f32.gmra.mxu3 %vm182_vm0, %v1135_v59 }
 0x1e2   : > { %3133 = vmatmul.msk.f32.gmra.mxu1 %vm182_vm0, %v1133_v49  ;;  %3246 = vmatmul.msk.f32.gmra.mxu0 %vm182_vm0, %v1420_v5 }
 0x1e4   : > { %v3996_v14 = vpop.f32.mrf.mxu2  ;;  %v3998_v44 = vpop.f32.mrf.mxu3 }
 0x1e5   : > { %4973 = vst [vmem:[#allocation27_spill] sm:$0xff] %v3996_v14 }
 0x1e7   : > { %v4000_v20 = vpop.f32.mrf.mxu1 }
 0x1e9   : > { %3161 = vmatmul.msk.f32.gmra.mxu2 %vm182_vm0, %v4002_v37  ;;  %3204 = vmatmul.msk.f32.gmra.mxu3 %vm182_vm0, %v1136_v30 }
 0x1ea   : > { %3134 = vmatmul.msk.f32.gmra.mxu1 %vm182_vm0, %v1134_v12  ;;  %3247 = vmatmul.msk.f32.gmra.mxu0 %vm182_vm0, %v1421_v53  ;;  %v741_v53 = vadd.f32 %v3885_v40, %v3710_v16  ;;  %v4027_v12 = vpop.f32.mrf.mxu0  ;;  %v744_v16 = vadd.f32 %v3904_v50, %v3718_v21  ;;  %v3318_v21 = vld [vmem:[%s4946_s1 + $0xa8] sm:$0xff]  ;;  %v3248_v50 = vld [vmem:[%s4946_s1 + $0x78] sm:$0xff] }
 0x1eb   : > { %4976 = vst [vmem:[#allocation30_spill] sm:$0xff] %v4027_v12  ;;  %2369 = vmatpush.msra.mxu3 %v3318_v21  ;;  %1814 = vmatpush.msra.mxu1 %v3248_v50 }
 0x1ec   : > { %v4011_v5 = vpop.f32.mrf.mxu2  ;;  %v4013_v49 = vpop.f32.mrf.mxu3 }
 0x1ed   : > { %4975 = vst [vmem:[#allocation29_spill] sm:$0xff] %v4011_v5 }
 0x1ef   : > { %v4015_v17 = vpop.f32.mrf.mxu1 }
 0x1f1   : > { %3162 = vmatmul.msk.f32.gmra.mxu2 %vm182_vm0, %v4017_v9  ;;  %3205 = vmatmul.msk.f32.gmra.mxu3 %vm182_vm0, %v1137_v3 }
 0x1f2   : > { %3135 = vmatmul.msk.f32.gmra.mxu1 %vm182_vm0, %v1135_v59  ;;  %3356 = vmatmul.msk.f32.vlgmr.msra.gmra.mxu0 %vm182_vm0, %v3826_v13  ;;  %v1138_v59 = vld [vmem:[#allocation2 + $0x140] sm:$0xff]  ;;  %v4048_v40 = vpop.f32.mrf.mxu0 }
 0x1f3   : > { %4978 = vst [vmem:[#allocation32_spill] sm:$0xff] %v4048_v40 }
 0x1f4   : > { %v985_v23 = vpop.f32.mrf.mxu2  ;;  %v4029_v61 = vpop.f32.mrf.mxu3 }
 0x1f5   : > { %v1081_v56 = vadd.f32 %v985_v23, %v741_v53 }
 0x1f7   : > { %v4032_v5 = vadd.f32 %v3900_v48, %v1081_v56  ;;  %v4034_v14 = vpop.f32.mrf.mxu1 }
 0x1f9   : > { %4977 = vst [vmem:[#allocation31_spill] sm:$0xff] %v4032_v5  ;;  %3163 = vmatmul.msk.f32.gmra.mxu2 %vm182_vm0, %v4036_v10  ;;  %3206 = vmatmul.msk.f32.gmra.mxu3 %vm182_vm0, %v1138_v59  ;;  %v4055_v5 = vld [vmem:[#allocation2 + $0xda] sm:$0xff] }
 0x1fa   : > { %3136 = vmatmul.msk.f32.gmra.mxu1 %vm182_vm0, %v1136_v30  ;;  %3357 = vmatmul.msk.f32.gmra.mxu0 %vm182_vm0, %v3837_v19  ;;  %v3283_v30 = vld [vmem:[%s4946_s1 + $0x90] sm:$0xff] }
 0x1fb   : > { %2092 = vmatpush.msra.mxu2 %v3283_v30  ;;  %v4076_v30 = vpop.f32.mrf.mxu0 }
 0x1fc   : > { %v988_v56 = vpop.f32.mrf.mxu2  ;;  %v4046_v23 = vpop.f32.mrf.mxu3  ;;  %4980 = vst [vmem:[#allocation34_spill] sm:$0xff] %v4076_v30 }
 0x1fd   : > { %v1082_v48 = vadd.f32 %v988_v56, %v744_v16 }
 0x1ff   : > { %v4051_v53 = vadd.f32 %v3917_v2, %v1082_v48  ;;  %v4053_v12 = vpop.f32.mrf.mxu1  ;;  %v747_v2 = vadd.f32 %v3919_v8, %v3728_v26  ;;  %v750_v26 = vadd.f32 %v3936_v43, %v3734_v29  ;;  %v753_v29 = vadd.f32 %v3952_v27, %v3740_v32 }
 0x200   : > { %v756_v32 = vadd.f32 %v3971_v28, %v3755_v38  ;;  %v759_v38 = vadd.f32 %v3987_v1, %v3764_v42  ;;  %v762_v42 = vadd.f32 %v4000_v20, %v3770_v46  ;;  %v765_v46 = vadd.f32 %v4015_v17, %v3776_v52 }
 0x201   : > { %4979 = vst [vmem:[#allocation33_spill] sm:$0xff] %v4051_v53  ;;  %3164 = vmatmul.msk.f32.gmra.mxu2 %vm182_vm0, %v4055_v5  ;;  %3207 = vmatmul.msk.f32.gmra.mxu3 %vm182_vm0, %v1139_v6  ;;  %v768_v52 = vadd.f32 %v4034_v14, %v3786_v58  ;;  %v771_v58 = vadd.f32 %v4053_v12, %v3796_v62 }
 0x202   : > { %3137 = vmatmul.msk.f32.gmra.mxu1 %vm182_vm0, %v1137_v3  ;;  %3358 = vmatmul.msk.f32.gmra.mxu0 %vm182_vm0, %v3850_v25  ;;  %v4083_v3 = vld [vmem:[#allocation2 + $0xe2] sm:$0xff] }
 0x203   : > { %v4102_v30 = vpop.f32.mrf.mxu0 }
 0x204   : > { %v991_v16 = vpop.f32.mrf.mxu2  ;;  %v4074_v56 = vpop.f32.mrf.mxu3  ;;  %4982 = vst [vmem:[#allocation36_spill] sm:$0xff] %v4102_v30  ;;  %v1142_v30 = vld [vmem:[#allocation2 + $0x170] sm:$0xff] }
 0x205   : > { %v1083_v48 = vadd.f32 %v991_v16, %v747_v2  ;;  %v4100_v16 = vld [vmem:[#allocation2 + $0xf2] sm:$0xff] }
 0x207   : > { %v4079_v40 = vadd.f32 %v3934_v34, %v1083_v48  ;;  %v4081_v53 = vpop.f32.mrf.mxu1  ;;  %v1141_v48 = vld [vmem:[#allocation2 + $0x168] sm:$0xff] }
 0x208   : > { %v774_v62 = vadd.f32 %v4081_v53, %v3809_v4 }
 0x209   : > { %3165 = vmatmul.msk.f32.gmra.mxu2 %vm182_vm0, %v4083_v3  ;;  %3208 = vmatmul.msk.f32.gmra.mxu3 %vm182_vm0, %v1140_v47 }
 0x20a   : > { %3138 = vmatmul.msk.f32.gmra.mxu1 %vm182_vm0, %v1138_v59  ;;  %3359 = vmatmul.msk.f32.gmra.mxu0 %vm182_vm0, %v3864_v33 }
 0x20b   : > { %v4129_v27 = vpop.f32.mrf.mxu0 }
 0x20c   : > { %v994_v8 = vpop.f32.mrf.mxu2  ;;  %v4093_v34 = vpop.f32.mrf.mxu3  ;;  %4984 = vst [vmem:[#allocation38_spill] sm:$0xff] %v4129_v27 }
 0x20d   : > { %v1084_v21 = vadd.f32 %v994_v8, %v750_v26 }
 0x20f   : > { %v4096_v50 = vadd.f32 %v3950_v60, %v1084_v21  ;;  %v4098_v2 = vpop.f32.mrf.mxu1  ;;  %v4119_v21 = vld [vmem:[#allocation2 + $0xfa] sm:$0xff] }
 0x210   : > { %v777_v4 = vadd.f32 %v4098_v2, %v3822_v11 }
 0x211   : > { %4981 = vst [vmem:[#allocation35_spill] sm:$0xff] %v4096_v50  ;;  %3166 = vmatmul.msk.f32.gmra.mxu2 %vm182_vm0, %v4100_v16  ;;  %3209 = vmatmul.msk.f32.gmra.mxu3 %vm182_vm0, %v1141_v48  ;;  %v4138_v50 = vld [vmem:[#allocation2 + $0x10a] sm:$0xff] }
 0x212   : > { %3139 = vmatmul.msk.f32.gmra.mxu1 %vm182_vm0, %v1139_v6  ;;  %3360 = vmatmul.msk.f32.gmra.mxu0 %vm182_vm0, %v3887_v41 }
 0x214   : > { %v997_v43 = vpop.f32.mrf.mxu2  ;;  %v4112_v60 = vpop.f32.mrf.mxu3 }
 0x215   : > { %v1085_v59 = vadd.f32 %v997_v43, %v753_v29  ;;  %v1143_v43 = vld [vmem:[#allocation2 + $0x180] sm:$0xff] }
 0x217   : > { %v4115_v26 = vadd.f32 %v3967_v57, %v1085_v59  ;;  %v4117_v8 = vpop.f32.mrf.mxu1 }
 0x218   : > { %v780_v11 = vadd.f32 %v4117_v8, %v3835_v18 }
 0x219   : > { %4983 = vst [vmem:[#allocation37_spill] sm:$0xff] %v4115_v26  ;;  %3167 = vmatmul.msk.f32.gmra.mxu2 %vm182_vm0, %v4119_v21  ;;  %3210 = vmatmul.msk.f32.gmra.mxu3 %vm182_vm0, %v1142_v30 }
 0x21a   : > { %3140 = vmatmul.msk.f32.gmra.mxu1 %vm182_vm0, %v1140_v47  ;;  %3361 = vmatmul.msk.f32.gmra.mxu0 %vm182_vm0, %v3906_v54 }
 0x21c   : > { %v1000_v6 = vpop.f32.mrf.mxu2  ;;  %v4131_v57 = vpop.f32.mrf.mxu3 }
 0x21d   : > { %v1086_v29 = vadd.f32 %v1000_v6, %v756_v32  ;;  %v1144_v6 = vld [vmem:[#allocation2 + $0x188] sm:$0xff] }
 0x21f   : > { %v4134_v59 = vadd.f32 %v3983_v39, %v1086_v29  ;;  %v4136_v26 = vpop.f32.mrf.mxu1  ;;  %v4150_v39 = vpop.f32.mrf.mxu0 }
 0x220   : > { %4985 = vst [vmem:[#allocation39_spill] sm:$0xff] %v4150_v39  ;;  %v783_v18 = vadd.f32 %v4136_v26, %v3848_v24 }
 0x221   : > { %3168 = vmatmul.msk.f32.gmra.mxu2 %vm182_vm0, %v4138_v50  ;;  %3211 = vmatmul.msk.f32.gmra.mxu3 %vm182_vm0, %v1143_v43  ;;  %v4157_v43 = vld [vmem:[#allocation2 + $0x112] sm:$0xff] }
 0x222   : > { %3141 = vmatmul.msk.f32.gmra.mxu1 %vm182_vm0, %v1141_v48  ;;  %3362 = vmatmul.msk.f32.gmra.mxu0 %vm182_vm0, %v3921_v15 }
 0x224   : > { %v1003_v28 = vpop.f32.mrf.mxu2  ;;  %v4148_v47 = vpop.f32.mrf.mxu3 }
 0x225   : > { %v1087_v32 = vadd.f32 %v1003_v28, %v759_v38 }
 0x227   : > { %v4153_v29 = vadd.f32 %v3998_v44, %v1087_v32  ;;  %v4155_v27 = vpop.f32.mrf.mxu1  ;;  %v4169_v38 = vpop.f32.mrf.mxu0 }
 0x228   : > { %4986 = vst [vmem:[#allocation40_spill] sm:$0xff] %v4169_v38  ;;  %v4194_v38 = vld [vmem:[#allocation2 + $0x12a] sm:$0xff]  ;;  %v786_v24 = vadd.f32 %v4155_v27, %v3862_v31 }
 0x229   : > { %3169 = vmatmul.msk.f32.gmra.mxu2 %vm182_vm0, %v4157_v43  ;;  %3212 = vmatmul.msk.f32.gmra.mxu3 %vm182_vm0, %v1144_v6  ;;  %v4176_v6 = vld [vmem:[#allocation2 + $0x122] sm:$0xff] }
 0x22a   : > { %3142 = vmatmul.msk.f32.gmra.mxu1 %vm182_vm0, %v1142_v30  ;;  %3363 = vmatmul.msk.f32.gmra.mxu0 %vm182_vm0, %v3938_v36  ;;  %v2222_v30 = vld [vmem:[#allocation2 + $0x31] sm:$0xff] }
 0x22c   : > { %v1006_v1 = vpop.f32.mrf.mxu2  ;;  %v4167_v44 = vpop.f32.mrf.mxu3 }
 0x22d   : > { %v1088_v48 = vadd.f32 %v1006_v1, %v762_v42 }
 0x22f   : > { %v4172_v28 = vadd.f32 %v4013_v49, %v1088_v48  ;;  %v4174_v32 = vpop.f32.mrf.mxu1  ;;  %v4196_v39 = vpop.f32.mrf.mxu0 }
 0x230   : > { %4987 = vst [vmem:[#allocation41_spill] sm:$0xff] %v4196_v39  ;;  %v789_v31 = vadd.f32 %v4174_v32, %v3898_v45 }
 0x231   : > { %3170 = vmatmul.msk.f32.gmra.mxu2 %vm182_vm0, %v4176_v6  ;;  %3321 = vmatmul.msk.f32.vlgmr.msra.gmra.mxu3 %vm182_vm0, %v2222_v30  ;;  %v2223_v30 = vld [vmem:[#allocation2 + $0x39] sm:$0xff] }
 0x232   : > { %3251 = vmatmul.msk.f32.vlgmr.msra.gmra.mxu1 %vm182_vm0, %v3800_v0  ;;  %3364 = vmatmul.msk.f32.gmra.mxu0 %vm182_vm0, %v3954_v35 }
 0x234   : > { %v1009_v20 = vpop.f32.mrf.mxu2  ;;  %v4187_v49 = vpop.f32.mrf.mxu3 }
 0x235   : > { %v1089_v42 = vadd.f32 %v1009_v20, %v765_v46 }
 0x237   : > { %v4190_v1 = vadd.f32 %v4029_v61, %v1089_v42  ;;  %v4192_v48 = vpop.f32.mrf.mxu1  ;;  %v4214_v42 = vld [vmem:[#allocation2 + $0x13a] sm:$0xff] }
 0x238   : > { %v792_v45 = vadd.f32 %v4192_v48, %v3915_v51 }
 0x239   : > { %3171 = vmatmul.msk.f32.gmra.mxu2 %vm182_vm0, %v4194_v38  ;;  %3322 = vmatmul.msk.f32.gmra.mxu3 %vm182_vm0, %v2223_v30  ;;  %v2224_v30 = vld [vmem:[#allocation2 + $0x49] sm:$0xff] }
 0x23a   : > { %3252 = vmatmul.msk.f32.gmra.mxu1 %vm182_vm0, %v3813_v7  ;;  %3365 = vmatmul.msk.f32.gmra.mxu0 %vm182_vm0, %v3973_v22  ;;  %v4225_v7 = vpop.f32.mrf.mxu0 }
 0x23b   : > { %4988 = vst [vmem:[#allocation42_spill] sm:$0xff] %v4225_v7 }
 0x23c   : > { %v1012_v61 = vpop.f32.mrf.mxu2  ;;  %v4207_v0 = vpop.f32.mrf.mxu3 }
 0x23d   : > { %v1090_v17 = vadd.f32 %v1012_v61, %v768_v52 }
 0x23f   : > { %v4210_v46 = vadd.f32 %v4046_v23, %v1090_v17  ;;  %v4212_v20 = vpop.f32.mrf.mxu1 }
 0x240   : > { %v795_v51 = vadd.f32 %v4212_v20, %v3932_v55 }
 0x241   : > { %3172 = vmatmul.msk.f32.gmra.mxu2 %vm182_vm0, %v4214_v42  ;;  %3323 = vmatmul.msk.f32.gmra.mxu3 %vm182_vm0, %v2224_v30  ;;  %v4234_v30 = vld [vmem:[#allocation2 + $0x142] sm:$0xff] }
 0x242   : > { %3253 = vmatmul.msk.f32.gmra.mxu1 %vm182_vm0, %v3826_v13  ;;  %3366 = vmatmul.msk.f32.gmra.mxu0 %vm182_vm0, %v3989_v63  ;;  %v2225_v13 = vld [vmem:[#allocation2 + $0x51] sm:$0xff] }
 0x244   : > { %v1015_v14 = vpop.f32.mrf.mxu2  ;;  %v4227_v23 = vpop.f32.mrf.mxu3 }
 0x245   : > { %v1091_v52 = vadd.f32 %v1015_v14, %v771_v58  ;;  %v4247_v58 = vpop.f32.mrf.mxu0 }
 0x246   : > { %4989 = vst [vmem:[#allocation43_spill] sm:$0xff] %v4247_v58 }
 0x247   : > { %v4230_v61 = vadd.f32 %v4074_v56, %v1091_v52  ;;  %v4232_v17 = vpop.f32.mrf.mxu1 }
 0x249   : > { %3173 = vmatmul.msk.f32.gmra.mxu2 %vm182_vm0, %v4234_v30  ;;  %3324 = vmatmul.msk.f32.gmra.mxu3 %vm182_vm0, %v2225_v13  ;;  %v4254_v13 = vld [vmem:[#allocation2 + $0x152] sm:$0xff] }
 0x24a   : > { %3254 = vmatmul.msk.f32.gmra.mxu1 %vm182_vm0, %v3837_v19  ;;  %3367 = vmatmul.msk.f32.gmra.mxu0 %vm182_vm0, %v4002_v37  ;;  %v2226_v19 = vld [vmem:[#allocation2 + $0x61] sm:$0xff] }
 0x24c   : > { %v1018_v12 = vpop.f32.mrf.mxu2  ;;  %v4245_v56 = vpop.f32.mrf.mxu3 }
 0x24d   : > { %v1092_v14 = vadd.f32 %v1018_v12, %v774_v62  ;;  %v4267_v12 = vpop.f32.mrf.mxu0 }
 0x24e   : > { %4990 = vst [vmem:[#allocation44_spill] sm:$0xff] %v4267_v12  ;;  %v4292_v12 = vld [vmem:[#allocation2 + $0x16a] sm:$0xff] }
 0x24f   : > { %v4250_v52 = vadd.f32 %v4093_v34, %v1092_v14  ;;  %v4252_v7 = vpop.f32.mrf.mxu1 }
 0x251   : > { %3174 = vmatmul.msk.f32.gmra.mxu2 %vm182_vm0, %v4254_v13  ;;  %3325 = vmatmul.msk.f32.gmra.mxu3 %vm182_vm0, %v2226_v19  ;;  %v4274_v19 = vld [vmem:[#allocation2 + $0x15a] sm:$0xff] }
 0x252   : > { %3255 = vmatmul.msk.f32.gmra.mxu1 %vm182_vm0, %v3850_v25  ;;  %3368 = vmatmul.msk.f32.gmra.mxu0 %vm182_vm0, %v4017_v9  ;;  %v2227_v25 = vld [vmem:[#allocation2 + $0x69] sm:$0xff] }
 0x254   : > { %v1021_v53 = vpop.f32.mrf.mxu2  ;;  %v4265_v34 = vpop.f32.mrf.mxu3 }
 0x255   : > { %v1093_v62 = vadd.f32 %v1021_v53, %v777_v4  ;;  %v4294_v39 = vpop.f32.mrf.mxu0 }
 0x256   : > { %4991 = vst [vmem:[#allocation45_spill] sm:$0xff] %v4294_v39  ;;  %v2230_v39 = vld [vmem:[#allocation2 + $0x91] sm:$0xff] }
 0x257   : > { %v4270_v14 = vadd.f32 %v4112_v60, %v1093_v62  ;;  %v4272_v58 = vpop.f32.mrf.mxu1 }
 0x259   : > { %3175 = vmatmul.msk.f32.gmra.mxu2 %vm182_vm0, %v4274_v19  ;;  %3326 = vmatmul.msk.f32.gmra.mxu3 %vm182_vm0, %v2227_v25  ;;  %v2228_v25 = vld [vmem:[#allocation2 + $0x79] sm:$0xff] }
 0x25a   : > { %3256 = vmatmul.msk.f32.gmra.mxu1 %vm182_vm0, %v3864_v33  ;;  %3369 = vmatmul.msk.f32.gmra.mxu0 %vm182_vm0, %v4036_v10 }
 0x25c   : > { %v1024_v2 = vpop.f32.mrf.mxu2  ;;  %v4285_v60 = vpop.f32.mrf.mxu3 }
 0x25d   : > { %v1094_v4 = vadd.f32 %v1024_v2, %v780_v11 }
 0x25f   : > { %v4288_v53 = vadd.f32 %v4131_v57, %v1094_v4  ;;  %v4290_v62 = vpop.f32.mrf.mxu1  ;;  %v4312_v4 = vld [vmem:[#allocation2 + $0x172] sm:$0xff] }
 0x261   : > { %3176 = vmatmul.msk.f32.gmra.mxu2 %vm182_vm0, %v4292_v12  ;;  %3327 = vmatmul.msk.f32.gmra.mxu3 %vm182_vm0, %v2228_v25  ;;  %v2229_v25 = vld [vmem:[#allocation2 + $0x81] sm:$0xff] }
 0x262   : > { %3257 = vmatmul.msk.f32.gmra.mxu1 %vm182_vm0, %v3887_v41  ;;  %3370 = vmatmul.msk.f32.gmra.mxu0 %vm182_vm0, %v4055_v5  ;;  %v4323_v41 = vpop.f32.mrf.mxu0 }
 0x263   : > { %4992 = vst [vmem:[#allocation46_spill] sm:$0xff] %v4323_v41 }
 0x264   : > { %v1027_v33 = vpop.f32.mrf.mxu2  ;;  %v4305_v8 = vpop.f32.mrf.mxu3 }
 0x265   : > { %v1095_v57 = vadd.f32 %v1027_v33, %v783_v18 }
 0x267   : > { %v4308_v11 = vadd.f32 %v4148_v47, %v1095_v57  ;;  %v4310_v2 = vpop.f32.mrf.mxu1 }
 0x269   : > { %3177 = vmatmul.msk.f32.gmra.mxu2 %vm182_vm0, %v4312_v4  ;;  %3328 = vmatmul.msk.f32.gmra.mxu3 %vm182_vm0, %v2229_v25  ;;  %v1945_v25 = vld [vmem:[#allocation2 + $0x30] sm:$0xff] }
 0x26a   : > { %3258 = vmatmul.msk.f32.gmra.mxu1 %vm182_vm0, %v3906_v54  ;;  %3371 = vmatmul.msk.f32.gmra.mxu0 %vm182_vm0, %v4083_v3 }
 0x26c   : > { %v1030_v26 = vpop.f32.mrf.mxu2  ;;  %v4325_v47 = vpop.f32.mrf.mxu3 }
 0x26d   : > { %v1096_v18 = vadd.f32 %v1030_v26, %v786_v24 }
 0x26f   : > { %v4328_v33 = vadd.f32 %v4167_v44, %v1096_v18  ;;  %v4330_v57 = vpop.f32.mrf.mxu1  ;;  %v4342_v44 = vpop.f32.mrf.mxu0 }
 0x270   : > { %4993 = vst [vmem:[#allocation47_spill] sm:$0xff] %v4342_v44  ;;  %v2242_v44 = vld [vmem:[#allocation2 + $0x121] sm:$0xff] }
 0x271   : > { %3286 = vmatmul.msk.f32.vlgmr.msra.gmra.mxu2 %vm182_vm0, %v1945_v25  ;;  %3329 = vmatmul.msk.f32.gmra.mxu3 %vm182_vm0, %v2230_v39  ;;  %v1946_v39 = vld [vmem:[#allocation2 + $0x38] sm:$0xff] }
 0x272   : > { %3259 = vmatmul.msk.f32.gmra.mxu1 %vm182_vm0, %v3921_v15  ;;  %3372 = vmatmul.msk.f32.gmra.mxu0 %vm182_vm0, %v4100_v16  ;;  %v2231_v25 = vld [vmem:[#allocation2 + $0x99] sm:$0xff] }
 0x274   : > { %v1033_v54 = vpop.f32.mrf.mxu2  ;;  %v4340_v27 = vpop.f32.mrf.mxu3 }
 0x275   : > { %v1097_v24 = vadd.f32 %v1033_v54, %v789_v31 }
 0x277   : > { %v4345_v26 = vadd.f32 %v4187_v49, %v1097_v24  ;;  %v4347_v18 = vpop.f32.mrf.mxu1  ;;  %v4359_v31 = vpop.f32.mrf.mxu0 }
 0x278   : > { %4994 = vst [vmem:[#allocation48_spill] sm:$0xff] %v4359_v31 }
 0x279   : > { %3287 = vmatmul.msk.f32.gmra.mxu2 %vm182_vm0, %v1946_v39  ;;  %3330 = vmatmul.msk.f32.gmra.mxu3 %vm182_vm0, %v2231_v25  ;;  %v1947_v39 = vld [vmem:[#allocation2 + $0x48] sm:$0xff] }
 0x27a   : > { %3260 = vmatmul.msk.f32.gmra.mxu1 %vm182_vm0, %v3938_v36  ;;  %3373 = vmatmul.msk.f32.gmra.mxu0 %vm182_vm0, %v4119_v21  ;;  %v2232_v25 = vld [vmem:[#allocation2 + $0xa9] sm:$0xff] }
 0x27c   : > { %v1036_v15 = vpop.f32.mrf.mxu2  ;;  %v4357_v32 = vpop.f32.mrf.mxu3 }
 0x27d   : > { %v1098_v49 = vadd.f32 %v1036_v15, %v792_v45 }
 0x27f   : > { %v4362_v54 = vadd.f32 %v4207_v0, %v1098_v49  ;;  %v4364_v24 = vpop.f32.mrf.mxu1  ;;  %v1948_v49 = vld [vmem:[#allocation2 + $0x50] sm:$0xff] }
 0x281   : > { %3288 = vmatmul.msk.f32.gmra.mxu2 %vm182_vm0, %v1947_v39  ;;  %3331 = vmatmul.msk.f32.gmra.mxu3 %vm182_vm0, %v2232_v25  ;;  %v2233_v39 = vld [vmem:[#allocation2 + $0xb1] sm:$0xff]  ;;  %v4381_v25 = vpop.f32.mrf.mxu0 }
 0x282   : > { %3261 = vmatmul.msk.f32.gmra.mxu1 %vm182_vm0, %v3954_v35  ;;  %3374 = vmatmul.msk.f32.gmra.mxu0 %vm182_vm0, %v4138_v50  ;;  %4995 = vst [vmem:[#allocation49_spill] sm:$0xff] %v4381_v25  ;;  %v4996_v35 = vld [vmem:[#allocation22_spill] sm:$0xff] }
 0x283   : > { %v798_v55 = vadd.f32 %v4232_v17, %v4996_v35  ;;  %v2235_v25 = vld [vmem:[#allocation2 + $0xc9] sm:$0xff] }
 0x284   : > { %v1039_v36 = vpop.f32.mrf.mxu2  ;;  %v4374_v48 = vpop.f32.mrf.mxu3 }
 0x285   : > { %v1099_v0 = vadd.f32 %v1039_v36, %v795_v51 }
 0x287   : > { %v4377_v45 = vadd.f32 %v4227_v23, %v1099_v0  ;;  %v4379_v15 = vpop.f32.mrf.mxu1 }
 0x289   : > { %3289 = vmatmul.msk.f32.gmra.mxu2 %vm182_vm0, %v1948_v49  ;;  %3332 = vmatmul.msk.f32.gmra.mxu3 %vm182_vm0, %v2233_v39  ;;  %v1949_v49 = vld [vmem:[#allocation2 + $0x60] sm:$0xff]  ;;  %v4406_v35 = vpop.f32.mrf.mxu0 }
 0x28a   : > { %3262 = vmatmul.msk.f32.gmra.mxu1 %vm182_vm0, %v3973_v22  ;;  %3375 = vmatmul.msk.f32.gmra.mxu0 %vm182_vm0, %v4157_v43  ;;  %v2234_v39 = vld [vmem:[#allocation2 + $0xc1] sm:$0xff]  ;;  %v4997_v22 = vld [vmem:[#allocation23_spill] sm:$0xff]  ;;  %4998 = vst [vmem:[#allocation22_spill] sm:$0xff] %v4406_v35  ;;  %v2236_v35 = vld [vmem:[#allocation2 + $0xd9] sm:$0xff] }
 0x28b   : > { %v801_v17 = vadd.f32 %v4252_v7, %v4997_v22 }
 0x28c   : > { %v1042_v20 = vpop.f32.mrf.mxu2  ;;  %v4391_v23 = vpop.f32.mrf.mxu3 }
 0x28d   : > { %v1100_v51 = vadd.f32 %v1042_v20, %v798_v55 }
 0x28f   : > { %v4394_v36 = vadd.f32 %v4245_v56, %v1100_v51  ;;  %v4396_v0 = vpop.f32.mrf.mxu1 }
 0x291   : > { %3290 = vmatmul.msk.f32.gmra.mxu2 %vm182_vm0, %v1949_v49  ;;  %3333 = vmatmul.msk.f32.gmra.mxu3 %vm182_vm0, %v2234_v39  ;;  %v1950_v39 = vld [vmem:[#allocation2 + $0x68] sm:$0xff] }
 0x292   : > { %3263 = vmatmul.msk.f32.gmra.mxu1 %vm182_vm0, %v3989_v63  ;;  %3376 = vmatmul.msk.f32.gmra.mxu0 %vm182_vm0, %v4176_v6  ;;  %v4999_v63 = vld [vmem:[#allocation25_spill] sm:$0xff] }
 0x293   : > { %v804_v7 = vadd.f32 %v4272_v58, %v4999_v63 }
 0x294   : > { %v1045_v56 = vpop.f32.mrf.mxu2  ;;  %v4408_v55 = vpop.f32.mrf.mxu3 }
 0x295   : > { %v1101_v20 = vadd.f32 %v1045_v56, %v801_v17  ;;  %v4425_v17 = vpop.f32.mrf.mxu0 }
 0x296   : > { %5000 = vst [vmem:[#allocation23_spill] sm:$0xff] %v4425_v17  ;;  %v2237_v17 = vld [vmem:[#allocation2 + $0xe1] sm:$0xff] }
 0x297   : > { %v4411_v51 = vadd.f32 %v4265_v34, %v1101_v20  ;;  %v4413_v49 = vpop.f32.mrf.mxu1 }
 0x299   : > { %3291 = vmatmul.msk.f32.gmra.mxu2 %vm182_vm0, %v1950_v39  ;;  %3334 = vmatmul.msk.f32.gmra.mxu3 %vm182_vm0, %v2235_v25  ;;  %v1951_v25 = vld [vmem:[#allocation2 + $0x78] sm:$0xff] }
 0x29a   : > { %3264 = vmatmul.msk.f32.gmra.mxu1 %vm182_vm0, %v4002_v37  ;;  %3377 = vmatmul.msk.f32.gmra.mxu0 %vm182_vm0, %v4194_v38  ;;  %v5001_v37 = vld [vmem:[#allocation27_spill] sm:$0xff] }
 0x29b   : > { %v807_v58 = vadd.f32 %v4290_v62, %v5001_v37 }
 0x29c   : > { %v1048_v22 = vpop.f32.mrf.mxu2  ;;  %v4423_v34 = vpop.f32.mrf.mxu3 }
 0x29d   : > { %v1102_v56 = vadd.f32 %v1048_v22, %v804_v7  ;;  %v4442_v22 = vpop.f32.mrf.mxu0 }
 0x29f   : > { %v4428_v20 = vadd.f32 %v4285_v60, %v1102_v56  ;;  %v4430_v39 = vpop.f32.mrf.mxu1 }
 0x2a1   : > { %3292 = vmatmul.msk.f32.gmra.mxu2 %vm182_vm0, %v1951_v25  ;;  %3335 = vmatmul.msk.f32.gmra.mxu3 %vm182_vm0, %v2236_v35  ;;  %v1952_v35 = vld [vmem:[#allocation2 + $0x80] sm:$0xff] }
 0x2a2   : > { %3265 = vmatmul.msk.f32.gmra.mxu1 %vm182_vm0, %v4017_v9  ;;  %3378 = vmatmul.msk.f32.gmra.mxu0 %vm182_vm0, %v4214_v42  ;;  %v5002_v9 = vld [vmem:[#allocation29_spill] sm:$0xff] }
 0x2a3   : > { %v810_v62 = vadd.f32 %v4310_v2, %v5002_v9  ;;  %v5003_v2 = vld [vmem:[#allocation4_spill] sm:$0xff] }
 0x2a4   : > { %v1051_v63 = vpop.f32.mrf.mxu2  ;;  %v4440_v60 = vpop.f32.mrf.mxu3 }
 0x2a5   : > { %v1103_v7 = vadd.f32 %v1051_v63, %v807_v58  ;;  %v4462_v31 = vpop.f32.mrf.mxu0 }
 0x2a7   : > { %v4445_v56 = vadd.f32 %v4305_v8, %v1103_v7  ;;  %v4447_v25 = vpop.f32.mrf.mxu1  ;;  %v1953_v7 = vld [vmem:[#allocation2 + $0x90] sm:$0xff] }
 0x2a9   : > { %3293 = vmatmul.msk.f32.gmra.mxu2 %vm182_vm0, %v1952_v35  ;;  %3336 = vmatmul.msk.f32.gmra.mxu3 %vm182_vm0, %v2237_v17  ;;  %v2238_v35 = vld [vmem:[#allocation2 + $0xf1] sm:$0xff] }
 0x2aa   : > { %3266 = vmatmul.msk.f32.gmra.mxu1 %vm182_vm0, %v4036_v10  ;;  %3379 = vmatmul.msk.f32.gmra.mxu0 %vm182_vm0, %v4234_v30 }
 0x2ac   : > { %v1054_v37 = vpop.f32.mrf.mxu2  ;;  %v4457_v58 = vpop.f32.mrf.mxu3 }
 0x2ad   : > { %v1104_v8 = vadd.f32 %v1054_v37, %v810_v62 }
 0x2af   : > { %v4460_v63 = vadd.f32 %v4325_v47, %v1104_v8  ;;  %v4466_v10 = vpop.f32.mrf.mxu1  ;;  %v813_v47 = vadd.f32 %v4330_v57, %v5003_v2  ;;  %v1954_v8 = vld [vmem:[#allocation2 + $0x98] sm:$0xff] }
 0x2b1   : > { %3294 = vmatmul.msk.f32.gmra.mxu2 %vm182_vm0, %v1953_v7  ;;  %3337 = vmatmul.msk.f32.gmra.mxu3 %vm182_vm0, %v2238_v35  ;;  %v2239_v7 = vld [vmem:[#allocation2 + $0xf9] sm:$0xff]  ;;  %v4487_v35 = vpop.f32.mrf.mxu0 }
 0x2b2   : > { %3267 = vmatmul.msk.f32.gmra.mxu1 %vm182_vm0, %v4055_v5  ;;  %3380 = vmatmul.msk.f32.gmra.mxu0 %vm182_vm0, %v4254_v13  ;;  %v5004_v5 = vld [vmem:[#allocation6_spill] sm:$0xff] }
 0x2b3   : > { %v816_v57 = vadd.f32 %v4347_v18, %v5004_v5  ;;  %v5005_v18 = vld [vmem:[#allocation8_spill] sm:$0xff] }
 0x2b4   : > { %v1057_v17 = vpop.f32.mrf.mxu2  ;;  %v4477_v37 = vpop.f32.mrf.mxu3 }
 0x2b5   : > { %v1105_v9 = vadd.f32 %v1057_v17, %v813_v47 }
 0x2b7   : > { %v4475_v62 = vadd.f32 %v4340_v27, %v1105_v9  ;;  %v4489_v27 = vpop.f32.mrf.mxu1  ;;  %v1955_v9 = vld [vmem:[#allocation2 + $0xa8] sm:$0xff] }
 0x2b9   : > { %3295 = vmatmul.msk.f32.gmra.mxu2 %vm182_vm0, %v1954_v8  ;;  %3338 = vmatmul.msk.f32.gmra.mxu3 %vm182_vm0, %v2239_v7  ;;  %v2240_v8 = vld [vmem:[#allocation2 + $0x109] sm:$0xff]  ;;  %v819_v7 = vadd.f32 %v4364_v24, %v5005_v18 }
 0x2ba   : > { %3268 = vmatmul.msk.f32.gmra.mxu1 %vm182_vm0, %v4083_v3  ;;  %3381 = vmatmul.msk.f32.gmra.mxu0 %vm182_vm0, %v4274_v19 }
 0x2bc   : > { %v1060_v2 = vpop.f32.mrf.mxu2  ;;  %v4496_v3 = vpop.f32.mrf.mxu3 }
 0x2bd   : > { %v1106_v47 = vadd.f32 %v1060_v2, %v816_v57  ;;  %v4504_v57 = vpop.f32.mrf.mxu0 }
 0x2bf   : > { %v4492_v17 = vadd.f32 %v4357_v32, %v1106_v47  ;;  %v4506_v2 = vpop.f32.mrf.mxu1 }
 0x2c1   : > { %3296 = vmatmul.msk.f32.gmra.mxu2 %vm182_vm0, %v1955_v9  ;;  %3339 = vmatmul.msk.f32.gmra.mxu3 %vm182_vm0, %v2240_v8  ;;  %v1956_v9 = vld [vmem:[#allocation2 + $0xb0] sm:$0xff] }
 0x2c2   : > { %3269 = vmatmul.msk.f32.gmra.mxu1 %vm182_vm0, %v4100_v16  ;;  %3382 = vmatmul.msk.f32.gmra.mxu0 %vm182_vm0, %v4292_v12  ;;  %v2241_v8 = vld [vmem:[#allocation2 + $0x111] sm:$0xff]  ;;  %v5006_v16 = vld [vmem:[#allocation10_spill] sm:$0xff] }
 0x2c3   : > { %v822_v24 = vadd.f32 %v4379_v15, %v5006_v16  ;;  %v5008_v15 = vld [vmem:[#allocation12_spill] sm:$0xff] }
 0x2c4   : > { %v1063_v5 = vpop.f32.mrf.mxu2  ;;  %v4519_v18 = vpop.f32.mrf.mxu3 }
 0x2c5   : > { %v1107_v32 = vadd.f32 %v1063_v5, %v819_v7 }
 0x2c7   : > { %v4509_v47 = vadd.f32 %v4374_v48, %v1107_v32  ;;  %v4524_v32 = vpop.f32.mrf.mxu0 }
 0x2c9   : > { %3297 = vmatmul.msk.f32.gmra.mxu2 %vm182_vm0, %v1956_v9  ;;  %3340 = vmatmul.msk.f32.gmra.mxu3 %vm182_vm0, %v2241_v8  ;;  %v4526_v9 = vpop.f32.mrf.mxu1  ;;  %v1957_v8 = vld [vmem:[#allocation2 + $0xc0] sm:$0xff] }
 0x2ca   : > { %3270 = vmatmul.msk.f32.gmra.mxu1 %vm182_vm0, %v4119_v21  ;;  %3383 = vmatmul.msk.f32.gmra.mxu0 %vm182_vm0, %v4312_v4  ;;  %v4530_v21 = vld [vmem:[#allocation2 + $0x182] sm:$0xff] }
 0x2cc   : > { %v1066_v7 = vpop.f32.mrf.mxu2 }
 0x2cd   : > { %v1108_v48 = vadd.f32 %v1066_v7, %v822_v24  ;;  %v4538_v7 = vpop.f32.mrf.mxu3 }
 0x2cf   : > { %v4522_v5 = vadd.f32 %v4391_v23, %v1108_v48  ;;  %v825_v23 = vadd.f32 %v4396_v0, %v5008_v15  ;;  %v5010_v0 = vld [vmem:[#allocation14_spill] sm:$0xff] }
 0x2d1   : > { %5007 = vst [vmem:[#allocation25_spill] sm:$0xff] %v4522_v5  ;;  %3298 = vmatmul.msk.f32.gmra.mxu2 %vm182_vm0, %v1957_v8  ;;  %3341 = vmatmul.msk.f32.gmra.mxu3 %vm182_vm0, %v2242_v44  ;;  %v1958_v8 = vld [vmem:[#allocation2 + $0xc8] sm:$0xff]  ;;  %v4547_v5 = vpop.f32.mrf.mxu0  ;;  %v4549_v41 = vpop.f32.mrf.mxu1 }
 0x2d2   : > { %3271 = vmatmul.msk.f32.gmra.mxu1 %vm182_vm0, %v4138_v50  ;;  %3384 = vmatmul.msk.f32.gmra.mxu0 %vm182_vm0, %v4530_v21  ;;  %v2243_v44 = vld [vmem:[#allocation2 + $0x129] sm:$0xff] }
 0x2d3   : > { %v4545_v50 = vld [vmem:[#allocation2 + $0x18a] sm:$0xff] }
 0x2d4   : > { %v1069_v16 = vpop.f32.mrf.mxu2 }
 0x2d5   : > { %v1109_v24 = vadd.f32 %v1069_v16, %v825_v23 }
 0x2d7   : > { %v4541_v48 = vadd.f32 %v4408_v55, %v1109_v24  ;;  %v828_v55 = vadd.f32 %v4413_v49, %v5010_v0  ;;  %v4560_v24 = vpop.f32.mrf.mxu3 }
 0x2d9   : > { %5009 = vst [vmem:[#allocation27_spill] sm:$0xff] %v4541_v48  ;;  %3299 = vmatmul.msk.f32.gmra.mxu2 %vm182_vm0, %v1958_v8  ;;  %3342 = vmatmul.msk.f32.gmra.mxu3 %vm182_vm0, %v2243_v44  ;;  %v1959_v8 = vld [vmem:[#allocation2 + $0xd8] sm:$0xff]  ;;  %v4568_v49 = vpop.f32.mrf.mxu1 }
 0x2da   : > { %3272 = vmatmul.msk.f32.gmra.mxu1 %vm182_vm0, %v4157_v43  ;;  %3385 = vmatmul.msk.f32.gmra.mxu0 %vm182_vm0, %v4545_v50  ;;  %v2244_v44 = vld [vmem:[#allocation2 + $0x139] sm:$0xff] }
 0x2db   : > { %v5012_v43 = vld [vmem:[#allocation16_spill] sm:$0xff] }
 0x2dc   : > { %v1072_v15 = vpop.f32.mrf.mxu2  ;;  %v831_v48 = vadd.f32 %v4430_v39, %v5012_v43 }
 0x2dd   : > { %v1110_v23 = vadd.f32 %v1072_v15, %v828_v55  ;;  %v1960_v15 = vld [vmem:[#allocation2 + $0xe0] sm:$0xff] }
 0x2df   : > { %v4558_v16 = vadd.f32 %v4423_v34, %v1110_v23  ;;  %v2245_v23 = vld [vmem:[#allocation2 + $0x141] sm:$0xff] }
 0x2e1   : > { %5011 = vst [vmem:[#allocation29_spill] sm:$0xff] %v4558_v16  ;;  %3300 = vmatmul.msk.f32.gmra.mxu2 %vm182_vm0, %v1959_v8  ;;  %3343 = vmatmul.msk.f32.gmra.mxu3 %vm182_vm0, %v2244_v44  ;;  %v4575_v8 = vpop.f32.mrf.mxu3  ;;  %v4581_v43 = vpop.f32.mrf.mxu1 }
 0x2e2   : > { %3273 = vmatmul.msk.f32.gmra.mxu1 %vm182_vm0, %v4176_v6  ;;  %v5014_v6 = vld [vmem:[#allocation17_spill] sm:$0xff] }
 0x2e3   : > { %v834_v39 = vadd.f32 %v4447_v25, %v5014_v6 }
 0x2e4   : > { %v1075_v0 = vpop.f32.mrf.mxu2 }
 0x2e5   : > { %v1111_v55 = vadd.f32 %v1075_v0, %v831_v48  ;;  %v1961_v0 = vld [vmem:[#allocation2 + $0xf0] sm:$0xff] }
 0x2e7   : > { %v4571_v34 = vadd.f32 %v4440_v60, %v1111_v55  ;;  %v2246_v55 = vld [vmem:[#allocation2 + $0x151] sm:$0xff] }
 0x2e9   : > { %5013 = vst [vmem:[#allocation4_spill] sm:$0xff] %v4571_v34  ;;  %3301 = vmatmul.msk.f32.gmra.mxu2 %vm182_vm0, %v1960_v15  ;;  %3344 = vmatmul.msk.f32.gmra.mxu3 %vm182_vm0, %v2245_v23  ;;  %v5016_v15 = vld [vmem:[#allocation31_spill] sm:$0xff]  ;;  %v4593_v25 = vpop.f32.mrf.mxu3 }
 0x2ea   : > { %3274 = vmatmul.msk.f32.gmra.mxu1 %vm182_vm0, %v4194_v38  ;;  %v5017_v23 = vld [vmem:[#allocation3_spill] sm:$0xff] }
 0x2eb   : > { %v1635_v34 = vadd.f32 %v5017_v23, %v5016_v15 }
 0x2ec   : > { %v1078_v44 = vpop.f32.mrf.mxu2 }
 0x2ed   : > { %v1112_v48 = vadd.f32 %v1078_v44, %v834_v39  ;;  %v1912_v38 = vadd.f32 %v4466_v10, %v1635_v34  ;;  %v4596_v39 = vpop.f32.mrf.mxu0  ;;  %v5018_v10 = vld [vmem:[#allocation33_spill] sm:$0xff] }
 0x2ee   : > { %v5019_v34 = vld [vmem:[#allocation5_spill] sm:$0xff] }
 0x2ef   : > { %v4584_v60 = vadd.f32 %v4457_v58, %v1112_v48  ;;  %v4599_v48 = vpop.f32.mrf.mxu1 }
 0x2f1   : > { %5015 = vst [vmem:[#allocation6_spill] sm:$0xff] %v4584_v60  ;;  %3302 = vmatmul.msk.f32.gmra.mxu2 %vm182_vm0, %v1961_v0  ;;  %3345 = vmatmul.msk.f32.gmra.mxu3 %vm182_vm0, %v2246_v55  ;;  %v2247_v0 = vld [vmem:[#allocation2 + $0x159] sm:$0xff]  ;;  %v1636_v55 = vadd.f32 %v5019_v34, %v5018_v10 }
 0x2f2   : > { %3275 = vmatmul.msk.f32.gmra.mxu1 %vm182_vm0, %v4214_v42  ;;  %v1962_v42 = vld [vmem:[#allocation2 + $0xf8] sm:$0xff]  ;;  %v5022_v60 = vld [vmem:[#allocation9_spill] sm:$0xff] }
 0x2f4   : > { %v2094_v6 = vpop.f32.mrf.mxu2 }
 0x2f5   : > { %v2190_v58 = vadd.f32 %v2094_v6, %v1912_v38  ;;  %v4616_v6 = vpop.f32.mrf.mxu3  ;;  %v4619_v10 = vpop.f32.mrf.mxu0 }
 0x2f7   : > { %v2467_v44 = vadd.f32 %v4477_v37, %v2190_v58  ;;  %v1913_v37 = vadd.f32 %v4489_v27, %v1636_v55  ;;  %v4626_v27 = vpop.f32.mrf.mxu1 }
 0x2f9   : > { %v2744_v15 = vadd.f32 %v4442_v22, %v2467_v44  ;;  %3303 = vmatmul.msk.f32.gmra.mxu2 %vm182_vm0, %v1962_v42  ;;  %3346 = vmatmul.msk.f32.gmra.mxu3 %vm182_vm0, %v2247_v0  ;;  %v1963_v22 = vld [vmem:[#allocation2 + $0x108] sm:$0xff]  ;;  %v5020_v42 = vld [vmem:[#allocation7_spill] sm:$0xff] }
 0x2fa   : > { %3276 = vmatmul.msk.f32.gmra.mxu1 %vm182_vm0, %v4234_v30  ;;  %v2248_v44 = vld [vmem:[#allocation2 + $0x169] sm:$0xff]  ;;  %v1637_v0 = vadd.f32 %v5020_v42, %v4079_v40 }
 0x2fb   : > { %2776 = vst.msk [vmem:[%s4604_s25] sm:$0xff] %vm182_vm0, %v2744_v15  ;;  %v2879_v34 = vmul.f32 %v2744_v15, %v2744_v15  ;;  %v2808_v55 = vsel %vm182_vm0, %v2744_v15, 0.0  ;;  %v2249_v15 = vld [vmem:[#allocation2 + $0x171] sm:$0xff] }
 0x2fc   : > { %v2097_v23 = vpop.f32.mrf.mxu2 }
 0x2fd   : > { %v2191_v38 = vadd.f32 %v2097_v23, %v1913_v37  ;;  %v4638_v42 = vpop.f32.mrf.mxu3 }
 0x2ff   : > { %v2468_v58 = vadd.f32 %v4496_v3, %v2191_v38  ;;  %v1914_v3 = vadd.f32 %v4506_v2, %v1637_v0  ;;  %v2911_v38 = vsel %vm182_vm0, %v2879_v34, 0.0  ;;  %v1964_v2 = vld [vmem:[#allocation2 + $0x110] sm:$0xff]  ;;  %v4645_v34 = vpop.f32.mrf.mxu0 }
 0x300   : > { %v5021_v0 = vld [vmem:[#allocation35_spill] sm:$0xff] }
 0x301   : > { %v2745_v30 = vadd.f32 %v4462_v31, %v2468_v58  ;;  %3304 = vmatmul.msk.f32.gmra.mxu2 %vm182_vm0, %v1963_v22  ;;  %3347 = vmatmul.msk.f32.gmra.mxu3 %vm182_vm0, %v2248_v44  ;;  %v1638_v16 = vadd.f32 %v5022_v60, %v5021_v0 }
 0x302   : > { %3277 = vmatmul.msk.f32.gmra.mxu1 %vm182_vm0, %v4254_v13 }
 0x303   : > { %2777 = vst.msk [vmem:[%s4604_s25 + $0x8] sm:$0xff] %vm182_vm0, %v2745_v30  ;;  %v2809_v40 = vsel %vm182_vm0, %v2745_v30, 0.0  ;;  %v2880_v37 = vmul.f32 %v2745_v30, %v2745_v30 }
 0x304   : > { %v2810_v23 = vadd.f32 %v2809_v40, %v2808_v55  ;;  %v2100_v31 = vpop.f32.mrf.mxu2  ;;  %v4653_v40 = vpop.f32.mrf.mxu1 }
 0x305   : > { %v2912_v58 = vsel %vm182_vm0, %v2880_v37, 0.0  ;;  %v2192_v22 = vadd.f32 %v2100_v31, %v1914_v3 }
 0x306   : > { %v2913_v44 = vadd.f32 %v2912_v58, %v2911_v38 }
 0x307   : > { %v2469_v13 = vadd.f32 %v4519_v18, %v2192_v22  ;;  %v1915_v18 = vadd.f32 %v4526_v9, %v1638_v16  ;;  %v1965_v22 = vld [vmem:[#allocation2 + $0x120] sm:$0xff]  ;;  %v5024_v9 = vld [vmem:[#allocation11_spill] sm:$0xff]  ;;  %v4670_v0 = vpop.f32.mrf.mxu0 }
 0x309   : > { %v2746_v30 = vadd.f32 %v4487_v35, %v2469_v13  ;;  %3305 = vmatmul.msk.f32.gmra.mxu2 %vm182_vm0, %v1964_v2  ;;  %3348 = vmatmul.msk.f32.gmra.mxu3 %vm182_vm0, %v2249_v15  ;;  %v5023_v13 = vld [vmem:[#allocation37_spill] sm:$0xff]  ;;  %v4662_v15 = vpop.f32.mrf.mxu3 }
 0x30a   : > { %3278 = vmatmul.msk.f32.gmra.mxu1 %vm182_vm0, %v4274_v19  ;;  %v2250_v19 = vld [vmem:[#allocation2 + $0x181] sm:$0xff]  ;;  %v1639_v16 = vadd.f32 %v5024_v9, %v5023_v13 }
 0x30b   : > { %2778 = vst.msk [vmem:[%s4604_s25 + $0x10] sm:$0xff] %vm182_vm0, %v2746_v30  ;;  %v2811_v3 = vsel %vm182_vm0, %v2746_v30, 0.0  ;;  %v2881_v55 = vmul.f32 %v2746_v30, %v2746_v30 }
 0x30c   : > { %v2812_v35 = vadd.f32 %v2811_v3, %v2810_v23  ;;  %v2103_v60 = vpop.f32.mrf.mxu2  ;;  %v1916_v23 = vadd.f32 %v4549_v41, %v1639_v16  ;;  %v2251_v41 = vld [vmem:[#allocation2 + $0x189] sm:$0xff] }
 0x30d   : > { %v2914_v37 = vsel %vm182_vm0, %v2881_v55, 0.0  ;;  %v2193_v31 = vadd.f32 %v2103_v60, %v1915_v18  ;;  %v4673_v55 = vpop.f32.mrf.mxu1 }
 0x30e   : > { %v2915_v38 = vadd.f32 %v2914_v37, %v2913_v44  ;;  %v1966_v37 = vld [vmem:[#allocation2 + $0x128] sm:$0xff] }
 0x30f   : > { %v2470_v58 = vadd.f32 %v4538_v7, %v2193_v31  ;;  %v5025_v31 = vld [vmem:[#allocation13_spill] sm:$0xff]  ;;  %v4690_v16 = vpop.f32.mrf.mxu0 }
 0x311   : > { %v2747_v2 = vadd.f32 %v4504_v57, %v2470_v58  ;;  %3306 = vmatmul.msk.f32.gmra.mxu2 %vm182_vm0, %v1965_v22  ;;  %3349 = vmatmul.msk.f32.gmra.mxu3 %vm182_vm0, %v2250_v19  ;;  %v1640_v58 = vadd.f32 %v5025_v31, %v4134_v59  ;;  %v4687_v19 = vpop.f32.mrf.mxu3 }
 0x312   : > { %3279 = vmatmul.msk.f32.gmra.mxu1 %vm182_vm0, %v4292_v12 }
 0x313   : > { %2779 = vst.msk [vmem:[%s4604_s25 + $0x18] sm:$0xff] %vm182_vm0, %v2747_v2  ;;  %v2813_v7 = vsel %vm182_vm0, %v2747_v2, 0.0  ;;  %v2882_v44 = vmul.f32 %v2747_v2, %v2747_v2 }
 0x314   : > { %v2814_v57 = vadd.f32 %v2813_v7, %v2812_v35  ;;  %v2106_v30 = vpop.f32.mrf.mxu2  ;;  %v1917_v35 = vadd.f32 %v4568_v49, %v1640_v58  ;;  %v1967_v49 = vld [vmem:[#allocation2 + $0x138] sm:$0xff]  ;;  %v5026_v7 = vld [vmem:[#allocation15_spill] sm:$0xff] }
 0x315   : > { %v2916_v18 = vsel %vm182_vm0, %v2882_v44, 0.0  ;;  %v2194_v3 = vadd.f32 %v2106_v30, %v1916_v23  ;;  %v4693_v23 = vpop.f32.mrf.mxu1  ;;  %v1641_v44 = vadd.f32 %v5026_v7, %v4153_v29 }
 0x316   : > { %v2917_v60 = vadd.f32 %v2916_v18, %v2915_v38 }
 0x317   : > { %v2471_v12 = vadd.f32 %v4560_v24, %v2194_v3  ;;  %v4709_v31 = vpop.f32.mrf.mxu0 }
 0x319   : > { %v2748_v22 = vadd.f32 %v4524_v32, %v2471_v12  ;;  %3307 = vmatmul.msk.f32.gmra.mxu2 %vm182_vm0, %v1966_v37  ;;  %3350 = vmatmul.msk.f32.gmra.mxu3 %vm182_vm0, %v2251_v41  ;;  %v4706_v37 = vpop.f32.mrf.mxu3 }
 0x31a   : > { %3280 = vmatmul.msk.f32.gmra.mxu1 %vm182_vm0, %v4312_v4 }
 0x31b   : > { %2780 = vst.msk [vmem:[%s4604_s25 + $0x20] sm:$0xff] %vm182_vm0, %v2748_v22  ;;  %v2815_v24 = vsel %vm182_vm0, %v2748_v22, 0.0  ;;  %v2883_v38 = vmul.f32 %v2748_v22, %v2748_v22 }
 0x31c   : > { %v2816_v59 = vadd.f32 %v2815_v24, %v2814_v57  ;;  %v2109_v13 = vpop.f32.mrf.mxu2  ;;  %v1918_v57 = vadd.f32 %v4581_v43, %v1641_v44  ;;  %v5027_v43 = vld [vmem:[#allocation18_spill] sm:$0xff] }
 0x31d   : > { %v2918_v32 = vsel %vm182_vm0, %v2883_v38, 0.0  ;;  %v2195_v9 = vadd.f32 %v2109_v13, %v1917_v35  ;;  %v1642_v58 = vadd.f32 %v5027_v43, %v4172_v28  ;;  %v4715_v35 = vpop.f32.mrf.mxu1 }
 0x31e   : > { %v2919_v2 = vadd.f32 %v2918_v32, %v2917_v60 }
 0x31f   : > { %v2472_v4 = vadd.f32 %v4575_v8, %v2195_v9  ;;  %v1919_v24 = vadd.f32 %v4599_v48, %v1642_v58  ;;  %v4731_v7 = vpop.f32.mrf.mxu0 }
 0x321   : > { %v2749_v30 = vadd.f32 %v4547_v5, %v2472_v4  ;;  %3308 = vmatmul.msk.f32.gmra.mxu2 %vm182_vm0, %v1967_v49  ;;  %v1969_v4 = vld [vmem:[#allocation2 + $0x150] sm:$0xff] }
 0x322   : > { %3281 = vmatmul.msk.f32.gmra.mxu1 %vm182_vm0, %v4530_v21  ;;  %v1968_v21 = vld [vmem:[#allocation2 + $0x140] sm:$0xff] }
 0x323   : > { %2781 = vst.msk [vmem:[%s4604_s25 + $0x28] sm:$0xff] %vm182_vm0, %v2749_v30  ;;  %v2817_v18 = vsel %vm182_vm0, %v2749_v30, 0.0  ;;  %v2884_v8 = vmul.f32 %v2749_v30, %v2749_v30 }
 0x324   : > { %v2818_v3 = vadd.f32 %v2817_v18, %v2816_v59  ;;  %v2112_v60 = vpop.f32.mrf.mxu2 }
 0x325   : > { %v2920_v12 = vsel %vm182_vm0, %v2884_v8, 0.0  ;;  %v2196_v29 = vadd.f32 %v2112_v60, %v1918_v57  ;;  %v4737_v57 = vpop.f32.mrf.mxu1 }
 0x326   : > { %v2921_v5 = vadd.f32 %v2920_v12, %v2919_v2  ;;  %v4725_v2 = vpop.f32.mrf.mxu3  ;;  %v1970_v12 = vld [vmem:[#allocation2 + $0x158] sm:$0xff] }
 0x327   : > { %v2473_v41 = vadd.f32 %v4593_v25, %v2196_v29  ;;  %v5029_v29 = vld [vmem:[#allocation20_spill] sm:$0xff] }
 0x329   : > { %v2750_v22 = vadd.f32 %v4596_v39, %v2473_v41  ;;  %3309 = vmatmul.msk.f32.gmra.mxu2 %vm182_vm0, %v1968_v21 }
 0x32a   : > { %3282 = vmatmul.msk.f32.gmra.mxu1 %vm182_vm0, %v4545_v50  ;;  %v5028_v50 = vld [vmem:[#allocation19_spill] sm:$0xff] }
 0x32b   : > { %2782 = vst.msk [vmem:[%s4604_s25 + $0x30] sm:$0xff] %vm182_vm0, %v2750_v22  ;;  %v2819_v25 = vsel %vm182_vm0, %v2750_v22, 0.0  ;;  %v2885_v38 = vmul.f32 %v2750_v22, %v2750_v22  ;;  %v1643_v48 = vadd.f32 %v5028_v50, %v4190_v1  ;;  %v4751_v22 = vpop.f32.mrf.mxu0 }
 0x32c   : > { %v2820_v59 = vadd.f32 %v2819_v25, %v2818_v3  ;;  %v2115_v13 = vpop.f32.mrf.mxu2 }
 0x32d   : > { %v2922_v28 = vsel %vm182_vm0, %v2885_v38, 0.0  ;;  %v2197_v39 = vadd.f32 %v2115_v13, %v1919_v24  ;;  %v1920_v44 = vadd.f32 %v4626_v27, %v1643_v48  ;;  %v1644_v27 = vadd.f32 %v5029_v29, %v4210_v46  ;;  %v1971_v13 = vld [vmem:[#allocation2 + $0x168] sm:$0xff] }
 0x32e   : > { %v2923_v32 = vadd.f32 %v2922_v28, %v2921_v5  ;;  %v4745_v41 = vpop.f32.mrf.mxu3 }
 0x32f   : > { %v2474_v9 = vadd.f32 %v4616_v6, %v2197_v39  ;;  %v1921_v21 = vadd.f32 %v4653_v40, %v1644_v27  ;;  %v5030_v40 = vld [vmem:[#allocation21_spill] sm:$0xff] }
 0x330   : > { %v1645_v28 = vadd.f32 %v5030_v40, %v4230_v61 }
 0x331   : > { %v2751_v49 = vadd.f32 %v4619_v10, %v2474_v9  ;;  %3310 = vmatmul.msk.f32.gmra.mxu2 %vm182_vm0, %v1969_v4 }
 0x333   : > { %2783 = vst.msk [vmem:[%s4604_s25 + $0x38] sm:$0xff] %vm182_vm0, %v2751_v49  ;;  %v2821_v30 = vsel %vm182_vm0, %v2751_v49, 0.0  ;;  %v2886_v6 = vmul.f32 %v2751_v49, %v2751_v49  ;;  %v4768_v61 = vpop.f32.mrf.mxu0 }
 0x334   : > { %v2822_v18 = vadd.f32 %v2821_v30, %v2820_v59  ;;  %v2118_v8 = vpop.f32.mrf.mxu2  ;;  %v2252_v30 = vld [vmem:[#allocation2 + $0x199] sm:$0xff] }
 0x335   : > { %v2924_v1 = vsel %vm182_vm0, %v2886_v6, 0.0  ;;  %v2198_v3 = vadd.f32 %v2118_v8, %v1920_v44  ;;  %3351 = vmatmul.msk.f32.gmra.mxu3 %vm182_vm0, %v2252_v30  ;;  %v5031_v8 = vld [vmem:[#allocation24_spill] sm:$0xff] }
 0x336   : > { %v2925_v10 = vadd.f32 %v2924_v1, %v2923_v32  ;;  %v1922_v32 = vadd.f32 %v4673_v55, %v1645_v28  ;;  %v4765_v50 = vpop.f32.mrf.mxu3  ;;  %v1646_v1 = vadd.f32 %v5031_v8, %v4250_v52 }
 0x337   : > { %v2475_v60 = vadd.f32 %v4638_v42, %v2198_v3 }
 0x339   : > { %v2752_v5 = vadd.f32 %v4645_v34, %v2475_v60  ;;  %3311 = vmatmul.msk.f32.gmra.mxu2 %vm182_vm0, %v1970_v12  ;;  %v4754_v34 = vpop.f32.mrf.mxu1 }
 0x33b   : > { %2784 = vst.msk [vmem:[%s4604_s25 + $0x40] sm:$0xff] %vm182_vm0, %v2752_v5  ;;  %v2823_v43 = vsel %vm182_vm0, %v2752_v5, 0.0  ;;  %v2887_v58 = vmul.f32 %v2752_v5, %v2752_v5 }
 0x33c   : > { %v2824_v42 = vadd.f32 %v2823_v43, %v2822_v18  ;;  %v2121_v24 = vpop.f32.mrf.mxu2  ;;  %v1972_v18 = vld [vmem:[#allocation2 + $0x170] sm:$0xff]  ;;  %v2253_v43 = vld [vmem:[#allocation2 + $0x1a1] sm:$0xff] }
 0x33d   : > { %v2926_v46 = vsel %vm182_vm0, %v2887_v58, 0.0  ;;  %v2199_v25 = vadd.f32 %v2121_v24, %v1921_v21  ;;  %3352 = vmatmul.msk.f32.gmra.mxu3 %vm182_vm0, %v2253_v43  ;;  %v5032_v24 = vld [vmem:[#allocation26_spill] sm:$0xff] }
 0x33e   : > { %v2927_v38 = vadd.f32 %v2926_v46, %v2925_v10  ;;  %v1923_v10 = vadd.f32 %v4693_v23, %v1646_v1  ;;  %v4783_v21 = vpop.f32.mrf.mxu3  ;;  %v4788_v23 = vpop.f32.mrf.mxu0  ;;  %v1647_v46 = vadd.f32 %v5032_v24, %v4270_v14 }
 0x33f   : > { %v2476_v59 = vadd.f32 %v4662_v15, %v2199_v25 }
 0x341   : > { %v2753_v39 = vadd.f32 %v4670_v0, %v2476_v59  ;;  %3312 = vmatmul.msk.f32.gmra.mxu2 %vm182_vm0, %v1971_v13  ;;  %v4772_v55 = vpop.f32.mrf.mxu1  ;;  %v1924_v59 = vadd.f32 %v4715_v35, %v1647_v46  ;;  %v1974_v35 = vld [vmem:[#allocation2 + $0x188] sm:$0xff]  ;;  %v5035_v46 = vld [vmem:[#allocation32_spill] sm:$0xff] }
 0x343   : > { %2785 = vst.msk [vmem:[%s4604_s25 + $0x48] sm:$0xff] %vm182_vm0, %v2753_v39  ;;  %v2825_v9 = vsel %vm182_vm0, %v2753_v39, 0.0  ;;  %v2888_v4 = vmul.f32 %v2753_v39, %v2753_v39 }
 0x344   : > { %v2826_v48 = vadd.f32 %v2825_v9, %v2824_v42  ;;  %v2124_v15 = vpop.f32.mrf.mxu2  ;;  %v1973_v42 = vld [vmem:[#allocation2 + $0x180] sm:$0xff] }
 0x345   : > { %v2928_v49 = vsel %vm182_vm0, %v2888_v4, 0.0  ;;  %v2200_v44 = vadd.f32 %v2124_v15, %v1922_v32  ;;  %v2530_v9 = vld [vmem:[#allocation2 + $0x1a2] sm:$0xff] }
 0x346   : > { %v2929_v0 = vadd.f32 %v2928_v49, %v2927_v38  ;;  %v4803_v4 = vpop.f32.mrf.mxu3 }
 0x347   : > { %v2477_v6 = vadd.f32 %v4687_v19, %v2200_v44  ;;  %v2696_v44 = vpop.f32.mrf.mxu0 }
 0x349   : > { %v2754_v3 = vadd.f32 %v4690_v16, %v2477_v6  ;;  %3313 = vmatmul.msk.f32.gmra.mxu2 %vm182_vm0, %v1972_v18  ;;  %v2529_v16 = vld [vmem:[#allocation2 + $0x19a] sm:$0xff]  ;;  %v4794_v38 = vpop.f32.mrf.mxu1 }
 0x34a   : > { %3386 = vmatmul.msk.f32.gmra.mxu0 %vm182_vm0, %v2529_v16 }
 0x34b   : > { %2786 = vst.msk [vmem:[%s4604_s25 + $0x50] sm:$0xff] %vm182_vm0, %v2754_v3  ;;  %v2827_v60 = vsel %vm182_vm0, %v2754_v3, 0.0  ;;  %v2889_v12 = vmul.f32 %v2754_v3, %v2754_v3 }
 0x34c   : > { %v2828_v19 = vadd.f32 %v2827_v60, %v2826_v48  ;;  %v2127_v29 = vpop.f32.mrf.mxu2  ;;  %v5033_v48 = vld [vmem:[#allocation28_spill] sm:$0xff]  ;;  %v5034_v60 = vld [vmem:[#allocation30_spill] sm:$0xff] }
 0x34d   : > { %v2930_v27 = vsel %vm182_vm0, %v2889_v12, 0.0  ;;  %v2201_v5 = vadd.f32 %v2127_v29, %v1923_v10  ;;  %v1648_v15 = vadd.f32 %v5033_v48, %v4288_v53  ;;  %v1975_v10 = vld [vmem:[#allocation2 + $0x198] sm:$0xff]  ;;  %v1649_v12 = vadd.f32 %v5034_v60, %v4308_v11 }
 0x34e   : > { %v2931_v52 = vadd.f32 %v2930_v27, %v2929_v0 }
 0x34f   : > { %v2478_v58 = vadd.f32 %v4706_v37, %v2201_v5  ;;  %v1925_v0 = vadd.f32 %v4737_v57, %v1648_v15  ;;  %v1926_v29 = vadd.f32 %v4754_v34, %v1649_v12  ;;  %v1650_v34 = vadd.f32 %v5035_v46, %v4328_v33 }
 0x351   : > { %v2755_v25 = vadd.f32 %v4709_v31, %v2478_v58  ;;  %3314 = vmatmul.msk.f32.gmra.mxu2 %vm182_vm0, %v1973_v42  ;;  %v1867_v6 = vpop.f32.mrf.mxu1 }
 0x352   : > { %3387 = vmatmul.msk.f32.gmra.mxu0 %vm182_vm0, %v2530_v9 }
 0x353   : > { %2787 = vst.msk [vmem:[%s4604_s25 + $0x58] sm:$0xff] %vm182_vm0, %v2755_v25  ;;  %v2829_v37 = vsel %vm182_vm0, %v2755_v25, 0.0  ;;  %v2890_v13 = vmul.f32 %v2755_v25, %v2755_v25 }
 0x354   : > { %v2830_v40 = vadd.f32 %v2829_v37, %v2828_v19  ;;  %v2130_v28 = vpop.f32.mrf.mxu2  ;;  %v2422_v19 = vpop.f32.mrf.mxu3 }
 0x355   : > { %v2932_v39 = vsel %vm182_vm0, %v2890_v13, 0.0  ;;  %v2202_v32 = vadd.f32 %v2130_v28, %v1924_v59  ;;  %v1927_v59 = vadd.f32 %v4772_v55, %v1650_v34 }
 0x356   : > { %v2933_v14 = vadd.f32 %v2932_v39, %v2931_v52  ;;  %v2699_v52 = vpop.f32.mrf.mxu0 }
 0x357   : > { %v2479_v31 = vadd.f32 %v4725_v2, %v2202_v32 }
 0x359   : > { %v2756_v49 = vadd.f32 %v4731_v7, %v2479_v31  ;;  %3315 = vmatmul.msk.f32.gmra.mxu2 %vm182_vm0, %v1974_v35  ;;  %v1870_v11 = vpop.f32.mrf.mxu1  ;;  %v5036_v31 = vld [vmem:[#allocation34_spill] sm:$0xff] }
 0x35a   : > { %v1651_v55 = vadd.f32 %v5036_v31, %v4345_v26 }
 0x35b   : > { %2788 = vst.msk [vmem:[%s4604_s25 + $0x60] sm:$0xff] %vm182_vm0, %v2756_v49  ;;  %v2831_v2 = vsel %vm182_vm0, %v2756_v49, 0.0  ;;  %v2891_v30 = vmul.f32 %v2756_v49, %v2756_v49 }
 0x35c   : > { %v2832_v18 = vadd.f32 %v2831_v2, %v2830_v40  ;;  %v2133_v8 = vpop.f32.mrf.mxu2  ;;  %v2425_v40 = vpop.f32.mrf.mxu3  ;;  %v1928_v48 = vadd.f32 %v4794_v38, %v1651_v55 }
 0x35d   : > { %v2934_v1 = vsel %vm182_vm0, %v2891_v30, 0.0  ;;  %v2203_v3 = vadd.f32 %v2133_v8, %v1925_v0 }
 0x35e   : > { %v2935_v53 = vadd.f32 %v2934_v1, %v2933_v14  ;;  %v2702_v14 = vpop.f32.mrf.mxu0 }
 0x35f   : > { %v2480_v7 = vadd.f32 %v4745_v41, %v2203_v3 }
 0x361   : > { %v2757_v57 = vadd.f32 %v4751_v22, %v2480_v7  ;;  %3316 = vmatmul.msk.f32.gmra.mxu2 %vm182_vm0, %v1975_v10  ;;  %v1976_v22 = vld [vmem:[#allocation2 + $0x1a0] sm:$0xff]  ;;  %v1873_v9 = vpop.f32.mrf.mxu1 }
 0x363   : > { %2789 = vst.msk [vmem:[%s4604_s25 + $0x68] sm:$0xff] %vm182_vm0, %v2757_v57  ;;  %v2833_v27 = vsel %vm182_vm0, %v2757_v57, 0.0  ;;  %v2892_v5 = vmul.f32 %v2757_v57, %v2757_v57 }
 0x364   : > { %v2834_v43 = vadd.f32 %v2833_v27, %v2832_v18  ;;  %v2136_v16 = vpop.f32.mrf.mxu2 }
 0x365   : > { %v2936_v41 = vsel %vm182_vm0, %v2892_v5, 0.0  ;;  %v2204_v58 = vadd.f32 %v2136_v16, %v1926_v29  ;;  %v5038_v16 = vld [vmem:[#allocation38_spill] sm:$0xff] }
 0x366   : > { %v2937_v42 = vadd.f32 %v2936_v41, %v2935_v53  ;;  %v2705_v26 = vpop.f32.mrf.mxu0 }
 0x367   : > { %v2481_v24 = vadd.f32 %v4765_v50, %v2204_v58 }
 0x369   : > { %v2758_v25 = vadd.f32 %v4768_v61, %v2481_v24  ;;  %3317 = vmatmul.msk.f32.gmra.mxu2 %vm182_vm0, %v1976_v22  ;;  %v1876_v53 = vpop.f32.mrf.mxu1 }
 0x36b   : > { %2790 = vst.msk [vmem:[%s4604_s25 + $0x70] sm:$0xff] %vm182_vm0, %v2758_v25  ;;  %v2835_v37 = vsel %vm182_vm0, %v2758_v25, 0.0  ;;  %v2893_v13 = vmul.f32 %v2758_v25, %v2758_v25 }
 0x36c   : > { %v2836_v28 = vadd.f32 %v2835_v37, %v2834_v43  ;;  %v2139_v39 = vpop.f32.mrf.mxu2  ;;  %v5039_v37 = vld [vmem:[#allocation39_spill] sm:$0xff] }
 0x36d   : > { %v2938_v50 = vsel %vm182_vm0, %v2893_v13, 0.0  ;;  %v2205_v32 = vadd.f32 %v2139_v39, %v1927_v59 }
 0x36e   : > { %v2939_v33 = vadd.f32 %v2938_v50, %v2937_v42  ;;  %v2708_v41 = vpop.f32.mrf.mxu0 }
 0x36f   : > { %v2482_v61 = vadd.f32 %v4783_v21, %v2205_v32  ;;  %v2428_v21 = vpop.f32.mrf.mxu3 }
 0x371   : > { %v2759_v35 = vadd.f32 %v4788_v23, %v2482_v61  ;;  %v5037_v23 = vld [vmem:[#allocation36_spill] sm:$0xff]  ;;  %v1879_v22 = vpop.f32.mrf.mxu1 }
 0x372   : > { %v1652_v3 = vadd.f32 %v5037_v23, %v4362_v54  ;;  %v1653_v54 = vadd.f32 %v5038_v16, %v4377_v45  ;;  %v1654_v45 = vadd.f32 %v5039_v37, %v4394_v36  ;;  %v5040_v36 = vld [vmem:[#allocation40_spill] sm:$0xff]  ;;  %v5042_v16 = vld [vmem:[#allocation42_spill] sm:$0xff] }
 0x373   : > { %2791 = vst.msk [vmem:[%s4604_s25 + $0x78] sm:$0xff] %vm182_vm0, %v2759_v35  ;;  %v2837_v15 = vsel %vm182_vm0, %v2759_v35, 0.0  ;;  %v2894_v49 = vmul.f32 %v2759_v35, %v2759_v35 }
 0x374   : > { %v2838_v0 = vadd.f32 %v2837_v15, %v2836_v28  ;;  %v2142_v2 = vpop.f32.mrf.mxu2  ;;  %v1929_v10 = vadd.f32 %v1867_v6, %v1652_v3  ;;  %v1930_v6 = vadd.f32 %v1870_v11, %v1653_v54  ;;  %v1931_v11 = vadd.f32 %v1873_v9, %v1654_v45 }
 0x375   : > { %v2940_v30 = vsel %vm182_vm0, %v2894_v49, 0.0  ;;  %v2206_v18 = vadd.f32 %v2142_v2, %v1928_v48 }
 0x376   : > { %v2941_v8 = vadd.f32 %v2940_v30, %v2939_v33  ;;  %v2711_v50 = vpop.f32.mrf.mxu0 }
 0x377   : > { %v2483_v1 = vadd.f32 %v4803_v4, %v2206_v18  ;;  %v2431_v43 = vpop.f32.mrf.mxu3 }
 0x379   : > { %v2760_v38 = vadd.f32 %v2696_v44, %v2483_v1  ;;  %v1882_v55 = vpop.f32.mrf.mxu1 }
 0x37b   : > { %2792 = vst.msk [vmem:[%s4604_s25 + $0x80] sm:$0xff] %vm182_vm0, %v2760_v38  ;;  %v2839_v7 = vsel %vm182_vm0, %v2760_v38, 0.0  ;;  %v2895_v60 = vmul.f32 %v2760_v38, %v2760_v38 }
 0x37c   : > { %v2840_v12 = vadd.f32 %v2839_v7, %v2838_v0  ;;  %v2145_v57 = vpop.f32.mrf.mxu2 }
 0x37d   : > { %v2942_v29 = vsel %vm182_vm0, %v2895_v60, 0.0  ;;  %v2207_v27 = vadd.f32 %v2145_v57, %v1929_v10 }
 0x37e   : > { %v2943_v5 = vadd.f32 %v2942_v29, %v2941_v8  ;;  %v2714_v1 = vpop.f32.mrf.mxu0 }
 0x37f   : > { %v2484_v4 = vadd.f32 %v2422_v19, %v2207_v27  ;;  %v2434_v13 = vpop.f32.mrf.mxu3 }
 0x381   : > { %v2761_v44 = vadd.f32 %v2699_v52, %v2484_v4  ;;  %v1885_v3 = vpop.f32.mrf.mxu1 }
 0x383   : > { %2793 = vst.msk [vmem:[%s4604_s25 + $0x88] sm:$0xff] %vm182_vm0, %v2761_v44  ;;  %v2841_v58 = vsel %vm182_vm0, %v2761_v44, 0.0  ;;  %v2896_v42 = vmul.f32 %v2761_v44, %v2761_v44 }
 0x384   : > { %v2842_v24 = vadd.f32 %v2841_v58, %v2840_v12  ;;  %v2148_v46 = vpop.f32.mrf.mxu2 }
 0x385   : > { %v2944_v34 = vsel %vm182_vm0, %v2896_v42, 0.0  ;;  %v2208_v25 = vadd.f32 %v2148_v46, %v1930_v6 }
 0x386   : > { %v2945_v19 = vadd.f32 %v2944_v34, %v2943_v5 }
 0x387   : > { %v2485_v59 = vadd.f32 %v2425_v40, %v2208_v25  ;;  %v2437_v0 = vpop.f32.mrf.mxu3 }
 0x389   : > { %v2762_v52 = vadd.f32 %v2702_v14, %v2485_v59  ;;  %v1655_v14 = vadd.f32 %v5040_v36, %v4411_v51  ;;  %v5041_v51 = vld [vmem:[#allocation41_spill] sm:$0xff]  ;;  %v1888_v44 = vpop.f32.mrf.mxu1  ;;  %v5043_v59 = vld [vmem:[#allocation43_spill] sm:$0xff] }
 0x38b   : > { %2794 = vst.msk [vmem:[%s4604_s25 + $0x90] sm:$0xff] %vm182_vm0, %v2762_v52  ;;  %v2843_v28 = vsel %vm182_vm0, %v2762_v52, 0.0  ;;  %v2897_v39 = vmul.f32 %v2762_v52, %v2762_v52  ;;  %v1932_v15 = vadd.f32 %v1876_v53, %v1655_v14 }
 0x38c   : > { %v2844_v32 = vadd.f32 %v2843_v28, %v2842_v24  ;;  %v2151_v33 = vpop.f32.mrf.mxu2 }
 0x38d   : > { %v2946_v61 = vsel %vm182_vm0, %v2897_v39, 0.0  ;;  %v2209_v31 = vadd.f32 %v2151_v33, %v1931_v11 }
 0x38e   : > { %v2947_v40 = vadd.f32 %v2946_v61, %v2945_v19 }
 0x38f   : > { %v2486_v35 = vadd.f32 %v2428_v21, %v2209_v31  ;;  %v2440_v27 = vpop.f32.mrf.mxu3 }
 0x391   : > { %v2763_v48 = vadd.f32 %v2705_v26, %v2486_v35  ;;  %v1656_v26 = vadd.f32 %v5041_v51, %v4428_v20  ;;  %v1657_v20 = vadd.f32 %v5042_v16, %v4445_v56  ;;  %v1658_v56 = vadd.f32 %v5043_v59, %v4460_v63  ;;  %v1891_v28 = vpop.f32.mrf.mxu1 }
 0x393   : > { %2795 = vst.msk [vmem:[%s4604_s25 + $0x98] sm:$0xff] %vm182_vm0, %v2763_v48  ;;  %v2845_v9 = vsel %vm182_vm0, %v2763_v48, 0.0  ;;  %v2898_v49 = vmul.f32 %v2763_v48, %v2763_v48  ;;  %v1933_v53 = vadd.f32 %v1879_v22, %v1656_v26  ;;  %v1935_v52 = vadd.f32 %v1885_v3, %v1658_v56 }
 0x394   : > { %v2846_v2 = vadd.f32 %v2845_v9, %v2844_v32  ;;  %v2154_v30 = vpop.f32.mrf.mxu2 }
 0x395   : > { %v2948_v18 = vsel %vm182_vm0, %v2898_v49, 0.0  ;;  %v2210_v8 = vadd.f32 %v2154_v30, %v1932_v15 }
 0x396   : > { %v2949_v23 = vadd.f32 %v2948_v18, %v2947_v40 }
 0x397   : > { %v2487_v21 = vadd.f32 %v2431_v43, %v2210_v8  ;;  %v2717_v43 = vpop.f32.mrf.mxu0  ;;  %v2443_v19 = vpop.f32.mrf.mxu3 }
 0x399   : > { %v2764_v38 = vadd.f32 %v2708_v41, %v2487_v21  ;;  %v1934_v41 = vadd.f32 %v1882_v55, %v1657_v20  ;;  %v5044_v55 = vld [vmem:[#allocation44_spill] sm:$0xff]  ;;  %v1894_v30 = vpop.f32.mrf.mxu1 }
 0x39a   : > { %v1659_v63 = vadd.f32 %v5044_v55, %v4475_v62  ;;  %v5045_v62 = vld [vmem:[#allocation45_spill] sm:$0xff] }
 0x39b   : > { %2796 = vst.msk [vmem:[%s4604_s25 + $0xa0] sm:$0xff] %vm182_vm0, %v2764_v38  ;;  %v2847_v10 = vsel %vm182_vm0, %v2764_v38, 0.0  ;;  %v2899_v7 = vmul.f32 %v2764_v38, %v2764_v38 }
 0x39c   : > { %v2848_v60 = vadd.f32 %v2847_v10, %v2846_v2  ;;  %v2157_v12 = vpop.f32.mrf.mxu2  ;;  %v1936_v36 = vadd.f32 %v1888_v44, %v1659_v63 }
 0x39d   : > { %v2950_v57 = vsel %vm182_vm0, %v2899_v7, 0.0  ;;  %v2211_v29 = vadd.f32 %v2157_v12, %v1933_v53 }
 0x39e   : > { %v2951_v5 = vadd.f32 %v2950_v57, %v2949_v23 }
 0x39f   : > { %v2488_v4 = vadd.f32 %v2434_v13, %v2211_v29  ;;  %v2720_v45 = vpop.f32.mrf.mxu0  ;;  %v2446_v35 = vpop.f32.mrf.mxu3 }
 0x3a1   : > { %v2765_v54 = vadd.f32 %v2711_v50, %v2488_v4  ;;  %v1897_v29 = vpop.f32.mrf.mxu1 }
 0x3a3   : > { %2797 = vst.msk [vmem:[%s4604_s25 + $0xa8] sm:$0xff] %vm182_vm0, %v2765_v54  ;;  %v2849_v6 = vsel %vm182_vm0, %v2765_v54, 0.0  ;;  %v2900_v58 = vmul.f32 %v2765_v54, %v2765_v54 }
 0x3a4   : > { %v2850_v42 = vadd.f32 %v2849_v6, %v2848_v60  ;;  %v2160_v22 = vpop.f32.mrf.mxu2 }
 0x3a5   : > { %v2952_v24 = vsel %vm182_vm0, %v2900_v58, 0.0  ;;  %v2212_v46 = vadd.f32 %v2160_v22, %v1934_v41 }
 0x3a6   : > { %v2953_v34 = vadd.f32 %v2952_v24, %v2951_v5  ;;  %v5047_v24 = vld [vmem:[#allocation25_spill] sm:$0xff] }
 0x3a7   : > { %v2489_v25 = vadd.f32 %v2437_v0, %v2212_v46  ;;  %v2723_v15 = vpop.f32.mrf.mxu0  ;;  %v2449_v26 = vpop.f32.mrf.mxu3  ;;  %v5048_v46 = vld [vmem:[#allocation47_spill] sm:$0xff] }
 0x3a9   : > { %v2766_v37 = vadd.f32 %v2714_v1, %v2489_v25  ;;  %v1660_v1 = vadd.f32 %v5045_v62, %v4492_v17  ;;  %v5046_v17 = vld [vmem:[#allocation46_spill] sm:$0xff]  ;;  %v1900_v25 = vpop.f32.mrf.mxu1 }
 0x3ab   : > { %2798 = vst.msk [vmem:[%s4604_s25 + $0xb0] sm:$0xff] %vm182_vm0, %v2766_v37  ;;  %v2851_v13 = vsel %vm182_vm0, %v2766_v37, 0.0  ;;  %v2901_v11 = vmul.f32 %v2766_v37, %v2766_v37  ;;  %v1937_v21 = vadd.f32 %v1891_v28, %v1660_v1 }
 0x3ac   : > { %v2852_v39 = vadd.f32 %v2851_v13, %v2850_v42  ;;  %v2163_v50 = vpop.f32.mrf.mxu2 }
 0x3ad   : > { %v2954_v32 = vsel %vm182_vm0, %v2901_v11, 0.0  ;;  %v2213_v33 = vadd.f32 %v2163_v50, %v1935_v52  ;;  %v5049_v50 = vld [vmem:[#allocation27_spill] sm:$0xff] }
 0x3ae   : > { %v2955_v61 = vadd.f32 %v2954_v32, %v2953_v34  ;;  %v5050_v32 = vld [vmem:[#allocation48_spill] sm:$0xff] }
 0x3af   : > { %v2490_v31 = vadd.f32 %v2440_v27, %v2213_v33  ;;  %v2726_v60 = vpop.f32.mrf.mxu0  ;;  %v1661_v27 = vadd.f32 %v5046_v17, %v4509_v47  ;;  %v2452_v6 = vpop.f32.mrf.mxu3  ;;  %v1662_v47 = vadd.f32 %v5048_v46, %v5047_v24  ;;  %v1663_v33 = vadd.f32 %v5050_v32, %v5049_v50 }
 0x3b1   : > { %v2767_v40 = vadd.f32 %v2717_v43, %v2490_v31  ;;  %v1938_v4 = vadd.f32 %v1894_v30, %v1661_v27  ;;  %v1940_v55 = vadd.f32 %v1900_v25, %v1663_v33 }
 0x3b3   : > { %2799 = vst.msk [vmem:[%s4604_s25 + $0xb8] sm:$0xff] %vm182_vm0, %v2767_v40  ;;  %v2853_v14 = vsel %vm182_vm0, %v2767_v40, 0.0  ;;  %v2902_v48 = vmul.f32 %v2767_v40, %v2767_v40 }
 0x3b4   : > { %v2854_v9 = vadd.f32 %v2853_v14, %v2852_v39  ;;  %v2166_v49 = vpop.f32.mrf.mxu2 }
 0x3b5   : > { %v2956_v0 = vsel %vm182_vm0, %v2902_v48, 0.0  ;;  %v2214_v2 = vadd.f32 %v2166_v49, %v1936_v36 }
 0x3b6   : > { %v2957_v18 = vadd.f32 %v2956_v0, %v2955_v61  ;;  %v5051_v0 = vld [vmem:[#allocation29_spill] sm:$0xff] }
 0x3b7   : > { %v2491_v8 = vadd.f32 %v2443_v19, %v2214_v2  ;;  %v2729_v22 = vpop.f32.mrf.mxu0  ;;  %v1939_v19 = vadd.f32 %v1897_v29, %v1662_v47  ;;  %v2455_v39 = vpop.f32.mrf.mxu3  ;;  %v5052_v2 = vld [vmem:[#allocation49_spill] sm:$0xff] }
 0x3b8   : > { %v1664_v30 = vadd.f32 %v5052_v2, %v5051_v0 }
 0x3b9   : > { %v2768_v23 = vadd.f32 %v2720_v45, %v2491_v8 }
 0x3bb   : > { %2800 = vst.msk [vmem:[%s4604_s25 + $0xc0] sm:$0xff] %vm182_vm0, %v2768_v23  ;;  %v2855_v3 = vsel %vm182_vm0, %v2768_v23, 0.0  ;;  %v2903_v51 = vmul.f32 %v2768_v23, %v2768_v23 }
 0x3bc   : > { %v2856_v38 = vadd.f32 %v2855_v3, %v2854_v9  ;;  %v2169_v53 = vpop.f32.mrf.mxu2 }
 0x3bd   : > { %v2958_v10 = vsel %vm182_vm0, %v2903_v51, 0.0  ;;  %v2215_v7 = vadd.f32 %v2169_v53, %v1937_v21 }
 0x3be   : > { %v2959_v12 = vadd.f32 %v2958_v10, %v2957_v18 }
 0x3bf   : > { %v2492_v57 = vadd.f32 %v2446_v35, %v2215_v7  ;;  %v2732_v31 = vpop.f32.mrf.mxu0  ;;  %v1903_v35 = vpop.f32.mrf.mxu1 }
 0x3c0   : > { %v2458_v8 = vpop.f32.mrf.mxu3  ;;  %v1941_v62 = vadd.f32 %v1903_v35, %v1664_v30 }
 0x3c1   : > { %v2769_v5 = vadd.f32 %v2723_v15, %v2492_v57 }
 0x3c3   : > { %2801 = vst.msk [vmem:[%s4604_s25 + $0xc8] sm:$0xff] %vm182_vm0, %v2769_v5  ;;  %v2857_v43 = vsel %vm182_vm0, %v2769_v5, 0.0  ;;  %v2904_v16 = vmul.f32 %v2769_v5, %v2769_v5 }
 0x3c4   : > { %v2858_v20 = vadd.f32 %v2857_v43, %v2856_v38  ;;  %v2172_v54 = vpop.f32.mrf.mxu2 }
 0x3c5   : > { %v2960_v44 = vsel %vm182_vm0, %v2904_v16, 0.0  ;;  %v2216_v41 = vadd.f32 %v2172_v54, %v1938_v4 }
 0x3c6   : > { %v2961_v58 = vadd.f32 %v2960_v44, %v2959_v12  ;;  %v5054_v12 = vld [vmem:[#allocation22_spill] sm:$0xff] }
 0x3c7   : > { %v2493_v42 = vadd.f32 %v2449_v26, %v2216_v41  ;;  %v2735_v21 = vpop.f32.mrf.mxu0  ;;  %v1906_v53 = vpop.f32.mrf.mxu1 }
 0x3c8   : > { %v2461_v17 = vpop.f32.mrf.mxu3 }
 0x3c9   : > { %v2770_v34 = vadd.f32 %v2726_v60, %v2493_v42  ;;  %v5053_v60 = vld [vmem:[#allocation4_spill] sm:$0xff]  ;;  %v5055_v42 = vld [vmem:[#allocation6_spill] sm:$0xff] }
 0x3ca   : > { %v1665_v57 = vadd.f32 %v5054_v12, %v5053_v60 }
 0x3cb   : > { %2802 = vst.msk [vmem:[%s4604_s25 + $0xd0] sm:$0xff] %vm182_vm0, %v2770_v34  ;;  %v2859_v59 = vsel %vm182_vm0, %v2770_v34, 0.0  ;;  %v2905_v56 = vmul.f32 %v2770_v34, %v2770_v34 }
 0x3cc   : > { %v2860_v37 = vadd.f32 %v2859_v59, %v2858_v20  ;;  %v2175_v45 = vpop.f32.mrf.mxu2  ;;  %v1942_v27 = vadd.f32 %v1906_v53, %v1665_v57 }
 0x3cd   : > { %v2962_v52 = vsel %vm182_vm0, %v2905_v56, 0.0  ;;  %v2217_v13 = vadd.f32 %v2175_v45, %v1939_v19 }
 0x3ce   : > { %v2963_v11 = vadd.f32 %v2962_v52, %v2961_v58 }
 0x3cf   : > { %v2494_v28 = vadd.f32 %v2452_v6, %v2217_v13  ;;  %v2738_v16 = vpop.f32.mrf.mxu0  ;;  %v1909_v58 = vpop.f32.mrf.mxu1 }
 0x3d0   : > { %v2464_v56 = vpop.f32.mrf.mxu3 }
 0x3d1   : > { %v2771_v61 = vadd.f32 %v2729_v22, %v2494_v28  ;;  %v5056_v22 = vld [vmem:[#allocation23_spill] sm:$0xff] }
 0x3d2   : > { %v1666_v24 = vadd.f32 %v5056_v22, %v5055_v42 }
 0x3d3   : > { %2803 = vst.msk [vmem:[%s4604_s25 + $0xd8] sm:$0xff] %vm182_vm0, %v2771_v61  ;;  %v2861_v63 = vsel %vm182_vm0, %v2771_v61, 0.0  ;;  %v2906_v40 = vmul.f32 %v2771_v61, %v2771_v61 }
 0x3d4   : > { %v2862_v36 = vadd.f32 %v2861_v63, %v2860_v37  ;;  %v2178_v14 = vpop.f32.mrf.mxu2  ;;  %v1943_v47 = vadd.f32 %v1909_v58, %v1666_v24 }
 0x3d5   : > { %v2964_v48 = vsel %vm182_vm0, %v2906_v40, 0.0  ;;  %v2218_v15 = vadd.f32 %v2178_v14, %v1940_v55 }
 0x3d6   : > { %v2965_v9 = vadd.f32 %v2964_v48, %v2963_v11 }
 0x3d7   : > { %v2495_v49 = vadd.f32 %v2455_v39, %v2218_v15  ;;  %v2741_v13 = vpop.f32.mrf.mxu0 }
 0x3d9   : > { %v2772_v18 = vadd.f32 %v2732_v31, %v2495_v49 }
 0x3db   : > { %2804 = vst.msk [vmem:[%s4604_s25 + $0xe0] sm:$0xff] %vm182_vm0, %v2772_v18  ;;  %v2863_v1 = vsel %vm182_vm0, %v2772_v18, 0.0  ;;  %v2907_v23 = vmul.f32 %v2772_v18, %v2772_v18 }
 0x3dc   : > { %v2181_v3 = vpop.f32.mrf.mxu2  ;;  %v2864_v51 = vadd.f32 %v2863_v1, %v2862_v36 }
 0x3dd   : > { %v2966_v26 = vsel %vm182_vm0, %v2907_v23, 0.0  ;;  %v2219_v38 = vadd.f32 %v2181_v3, %v1941_v62 }
 0x3de   : > { %v2967_v10 = vadd.f32 %v2966_v26, %v2965_v9 }
 0x3df   : > { %v2496_v7 = vadd.f32 %v2458_v8, %v2219_v38 }
 0x3e1   : > { %v2773_v29 = vadd.f32 %v2735_v21, %v2496_v7 }
 0x3e3   : > { %2805 = vst.msk [vmem:[%s4604_s25 + $0xe8] sm:$0xff] %vm182_vm0, %v2773_v29  ;;  %v2908_v5 = vmul.f32 %v2773_v29, %v2773_v29  ;;  %v2865_v4 = vsel %vm182_vm0, %v2773_v29, 0.0 }
 0x3e4   : > { %v2184_v43 = vpop.f32.mrf.mxu2  ;;  %v2866_v20 = vadd.f32 %v2865_v4, %v2864_v51 }
 0x3e5   : > { %v2220_v54 = vadd.f32 %v2184_v43, %v1942_v27  ;;  %v2968_v44 = vsel %vm182_vm0, %v2908_v5, 0.0 }
 0x3e6   : > { %v2969_v41 = vadd.f32 %v2968_v44, %v2967_v10 }
 0x3e7   : > { %v2497_v6 = vadd.f32 %v2461_v17, %v2220_v54 }
 0x3e9   : > { %v2774_v46 = vadd.f32 %v2738_v16, %v2497_v6 }
 0x3eb   : > { %2806 = vst.msk [vmem:[%s4604_s25 + $0xf0] sm:$0xff] %vm182_vm0, %v2774_v46  ;;  %v2867_v34 = vsel %vm182_vm0, %v2774_v46, 0.0  ;;  %v2909_v25 = vmul.f32 %v2774_v46, %v2774_v46 }
 0x3ec   : > { %v2868_v19 = vadd.f32 %v2867_v34, %v2866_v20  ;;  %v2187_v59 = vpop.f32.mrf.mxu2 }
 0x3ed   : > { %v2970_v37 = vsel %vm182_vm0, %v2909_v25, 0.0  ;;  %v2221_v45 = vadd.f32 %v2187_v59, %v1943_v47 }
 0x3ee   : > { %v2971_v52 = vadd.f32 %v2970_v37, %v2969_v41 }
 0x3ef   : > { %v2498_v11 = vadd.f32 %v2464_v56, %v2221_v45 }
 0x3f1   : > { %v2775_v28 = vadd.f32 %v2741_v13, %v2498_v11 }
 0x3f3   : > { %2807 = vst.msk [vmem:[%s4604_s25 + $0xf8] sm:$0xff] %vm182_vm0, %v2775_v28  ;;  %v2869_v39 = vsel %vm182_vm0, %v2775_v28, 0.0  ;;  %v2910_v50 = vmul.f32 %v2775_v28, %v2775_v28 }
 0x3f4   : > { %v2870_v32 = vadd.f32 %v2869_v39, %v2868_v19 }
 0x3f5   : > { %v2972_v33 = vsel %vm182_vm0, %v2910_v50, 0.0 }
 0x3f6   : > { %v2871_v61 = vrot.slane %v2870_v32, 4  ;;  %v2973_v31 = vadd.f32 %v2972_v33, %v2971_v52 }
 0x3f8   : > { %v2872_v55 = vadd.f32 %v2871_v61, %v2870_v32  ;;  %v2974_v63 = vrot.slane %v2973_v31, 4 }
 0x3fa   : > { %v2873_v40 = vrot.slane %v2872_v55, 2  ;;  %v2975_v35 = vadd.f32 %v2974_v63, %v2973_v31 }
 0x3fc   : > { %v2874_v36 = vadd.f32 %v2873_v40, %v2872_v55  ;;  %v2976_v14 = vrot.slane %v2975_v35, 2 }
 0x3fe   : > { %v2875_v48 = vrot.slane %v2874_v36, 1  ;;  %v2977_v15 = vadd.f32 %v2976_v14, %v2975_v35 }
 0x400   : > { %v2876_v9 = vadd.f32 %v2875_v48, %v2874_v36  ;;  %v2978_v49 = vrot.slane %v2977_v15, 1 }
 0x402   : > { %2878 = vst.msk [vmem:[%s181_s29] sm:$0x1] %vm2877_vm2, %v2876_v9  ;;  %v2979_v0 = vadd.f32 %v2978_v49, %v2977_v15 }
 0x404   : > { %2980 = vst.msk [vmem:[%s181_s29 + $0x1] sm:$0x1] %vm2877_vm2, %v2979_v0 }
 0x405 PF: > { %s14_s12 = sadd.s32 1, %s3416_s12  }
 0x406   : > { %p11_p4 = scmp.ge.s32.totalorder %s14_s12, 4  }
 0x408   :  { %13 = sbr.rel (!%p11_p4) target bundleno = 1 (0x1), region = 80 }

</bundles_post_ra>
